<compile_context>
chip_gen: v7x
topology: tpu7x:2x2x1
jax: 0.10.0
libtpu: 0.0.40
codegen_flags: <defaults>
</compile_context>

<pallas_src>
import jax
import jax.numpy as jnp
from jax.experimental import pallas as pl
from jax.experimental.pallas import tpu as pltpu

Z_DIM = 100
LEAKY_SLOPE = 0.01  # nn.LeakyReLU() default negative_slope
OUT_DIM = 3 * 64 * 64  # 12288


def _leaky_relu(x):
    return jnp.where(x > 0, x, LEAKY_SLOPE * x)


def _generator_kernel(x_ref, w1_ref, b1_ref, w2_ref, b2_ref, w3_ref, b3_ref,
                      w4_ref, b4_ref, o_ref):
    """One output-column tile of tanh(h3 @ W4 + b4), h3 recomputed per tile.

    x_ref:  (M, z_dim)        full latent block (VMEM resident, DMA'd once)
    w1..w3: full small weights (VMEM resident, DMA'd once)
    w4_ref: (1024, TN)        weight column tile (streamed from HBM)
    b*_ref: (1, n)            bias rows (f32)
    o_ref:  (M, TN)           output tile
    """
    # Layers 1-3: tiny matmuls on VMEM-resident bf16 weights, f32 accumulate.
    h = x_ref[...].astype(jnp.bfloat16)
    h = jnp.dot(h, w1_ref[...], preferred_element_type=jnp.float32) + b1_ref[...]
    h = _leaky_relu(h).astype(jnp.bfloat16)
    h = jnp.dot(h, w2_ref[...], preferred_element_type=jnp.float32) + b2_ref[...]
    h = _leaky_relu(h).astype(jnp.bfloat16)
    h = jnp.dot(h, w3_ref[...], preferred_element_type=jnp.float32) + b3_ref[...]
    h = _leaky_relu(h).astype(jnp.bfloat16)
    # Layer 4: column tile of the big projection + tanh.
    y = jnp.dot(h, w4_ref[...], preferred_element_type=jnp.float32) + b4_ref[...]
    o_ref[...] = jnp.tanh(y).astype(o_ref.dtype)


def generator_forward_pallas(x, params, tn=1024):
    """tanh(LReLU(LReLU(LReLU(x@W1+b1)@W2+b2)@W3+b3)@W4+b4) in one pallas_call."""
    (w1, b1), (w2, b2), (w3, b3), (w4, b4) = params
    M, K = x.shape
    K4, N = w4.shape
    assert N % tn == 0, "output features must be divisible by the tile size"

    b1r = b1.reshape(1, -1)
    b2r = b2.reshape(1, -1)
    b3r = b3.reshape(1, -1)
    b4r = b4.reshape(1, -1)

    return pl.pallas_call(
        _generator_kernel,
        out_shape=jax.ShapeDtypeStruct((M, N), jnp.float32),
        grid_spec=pltpu.PrefetchScalarGridSpec(
            num_scalar_prefetch=0,
            grid=(N // tn,),
            in_specs=[
                pl.BlockSpec((M, K), lambda j: (0, 0)),            # x (resident)
                pl.BlockSpec(w1.shape, lambda j: (0, 0)),          # W1 (resident)
                pl.BlockSpec((1, w1.shape[1]), lambda j: (0, 0)),  # b1
                pl.BlockSpec(w2.shape, lambda j: (0, 0)),          # W2 (resident)
                pl.BlockSpec((1, w2.shape[1]), lambda j: (0, 0)),  # b2
                pl.BlockSpec(w3.shape, lambda j: (0, 0)),          # W3 (resident)
                pl.BlockSpec((1, w3.shape[1]), lambda j: (0, 0)),  # b3
                pl.BlockSpec((K4, tn), lambda j: (0, j)),          # W4 column tile
                pl.BlockSpec((1, tn), lambda j: (0, j)),           # b4 tile
            ],
            out_specs=pl.BlockSpec((M, tn), lambda j: (0, j)),
        ),
        compiler_params=pltpu.CompilerParams(
            dimension_semantics=("parallel",),   # shards tiles across TCs on v7x
            vmem_limit_bytes=32 * 1024 * 1024,
        ),
    )(x, w1, b1r, w2, b2r, w3, b3r, w4, b4r)


def init_generator_params(key, z_dim=Z_DIM):
    """Deterministic synthetic parameters, same shapes as the PyTorch module.

    Weights are kept in bfloat16 (HBM-bandwidth dominated kernel); biases in f32.
    """
    dims = [z_dim, 256, 512, 1024, OUT_DIM]
    params = []
    for i in range(len(dims) - 1):
        key, kw, kb = jax.random.split(key, 3)
        fan_in = dims[i]
        scale = 1.0 / jnp.sqrt(jnp.float32(fan_in))
        # PyTorch stores weight as (out, in); we keep (in, out) for x @ W.
        w = jax.random.uniform(kw, (dims[i], dims[i + 1]), jnp.float32, -scale, scale)
        b = jax.random.uniform(kb, (dims[i + 1],), jnp.float32, -scale, scale)
        params.append((w.astype(jnp.bfloat16), b))
    return params


@jax.jit
def generator_forward(x, params):
    return generator_forward_pallas(x, params)  # (batch, 3*64*64)


def _reference_forward(x, params):
    """Pure-JAX reference mirroring the kernel's dtype flow (bf16 in, f32 acc)."""
    h = x
    n = len(params)
    for i, (w, b) in enumerate(params):
        h = jnp.dot(h.astype(jnp.bfloat16), w.astype(jnp.bfloat16),
                    preferred_element_type=jnp.float32) + b
        h = _leaky_relu(h) if i < n - 1 else jnp.tanh(h)
    return h


if __name__ == "__main__":
    key = jax.random.PRNGKey(0)
    key, kx = jax.random.split(key)
    batch = 2  # NOTE: larger batches (>=16) amortize the weight stream much better
    z = jax.random.normal(kx, (batch, Z_DIM), jnp.float32)

    params = init_generator_params(key)
    out = generator_forward(z, params)
    out = jax.block_until_ready(out)

    assert out.shape == (batch, OUT_DIM), out.shape

    ref = _reference_forward(z, params)
    err = jnp.max(jnp.abs(out - ref))
    assert float(err) < 2e-2, f"max abs error {err}"

    print("KERNEL_OK")
</pallas_src>

<mosaic_0001>
module attributes {stable_mosaic.version = 11 : i64} {
  func.func @_generator_kernel(%arg0: i32, %arg1: memref<2x100xf32, #tpu.memory_space<vmem>>, %arg2: memref<100x256xbf16, #tpu.memory_space<vmem>>, %arg3: memref<1x256xf32, #tpu.memory_space<vmem>>, %arg4: memref<256x512xbf16, #tpu.memory_space<vmem>>, %arg5: memref<1x512xf32, #tpu.memory_space<vmem>>, %arg6: memref<512x1024xbf16, #tpu.memory_space<vmem>>, %arg7: memref<1x1024xf32, #tpu.memory_space<vmem>>, %arg8: memref<1024x1024xbf16, #tpu.memory_space<vmem>>, %arg9: memref<1x1024xf32, #tpu.memory_space<vmem>>, %arg10: memref<2x1024xf32, #tpu.memory_space<vmem>>) attributes {dimension_semantics = [#tpu.dimension_semantics<parallel>], iteration_bounds = array<i64: 12>, scalar_prefetch = 0 : i64, scratch_operands = 0 : i64, tpu.core_type = #tpu.core_type<tc>, window_params = [{pipeline_mode = #tpu.pipeline_mode<synchronous>, transform_indices = @transform_0, window_bounds = array<i64: 2, 100>}, {pipeline_mode = #tpu.pipeline_mode<synchronous>, transform_indices = @transform_1, window_bounds = array<i64: 100, 256>}, {pipeline_mode = #tpu.pipeline_mode<synchronous>, transform_indices = @transform_2, window_bounds = array<i64: 1, 256>}, {pipeline_mode = #tpu.pipeline_mode<synchronous>, transform_indices = @transform_3, window_bounds = array<i64: 256, 512>}, {pipeline_mode = #tpu.pipeline_mode<synchronous>, transform_indices = @transform_4, window_bounds = array<i64: 1, 512>}, {pipeline_mode = #tpu.pipeline_mode<synchronous>, transform_indices = @transform_5, window_bounds = array<i64: 512, 1024>}, {pipeline_mode = #tpu.pipeline_mode<synchronous>, transform_indices = @transform_6, window_bounds = array<i64: 1, 1024>}, {transform_indices = @transform_7, window_bounds = array<i64: 1024, 1024>}, {transform_indices = @transform_8, window_bounds = array<i64: 1, 1024>}, {transform_indices = @transform_9, window_bounds = array<i64: 2, 1024>}]} {
    %c0 = arith.constant 0 : index
    %c0_0 = arith.constant 0 : index
    %0 = vector.load %arg1[%c0, %c0_0] : memref<2x100xf32, #tpu.memory_space<vmem>>, vector<2x100xf32>
    %1 = arith.truncf %0 : vector<2x100xf32> to vector<2x100xbf16>
    %c0_1 = arith.constant 0 : index
    %c0_2 = arith.constant 0 : index
    %2 = vector.load %arg2[%c0_1, %c0_2] : memref<100x256xbf16, #tpu.memory_space<vmem>>, vector<100x256xbf16>
    %cst = arith.constant dense<0.000000e+00> : vector<2x256xf32>
    %3 = tpu.matmul %1, %2, %cst {dimension_numbers = #tpu.dot_dimension_numbers<[1], [0], [0], [1], [0, 0, 1, 1], [], []>} : vector<2x100xbf16>, vector<100x256xbf16>, vector<2x256xf32> -> vector<2x256xf32>
    %c0_3 = arith.constant 0 : index
    %c0_4 = arith.constant 0 : index
    %4 = vector.load %arg3[%c0_3, %c0_4] : memref<1x256xf32, #tpu.memory_space<vmem>>, vector<1x256xf32>
    %5 = vector.broadcast %4 : vector<1x256xf32> to vector<2x256xf32>
    %6 = arith.addf %3, %5 : vector<2x256xf32>
    %cst_5 = arith.constant 0.000000e+00 : f32
    %7 = vector.broadcast %cst_5 : f32 to vector<2x256xf32>
    %8 = arith.cmpf ogt, %6, %7 : vector<2x256xf32>
    %cst_6 = arith.constant 0.00999999977 : f32
    %9 = vector.broadcast %cst_6 : f32 to vector<2x256xf32>
    %10 = arith.mulf %9, %6 : vector<2x256xf32>
    %11 = arith.select %8, %6, %10 : vector<2x256xi1>, vector<2x256xf32>
    %12 = arith.truncf %11 : vector<2x256xf32> to vector<2x256xbf16>
    %c0_7 = arith.constant 0 : index
    %c0_8 = arith.constant 0 : index
    %13 = vector.load %arg4[%c0_7, %c0_8] : memref<256x512xbf16, #tpu.memory_space<vmem>>, vector<256x512xbf16>
    %cst_9 = arith.constant dense<0.000000e+00> : vector<2x512xf32>
    %14 = tpu.matmul %12, %13, %cst_9 {dimension_numbers = #tpu.dot_dimension_numbers<[1], [0], [0], [1], [0, 0, 1, 1], [], []>} : vector<2x256xbf16>, vector<256x512xbf16>, vector<2x512xf32> -> vector<2x512xf32>
    %c0_10 = arith.constant 0 : index
    %c0_11 = arith.constant 0 : index
    %15 = vector.load %arg5[%c0_10, %c0_11] : memref<1x512xf32, #tpu.memory_space<vmem>>, vector<1x512xf32>
    %16 = vector.broadcast %15 : vector<1x512xf32> to vector<2x512xf32>
    %17 = arith.addf %14, %16 : vector<2x512xf32>
    %cst_12 = arith.constant 0.000000e+00 : f32
    %18 = vector.broadcast %cst_12 : f32 to vector<2x512xf32>
    %19 = arith.cmpf ogt, %17, %18 : vector<2x512xf32>
    %cst_13 = arith.constant 0.00999999977 : f32
    %20 = vector.broadcast %cst_13 : f32 to vector<2x512xf32>
    %21 = arith.mulf %20, %17 : vector<2x512xf32>
    %22 = arith.select %19, %17, %21 : vector<2x512xi1>, vector<2x512xf32>
    %23 = arith.truncf %22 : vector<2x512xf32> to vector<2x512xbf16>
    %c0_14 = arith.constant 0 : index
    %c0_15 = arith.constant 0 : index
    %24 = vector.load %arg6[%c0_14, %c0_15] : memref<512x1024xbf16, #tpu.memory_space<vmem>>, vector<512x1024xbf16>
    %cst_16 = arith.constant dense<0.000000e+00> : vector<2x1024xf32>
    %25 = tpu.matmul %23, %24, %cst_16 {dimension_numbers = #tpu.dot_dimension_numbers<[1], [0], [0], [1], [0, 0, 1, 1], [], []>} : vector<2x512xbf16>, vector<512x1024xbf16>, vector<2x1024xf32> -> vector<2x1024xf32>
    %c0_17 = arith.constant 0 : index
    %c0_18 = arith.constant 0 : index
    %26 = vector.load %arg7[%c0_17, %c0_18] : memref<1x1024xf32, #tpu.memory_space<vmem>>, vector<1x1024xf32>
    %27 = vector.broadcast %26 : vector<1x1024xf32> to vector<2x1024xf32>
    %28 = arith.addf %25, %27 : vector<2x1024xf32>
    %cst_19 = arith.constant 0.000000e+00 : f32
    %29 = vector.broadcast %cst_19 : f32 to vector<2x1024xf32>
    %30 = arith.cmpf ogt, %28, %29 : vector<2x1024xf32>
    %cst_20 = arith.constant 0.00999999977 : f32
    %31 = vector.broadcast %cst_20 : f32 to vector<2x1024xf32>
    %32 = arith.mulf %31, %28 : vector<2x1024xf32>
    %33 = arith.select %30, %28, %32 : vector<2x1024xi1>, vector<2x1024xf32>
    %34 = arith.truncf %33 : vector<2x1024xf32> to vector<2x1024xbf16>
    %c0_21 = arith.constant 0 : index
    %c0_22 = arith.constant 0 : index
    %35 = vector.load %arg8[%c0_21, %c0_22] : memref<1024x1024xbf16, #tpu.memory_space<vmem>>, vector<1024x1024xbf16>
    %cst_23 = arith.constant dense<0.000000e+00> : vector<2x1024xf32>
    %36 = tpu.matmul %34, %35, %cst_23 {dimension_numbers = #tpu.dot_dimension_numbers<[1], [0], [0], [1], [0, 0, 1, 1], [], []>} : vector<2x1024xbf16>, vector<1024x1024xbf16>, vector<2x1024xf32> -> vector<2x1024xf32>
    %c0_24 = arith.constant 0 : index
    %c0_25 = arith.constant 0 : index
    %37 = vector.load %arg9[%c0_24, %c0_25] : memref<1x1024xf32, #tpu.memory_space<vmem>>, vector<1x1024xf32>
    %38 = vector.broadcast %37 : vector<1x1024xf32> to vector<2x1024xf32>
    %39 = arith.addf %36, %38 : vector<2x1024xf32>
    %40 = math.tanh %39 : vector<2x1024xf32>
    %c0_26 = arith.constant 0 : index
    %c0_27 = arith.constant 0 : index
    %41 = vector.load %arg10[%c0_26, %c0_27] : memref<2x1024xf32, #tpu.memory_space<vmem>>, vector<2x1024xf32>
    tpu.vector_store %arg10[%c0_26, %c0_27], %40 {strides = array<i32>} : memref<2x1024xf32, #tpu.memory_space<vmem>>, vector<2x1024xf32>,
    return
  }
  func.func @transform_0(%arg0: i32) -> (i32, i32) {
    %c0_i32 = arith.constant 0 : i32
    %c0_i32_0 = arith.constant 0 : i32
    %c0_i32_1 = arith.constant 0 : i32
    return %c0_i32, %c0_i32_0 : i32, i32
  }
  func.func @transform_1(%arg0: i32) -> (i32, i32) {
    %c0_i32 = arith.constant 0 : i32
    %c0_i32_0 = arith.constant 0 : i32
    %c0_i32_1 = arith.constant 0 : i32
    return %c0_i32, %c0_i32_0 : i32, i32
  }
  func.func @transform_2(%arg0: i32) -> (i32, i32) {
    %c0_i32 = arith.constant 0 : i32
    %c0_i32_0 = arith.constant 0 : i32
    %c0_i32_1 = arith.constant 0 : i32
    return %c0_i32, %c0_i32_0 : i32, i32
  }
  func.func @transform_3(%arg0: i32) -> (i32, i32) {
    %c0_i32 = arith.constant 0 : i32
    %c0_i32_0 = arith.constant 0 : i32
    %c0_i32_1 = arith.constant 0 : i32
    return %c0_i32, %c0_i32_0 : i32, i32
  }
  func.func @transform_4(%arg0: i32) -> (i32, i32) {
    %c0_i32 = arith.constant 0 : i32
    %c0_i32_0 = arith.constant 0 : i32
    %c0_i32_1 = arith.constant 0 : i32
    return %c0_i32, %c0_i32_0 : i32, i32
  }
  func.func @transform_5(%arg0: i32) -> (i32, i32) {
    %c0_i32 = arith.constant 0 : i32
    %c0_i32_0 = arith.constant 0 : i32
    %c0_i32_1 = arith.constant 0 : i32
    return %c0_i32, %c0_i32_0 : i32, i32
  }
  func.func @transform_6(%arg0: i32) -> (i32, i32) {
    %c0_i32 = arith.constant 0 : i32
    %c0_i32_0 = arith.constant 0 : i32
    %c0_i32_1 = arith.constant 0 : i32
    return %c0_i32, %c0_i32_0 : i32, i32
  }
  func.func @transform_7(%arg0: i32) -> (i32, i32) {
    %c0_i32 = arith.constant 0 : i32
    %c0_i32_0 = arith.constant 0 : i32
    return %c0_i32, %arg0 : i32, i32
  }
  func.func @transform_8(%arg0: i32) -> (i32, i32) {
    %c0_i32 = arith.constant 0 : i32
    %c0_i32_0 = arith.constant 0 : i32
    return %c0_i32, %arg0 : i32, i32
  }
  func.func @transform_9(%arg0: i32) -> (i32, i32) {
    %c0_i32 = arith.constant 0 : i32
    %c0_i32_0 = arith.constant 0 : i32
    return %c0_i32, %arg0 : i32, i32
  }
}

</mosaic_0001>

<bundles_post_ra>
// kernel: generator_forward.1
= control target key start
LH: loop header
LB: loop body
LE: loop exit
PB: predicated region body
PF: predicated region fallthrough
CT: control target
= control target key end

     0   :  { %s9777_s0 = inlined_call_operand.hbm [shape: f32[2,100], index: 0, kind: input, shape index: {}]   ;;  %s9778_s1 = inlined_call_operand.hbm [shape: bf16[100,256], index: 1, kind: input, shape index: {}]   ;;  %s9779_s2 = inlined_call_operand.hbm [shape: f32[1,256], index: 2, kind: input, shape index: {}]   ;;  %s9780_s3 = inlined_call_operand.hbm [shape: bf16[256,512], index: 3, kind: input, shape index: {}]   ;;  %s9781_s4 = inlined_call_operand.hbm [shape: f32[1,512], index: 4, kind: input, shape index: {}]   ;;  %s9782_s5 = inlined_call_operand.hbm [shape: bf16[512,1024], index: 5, kind: input, shape index: {}]   ;;  %s9783_s6 = inlined_call_operand.hbm [shape: f32[1,1024], index: 6, kind: input, shape index: {}]   ;;  %s9784_s7 = inlined_call_operand.hbm [shape: bf16[1024,12288], index: 7, kind: input, shape index: {}]   ;;  %s9785_s8 = inlined_call_operand.hbm [shape: f32[1,12288], index: 8, kind: input, shape index: {}]   ;;  %s9786_s9 = inlined_call_operand.hbm [shape: f32[2,12288], index: 9, kind: output, shape index: {}]  }
   0x1   :  { %9804 = sst [smem:[#allocation28_spill]] %s9778_s1 }
   0x2   :  { %9805 = sst [smem:[#allocation29_spill]] %s9780_s3 }
   0x3   :  { %9806 = sst [smem:[#allocation30_spill]] %s9782_s5 }
   0x4   :  { %9807 = sst [smem:[#allocation31_spill]] %s9784_s7 }
   0x5   :  { %9808 = sst [smem:[#allocation32_spill]] %s9786_s9 }
   0x6   :  { %14 = vsyncpa [#allocation3], 0 }
   0x7   :  { %15 = vsyncpa [#allocation6], 0 }
   0x8   :  { %16 = vsyncpa [#allocation9], 0 }
   0x9   :  { %17 = vsyncpa [#allocation12], 0 }
   0xa   :  { %18 = vsyncpa [#allocation15], 0 }
   0xb   :  { %20 = vsyncpa [#allocation15 + $0x1], 0 }
   0xc   :  { %21 = vsyncpa [#allocation4], 0 }
   0xd   :  { %23 = vsyncpa [#allocation4 + $0x1], 0  ;;  %s8712_s30 = smov 0   ;;  %s8714_s10 = smov 0  }
   0xe   :  { %s8716_s11 = smov 0   ;;  %s8718_s12 = smov 0  }
   0xf LB: > { %9809 = sst [smem:[#allocation24_spill]] %s8629_s30  ;;  %s8643_s13 = smov [#allocation5]   ;;  %s8641_s12 = sphi %s8718_s12, %s9848_s12   ;;  %s8637_s11 = sphi %s8716_s11, %s9852_s11   ;;  %s8633_s10 = sphi %s8714_s10, %s9851_s10   ;;  %s8629_s30 = sphi %s8712_s30, %s9850_s30  }
  0x10   : > { %s282_s14 = sshll.u32 %s8643_s13, 4  ;;  %s8733_s15 = sadd.s32 4294967295, %s8641_s12   ;;  %s8738_s14 = int_to_ptr.vmem [resolvable:$true] %s282_s14 }
  0x11   : > { %p7077_p0 = scmp.ge.s32.totalorder %s8641_s12, 1  ;;  %p9788_p1 = scmp.eq.s32.totalorder %s8733_s15, 0 }
  0x12   : > { %p259_p2 = scmp.lt.s32.totalorder %s8641_s12, 13  ;;  %s8644_s17 = smov [#allocation8]  }
  0x13   : > { %s306_s18 = sshll.u32 %s8644_s17, 4  ;;  %s8645_s20 = smov [#allocation11]   ;;  %s8752_s18 = int_to_ptr.vmem [resolvable:$true] %s306_s18 }
  0x14   : > { %p8740_p3 = pnand %p7077_p0, %p259_p2  ;;  %s8754_s21 = sshll.u32 %s8645_s20, 4  ;;  %s331_s21 = int_to_ptr.vmem [resolvable:$true] %s8754_s21 }
  0x15   : > { %s9812_s1 = sld [smem:[#allocation28_spill]] }
  0x16   : > { %s9810_s16 = scalar_select %p8740_p3, 1, 0 }
  0x17   : > { %p8073_p4 = pneg %p8740_p3 }
  0x19   : > { %p8748_p5 = pnand %p8073_p4, %p9788_p1 }
  0x1b   : > { %s9811_s19 = scalar_select %p8748_p5, 1, 0 }
  0x1c   : > { %s8303_s24 = scalar_lea.hbm %s9812_s1, 1664  ;;  %p8764_p7 = pneg %p8748_p5 }
  0x1d   : > { %p8304_p6 = scmp.ne.s32.totalorder %s9812_s1, %s8303_s24  ;;  %p8310_p10 = scmp.lt.u32.totalorder %s8303_s24, %s9812_s1 }
  0x1f   : > { %p8306_p8 = pnand %p8764_p7, %p8304_p6 }
  0x21   : > { %p8307_p9 = pneg %p8306_p8 }
  0x23   : > { %p8312_p11 = pnand %p8310_p10, %p8307_p9 }
  0x25   : > { %8315 = shalt.err (!%p8312_p11)
}
  0x26   : > { %s8316_s13 = scalar_lea.vmem %s8738_s14, 1664  ;;  %p8324_p2 = scmp.lt.s32.totalorder %s8738_s14, %s8738_s14 }
  0x27   : > { %p8317_p12 = scmp.ne.s32.totalorder %s8738_s14, %s8316_s13  ;;  %p8325_p4 = scmp.lt.s32.totalorder %s8316_s13, %s8316_s13 }
  0x29   : > { %p8319_p13 = pnand %p8317_p12, %p8764_p7  ;;  %p8326_p6 = por %p8325_p4, %p8324_p2 }
  0x2b   : > { %p8320_p0 = pneg %p8319_p13 }
  0x2d   : > { %p8327_p8 = pnand %p8326_p6, %p8320_p0 }
  0x2f   : > { %8330 = shalt.err (!%p8327_p8)
}
  0x30   : > { %s8646_s17 = smov 128   ;;  %s8647_s20 = smov 8  }
  0x31   : > { %8079 = dma.hbm_to_vmem [thread:$0]  (!%p8748_p5), %s9812_s1, 1664, %s8738_s14, [#allocation6], %s8646_s17, %s8646_s17, %s8647_s20  }
  0x32   : > { %s9814_s3 = sld [smem:[#allocation29_spill]] }
  0x38   : > { %s8331_s26 = scalar_lea.hbm %s9814_s3, 8192 }
  0x39   : > { %p8332_p9 = scmp.ne.s32.totalorder %s9814_s3, %s8331_s26  ;;  %p8338_p12 = scmp.lt.u32.totalorder %s8331_s26, %s9814_s3 }
  0x3b   : > { %p8334_p10 = pnand %p8332_p9, %p8764_p7 }
  0x3d   : > { %p8335_p11 = pneg %p8334_p10 }
  0x3f   : > { %p8340_p13 = pnand %p8338_p12, %p8335_p11 }
  0x41   : > { %8343 = shalt.err (!%p8340_p13)
}
  0x42   : > { %s8344_s14 = scalar_lea.vmem %s8752_s18, 8192  ;;  %p8352_p6 = scmp.lt.s32.totalorder %s8752_s18, %s8752_s18 }
  0x43   : > { %p8345_p0 = scmp.ne.s32.totalorder %s8752_s18, %s8344_s14  ;;  %p8353_p8 = scmp.lt.s32.totalorder %s8344_s14, %s8344_s14 }
  0x45   : > { %p8347_p2 = pnand %p8345_p0, %p8764_p7  ;;  %p8354_p9 = por %p8353_p8, %p8352_p6 }
  0x47   : > { %p8348_p4 = pneg %p8347_p2 }
  0x49   : > { %p8355_p10 = pnand %p8354_p9, %p8348_p4 }
  0x4b   : > { %8358 = shalt.err (!%p8355_p10)
}
  0x4c   : > { %s8648_s17 = smov 256   ;;  %s8649_s9 = smov 16  }
  0x4d   : > { %8085 = dma.hbm_to_vmem [thread:$0]  (!%p8748_p5), %s9814_s3, 8192, %s8752_s18, [#allocation9], %s8648_s17, %s8648_s17, %s8649_s9  }
  0x4e   : > { %s9815_s5 = sld [smem:[#allocation30_spill]] }
  0x54   : > { %s8359_s25 = scalar_lea.hbm %s9815_s5, 32768 }
  0x55   : > { %p8360_p11 = scmp.ne.s32.totalorder %s9815_s5, %s8359_s25  ;;  %p8366_p0 = scmp.lt.u32.totalorder %s8359_s25, %s9815_s5 }
  0x57   : > { %p8362_p12 = pnand %p8360_p11, %p8764_p7 }
  0x59   : > { %p8363_p13 = pneg %p8362_p12 }
  0x5b   : > { %p8368_p2 = pnand %p8366_p0, %p8363_p13 }
  0x5d   : > { %8371 = shalt.err (!%p8368_p2)
}
  0x5e   : > { %s8372_s14 = scalar_lea.vmem %s331_s21, 32768  ;;  %p8380_p9 = scmp.lt.s32.totalorder %s331_s21, %s331_s21 }
  0x5f   : > { %p8373_p4 = scmp.ne.s32.totalorder %s331_s21, %s8372_s14  ;;  %p8381_p10 = scmp.lt.s32.totalorder %s8372_s14, %s8372_s14 }
  0x61   : > { %p8375_p6 = pnand %p8373_p4, %p8764_p7  ;;  %p8382_p1 = por %p8381_p10, %p8380_p9 }
  0x63   : > { %p8376_p8 = pneg %p8375_p6 }
  0x65   : > { %p8383_p3 = pnand %p8382_p1, %p8376_p8 }
  0x67   : > { %8386 = shalt.err (!%p8383_p3)
}
  0x68   : > { %s9790_s18 = smov 512   ;;  %s9791_s17 = smov 32  }
  0x69   : > { %8091 = dma.hbm_to_vmem [thread:$0]  (!%p8748_p5), %s9815_s5, 32768, %s331_s21, [#allocation12], %s9790_s18, %s9790_s18, %s9791_s17  }
  0x6a   : > { %s7076_s22 = sadd.s32 4294967294, %s8641_s12   ;;  %s8832_s23 = sadd.s32 1, %s8641_s12  }
  0x6b   : > { %9816 = sst [smem:[#allocation25_spill]] %s8832_s23  ;;  %s183_s24 = sadd.s32 1, %s8637_s11 }
  0x6c   : > { %s180_s25 = ssub.s32 %s8641_s12, %s8832_s23  ;;  %p190_p1 = scmp.ne.s32.totalorder %s8637_s11, %s8633_s10 }
  0x6d   : > { %p181_p3 = scmp.eq.s32.totalorder %s180_s25, 0  ;;  %p191_p11 = scmp.eq.s32.totalorder %s8641_s12, 0 }
  0x6e   : > { %p196_p12 = scmp.ne.s32.totalorder %s8633_s10, %s8629_s30  ;;  %p246_p13 = scmp.eq.s32.totalorder %s8733_s15, 11 }
  0x6f   : > { %s8844_s26 = scalar_select %p181_p3, %s8637_s11, %s183_s24  }
  0x70   : > { %p192_p0 = por %p191_p11, %p190_p1  ;;  %p9818_p2 = scmp.eq.s32.totalorder %s8733_s15, 0 }
  0x71   : > { %9817 = sst [smem:[#allocation26_spill]] %s8844_s26  ;;  %p8852_p6 = por %p246_p13, %p190_p1 }
  0x72   : > { %p8848_p4 = por %p9818_p2, %p196_p12  ;;  %p252_p8 = scmp.eq.s32.totalorder %s7076_s22, 11 }
  0x73   : > { %s9820_s28 = scalar_select %p8852_p6, 1, 0 }
  0x74   : > { %s9819_s21 = scalar_select %p8848_p4, 1, 0 }
  0x75   : > { %p8113_p9 = scmp.lt.s32.totalorder %s8641_s12, 12  ;;  %s355_s29 = sand.u32 1, %s8641_s12  }
  0x76   : > { %p8858_p10 = por %p252_p8, %p196_p12  ;;  %s9792_s14 = sand.u32 1, %s8637_s11  }
  0x77   : > { %s7956_s9 = sshll.u32 %s8641_s12, 9  ;;  %s7086_s20 = sshll.u32 %s9792_s14, 12 }
  0x78   : > { %s9821_s13 = scalar_select %p8858_p10, 1, 0 }
  0x79   : > { %s9823_s7 = sld [smem:[#allocation31_spill]]  ;;  %p8871_p1 = pnand %p8113_p9, %p192_p0 }
  0x7a   : > { %9822 = sst [smem:[#allocation27_spill]] %s9821_s13  ;;  %s359_s17 = scalar_lea.vmem [#allocation14], %s7086_s20 }
  0x7b   : > { %s9824_s22 = scalar_select %p8871_p1, 1, 0 }
  0x7c   : > { %s366_s1 = sshll.u32 %s359_s17, 4  ;;  %s8877_s14 = scalar_lea.sflag [#allocation15], %s355_s29  ;;  %s8875_s1 = int_to_ptr.vmem [resolvable:$true] %s366_s1 }
  0x7d   : > { %p9801_p11 = pneg %p8871_p1 }
  0x7f   : > { %s8869_s18 = scalar_lea.hbm %s9823_s7, %s7956_s9  ;;  %s8392_s25 = scalar_lea.hbm %s9823_s7, 786432 }
  0x80   : > { %s8387_s3 = scalar_lea.hbm %s8869_s18, 65536  ;;  %p8393_p0 = scmp.lt.u32.totalorder %s8869_s18, %s9823_s7 }
  0x81   : > { %p8388_p3 = scmp.ne.s32.totalorder %s8869_s18, %s8387_s3  ;;  %p8394_p2 = scmp.lt.u32.totalorder %s8392_s25, %s8387_s3 }
  0x82   : > { %p8396_p9 = scmp.lt.u32.totalorder %s8387_s3, %s8869_s18 }
  0x83   : > { %p8390_p12 = pnand %p9801_p11, %p8388_p3  ;;  %p8395_p8 = por %p8394_p2, %p8393_p0 }
  0x85   : > { %p8391_p13 = pneg %p8390_p12  ;;  %p8397_p10 = por %p8396_p9, %p8395_p8 }
  0x87   : > { %p8398_p6 = pnand %p8397_p10, %p8391_p13 }
  0x89   : > { %8401 = shalt.err (!%p8398_p6)
}
  0x8a   : > { %s8402_s17 = scalar_lea.vmem %s8875_s1, 65536  ;;  %s8652_s29 = smov [#allocation14]  }
  0x8b   : > { %p8403_p3 = scmp.ne.s32.totalorder %s8875_s1, %s8402_s17  ;;  %s8407_s20 = sshll.u32 %s8652_s29, 4  ;;  %s8408_s20 = int_to_ptr.vmem [resolvable:$false] %s8407_s20 }
  0x8c   : > { %s8409_s5 = scalar_lea.vmem %s8408_s20, 131072  ;;  %p8410_p5 = scmp.lt.s32.totalorder %s8875_s1, %s8408_s20 }
  0x8d   : > { %p8405_p12 = pnand %p8403_p3, %p9801_p11  ;;  %p8411_p0 = scmp.lt.s32.totalorder %s8409_s5, %s8402_s17 }
  0x8f   : > { %p8406_p4 = pneg %p8405_p12  ;;  %p8412_p2 = por %p8411_p0, %p8410_p5 }
  0x91   : > { %p8413_p8 = pnand %p8412_p2, %p8406_p4 }
  0x93   : > { %8416 = shalt.err (!%p8413_p8)
}
  0x94   : > { %s8653_s3 = smov 6144   ;;  %s9825_s26 = smov 32  }
  0x95   : > { %s9826_s9 = smov 512   ;;  %s8654_s24 = smov [#allocation2]  }
  0x96   : > { %8098 = dma.hbm_to_vmem [thread:$0]  (!%p8871_p1), %s8869_s18, 65536, %s8875_s1, %s8877_s14, %s8653_s3, %s9826_s9, %s9825_s26  }
  0x97   : > { %s272_s25 = sshll.u32 %s8654_s24, 4  ;;  %s8655_s29 = smov [#allocation7]   ;;  %s273_s25 = int_to_ptr.vmem [resolvable:$true] %s272_s25 }
  0x98   : > { %s296_s7 = sshll.u32 %s8655_s29, 4  ;;  %s8417_s5 = scalar_lea.hbm %s9777_s0, 32  ;;  %s8907_s7 = int_to_ptr.vmem [resolvable:$true] %s296_s7 }
  0x99   : > { %p8418_p5 = scmp.ne.s32.totalorder %s9777_s0, %s8417_s5  ;;  %p8424_p10 = scmp.lt.u32.totalorder %s8417_s5, %s9777_s0 }
  0x9b   : > { %p8420_p4 = pnand %p8418_p5, %p8764_p7 }
  0x9d   : > { %p8421_p6 = pneg %p8420_p4 }
  0x9f   : > { %p8426_p13 = pnand %p8424_p10, %p8421_p6 }
  0xa1   : > { %8429 = shalt.err (!%p8426_p13)
}
  0xa2   : > { %s8430_s18 = scalar_lea.vmem %s273_s25, 32  ;;  %p8438_p0 = scmp.lt.s32.totalorder %s273_s25, %s273_s25 }
  0xa3   : > { %p8431_p9 = scmp.ne.s32.totalorder %s273_s25, %s8430_s18  ;;  %p8439_p2 = scmp.lt.s32.totalorder %s8430_s18, %s8430_s18 }
  0xa5   : > { %p8433_p3 = pnand %p8431_p9, %p8764_p7  ;;  %p8440_p8 = por %p8439_p2, %p8438_p0 }
  0xa7   : > { %p8434_p12 = pneg %p8433_p3 }
  0xa9   : > { %p8441_p11 = pnand %p8440_p8, %p8434_p12 }
  0xab   : > { %8444 = shalt.err (!%p8441_p11)
}
  0xac   : > { %p9827_p5 = scmp.ne.s32.totalorder %s9811_s19, 0  ;;  %s8445_s26 = scalar_lea.hbm %s9779_s2, 32 }
  0xad   : > { %p8446_p4 = scmp.ne.s32.totalorder %s9779_s2, %s8445_s26  ;;  %p8452_p11 = scmp.lt.u32.totalorder %s8445_s26, %s9779_s2 }
  0xae   : > { %8076 = dma.hbm_to_vmem [thread:$0]  (!%p9827_p5), %s9777_s0, 32, %s273_s25, [#allocation3]  }
  0xaf   : > { %p8448_p6 = pnand %p8446_p4, %p8764_p7 }
  0xb1   : > { %p8449_p10 = pneg %p8448_p6 }
  0xb3   : > { %p8454_p13 = pnand %p8452_p11, %p8449_p10 }
  0xb5   : > { %8457 = shalt.err (!%p8454_p13)
}
  0xb6   : > { %s8458_s25 = scalar_lea.vmem %s8907_s7, 32  ;;  %p8466_p0 = scmp.lt.s32.totalorder %s8907_s7, %s8907_s7 }
  0xb7   : > { %p8459_p9 = scmp.ne.s32.totalorder %s8907_s7, %s8458_s25  ;;  %p8467_p2 = scmp.lt.s32.totalorder %s8458_s25, %s8458_s25 }
  0xb9   : > { %p8461_p3 = pnand %p8459_p9, %p8764_p7  ;;  %p8468_p8 = por %p8467_p2, %p8466_p0 }
  0xbb   : > { %p8462_p12 = pneg %p8461_p3 }
  0xbd   : > { %p8469_p4 = pnand %p8468_p8, %p8462_p12 }
  0xbf   : > { %8472 = shalt.err (!%p8469_p4)
}
  0xc0   : > { %8082 = dma.hbm_to_vmem [thread:$0]  (!%p9827_p5), %s9779_s2, 32, %s8907_s7, [#allocation6]  }
  0xc1   : > { %s8656_s1 = smov [#allocation10]   ;;  %s8657_s23 = smov [#allocation13]  }
  0xc2   : > { %s320_s18 = sshll.u32 %s8656_s1, 4  ;;  %s344_s13 = sshll.u32 %s8657_s23, 4  ;;  %s321_s18 = int_to_ptr.vmem [resolvable:$true] %s320_s18  ;;  %s8950_s13 = int_to_ptr.vmem [resolvable:$true] %s344_s13 }
  0xc3   : > { %s8473_s26 = scalar_lea.hbm %s9781_s4, 64 }
  0xc4   : > { %p8474_p6 = scmp.ne.s32.totalorder %s9781_s4, %s8473_s26  ;;  %p8480_p13 = scmp.lt.u32.totalorder %s8473_s26, %s9781_s4 }
  0xc6   : > { %p8476_p10 = pnand %p8474_p6, %p8764_p7 }
  0xc8   : > { %p8477_p11 = pneg %p8476_p10 }
  0xca   : > { %p8482_p9 = pnand %p8480_p13, %p8477_p11 }
  0xcc   : > { %8485 = shalt.err (!%p8482_p9)
}
  0xcd   : > { %s8486_s17 = scalar_lea.vmem %s321_s18, 64  ;;  %p8494_p2 = scmp.lt.s32.totalorder %s321_s18, %s321_s18 }
  0xce   : > { %p8487_p3 = scmp.ne.s32.totalorder %s321_s18, %s8486_s17  ;;  %p8495_p8 = scmp.lt.s32.totalorder %s8486_s17, %s8486_s17 }
  0xd0   : > { %p8489_p12 = pnand %p8487_p3, %p8764_p7  ;;  %p8496_p4 = por %p8495_p8, %p8494_p2 }
  0xd2   : > { %p8490_p0 = pneg %p8489_p12 }
  0xd4   : > { %p8497_p1 = pnand %p8496_p4, %p8490_p0 }
  0xd6   : > { %8500 = shalt.err (!%p8497_p1)
}
  0xd7   : > { %8088 = dma.hbm_to_vmem [thread:$0]  (!%p9827_p5), %s9781_s4, 64, %s321_s18, [#allocation9]  }
  0xd8   : > { %s8501_s23 = scalar_lea.hbm %s9783_s6, 128 }
  0xd9   : > { %p8502_p6 = scmp.ne.s32.totalorder %s9783_s6, %s8501_s23  ;;  %p8508_p1 = scmp.lt.u32.totalorder %s8501_s23, %s9783_s6 }
  0xdb   : > { %p8504_p10 = pnand %p8502_p6, %p8764_p7 }
  0xdd   : > { %p8505_p11 = pneg %p8504_p10 }
  0xdf   : > { %p8510_p13 = pnand %p8508_p1, %p8505_p11 }
  0xe1   : > { %8513 = shalt.err (!%p8510_p13)
}
  0xe2   : > { %s8514_s18 = scalar_lea.vmem %s8950_s13, 128  ;;  %p8522_p0 = scmp.lt.s32.totalorder %s8950_s13, %s8950_s13 }
  0xe3   : > { %p8515_p9 = scmp.ne.s32.totalorder %s8950_s13, %s8514_s18  ;;  %p8523_p2 = scmp.lt.s32.totalorder %s8514_s18, %s8514_s18 }
  0xe5   : > { %p8517_p3 = pnand %p8515_p9, %p8764_p7  ;;  %p8524_p8 = por %p8523_p2, %p8522_p0 }
  0xe7   : > { %p8518_p12 = pneg %p8517_p3 }
  0xe9   : > { %p8525_p4 = pnand %p8524_p8, %p8518_p12 }
  0xeb   : > { %8528 = shalt.err (!%p8525_p4)
}
  0xec   : > { %8094 = dma.hbm_to_vmem [thread:$0]  (!%p9827_p5), %s9783_s6, 128, %s8950_s13, [#allocation12]  }
  0xed   : > { %s9828_s7 = sand.u32 1, %s8637_s11   ;;  %s7957_s17 = sshll.u32 %s8641_s12, 7 }
  0xee   : > { %s7089_s27 = sshll.u32 %s9828_s7, 3  ;;  %s8999_s5 = scalar_lea.hbm %s9785_s8, %s7957_s17 }
  0xef   : > { %s380_s19 = scalar_lea.vmem [#allocation16], %s7089_s27  ;;  %s8529_s23 = scalar_lea.hbm %s8999_s5, 128 }
  0xf0   : > { %s388_s1 = sshll.u32 %s380_s19, 4  ;;  %p8530_p7 = scmp.ne.s32.totalorder %s8999_s5, %s8529_s23  ;;  %s389_s1 = int_to_ptr.vmem [resolvable:$true] %s388_s1 }
  0xf1   : > { %p9829_p6 = scmp.ne.s32.totalorder %s9824_s22, 0  ;;  %s8534_s3 = scalar_lea.hbm %s9785_s8, 1536 }
  0xf2   : > { %p8535_p1 = scmp.lt.u32.totalorder %s8999_s5, %s9785_s8  ;;  %p8536_p13 = scmp.lt.u32.totalorder %s8534_s3, %s8529_s23 }
  0xf3   : > { %p9830_p10 = pneg %p9829_p6  ;;  %p8538_p3 = scmp.lt.u32.totalorder %s8529_s23, %s8999_s5 }
  0xf4   : > { %p8537_p9 = por %p8536_p13, %p8535_p1 }
  0xf5   : > { %p8532_p5 = pnand %p8530_p7, %p9830_p10 }
  0xf6   : > { %p8539_p12 = por %p8538_p3, %p8537_p9 }
  0xf7   : > { %p8533_p11 = pneg %p8532_p5 }
  0xf9   : > { %p8540_p0 = pnand %p8539_p12, %p8533_p11 }
  0xfb   : > { %8543 = shalt.err (!%p8540_p0)
}
  0xfc   : > { %s8544_s18 = scalar_lea.vmem %s389_s1, 128  ;;  %p9831_p8 = pmov %p9830_p10 }
  0xfd   : > { %p8545_p2 = scmp.ne.s32.totalorder %s389_s1, %s8544_s18  ;;  %s8658_s24 = smov [#allocation16]  }
  0xfe   : > { %s8549_s29 = sshll.u32 %s8658_s24, 4  ;;  %s8550_s29 = int_to_ptr.vmem [resolvable:$false] %s8549_s29 }
  0xff   : > { %p8547_p4 = pnand %p8545_p2, %p9831_p8  ;;  %s8551_s7 = scalar_lea.vmem %s8550_s29, 256 }
 0x100   : > { %p8552_p10 = scmp.lt.s32.totalorder %s389_s1, %s8550_s29  ;;  %p8553_p5 = scmp.lt.s32.totalorder %s8551_s7, %s8544_s18 }
 0x101   : > { %p8548_p7 = pneg %p8547_p4 }
 0x102   : > { %p8554_p1 = por %p8553_p5, %p8552_p10 }
 0x104   : > { %p8555_p13 = pnand %p8554_p1, %p8548_p7 }
 0x106   : > { %8558 = shalt.err (!%p8555_p13)
}
 0x107   : > { %8101 = dma.hbm_to_vmem [thread:$0]  (!%p9829_p6), %s8999_s5, 128, %s389_s1, %s8877_s14  }
 0x108   : > { %p9832_p11 = scmp.ne.s32.totalorder %s9810_s16, 0 }
 0x109   : > { %p9833_p9 = scmp.eq.s32.totalorder (!%p9832_p11), %s8733_s15, 0 }
 0x10a   : > { %397 = sbr.rel (%p9832_p11) target bundleno = 1741 (0x6cd), region = 56 }
 0x111   : > { %8604 = dma.done.wait (%p9833_p9), [#allocation3], 32   ;;  %p9834_p3 = pmov %p9833_p9 }
 0x113   : > { %8606 = vsyncadd (%p9834_p3), [#allocation3], 4294967264  ;;  %p9835_p12 = pmov %p9834_p3 }
 0x114   : > { %p9836_p0 = pmov %p9834_p3 }
 0x115   : > { %8608 = dma.done.wait (%p9835_p12), [#allocation6], 1696  }
 0x116   : > { %8610 = vsyncadd (%p9836_p0), [#allocation6], 4294965600  ;;  %p9837_p2 = pmov %p9836_p0 }
 0x117   : > { %p9838_p6 = pmov %p9836_p0 }
 0x118   : > { %8612 = dma.done.wait (%p9837_p2), [#allocation9], 8256  }
 0x119   : > { %8614 = vsyncadd (%p9838_p6), [#allocation9], 4294959040  ;;  %p9839_p8 = pmov %p9836_p0 }
 0x11a   : > { %p9840_p4 = pmov %p9836_p0 }
 0x11b   : > { %8616 = dma.done.wait (%p9839_p8), [#allocation12], 32896  }
 0x11c   : > { %8618 = vsyncadd (%p9840_p4), [#allocation12], 4294934400  ;;  %s427_s16 = sand.u32 1, %s8733_s15   ;;  %s9041_s14 = sand.u32 1, %s8633_s10  }
 0x11d   : > { %s7100_s22 = sshll.u32 %s9041_s14, 12  ;;  %s428_s27 = scalar_lea.sflag [#allocation15], %s427_s16 }
 0x11e   : > { %s9044_s17 = scalar_lea.vmem [#allocation14], %s7100_s22  ;;  %p9841_p7 = scmp.ne.s32.totalorder %s9819_s21, 0 }
 0x120   : > { %8620 = dma.done.wait (%p9841_p7), %s428_s27, 65664  }
 0x121   : > { %8622 = vsyncadd (%p9841_p7), %s428_s27, 4294901632  ;;  %v8659_v0 = vmov 0   ;;  %v8170_v1 = vld [vmem:[#allocation5 + $0x4] ss:$8 sps:$4 sm:$0xff]   ;;  %v8172_v2 = vld [vmem:[#allocation5] ss:$8 sps:$4 sm:$0xff]  }
 0x122   : > { %619 = vmatprep.mubr.bf16.mxu0 %v8659_v0  ;;  %587 = vmatprep.subr.bf16.mxu0 %v8170_v1  ;;  %v8173_v3 = vld [vmem:[#allocation5 + $0x14] ss:$8 sps:$4 sm:$0xff]   ;;  %v8175_v4 = vld [vmem:[#allocation5 + $0x10] ss:$8 sps:$4 sm:$0xff]   ;;  %v8176_v5 = vld [vmem:[#allocation5 + $0x24] ss:$8 sps:$4 sm:$0xff]  }
 0x123   : > { %588 = vmatpush1.bf16.msra.mxu0 %v8172_v2  ;;  %v8178_v6 = vld [vmem:[#allocation5 + $0x20] ss:$8 sps:$4 sm:$0xff]   ;;  %v8179_v7 = vld [vmem:[#allocation5 + $0x34] ss:$8 sps:$4 sm:$0xff]   ;;  %v8181_v9 = vld [vmem:[#allocation5 + $0x30] ss:$8 sps:$4 sm:$0xff]  }
 0x124   : > { %589 = vmatprep.subr.bf16.mxu0 %v8173_v3  ;;  %v8190_v8 = vld [vmem:[#allocation8 + $0x4] ss:$16 sps:$4 sm:$0xff]   ;;  %v8195_v11 = vld [vmem:[#allocation8] ss:$16 sps:$4 sm:$0xff]   ;;  %vm580_vm0 = vcmask 1041408   ;;  %vm576_vm1 = vcmask 818176  }
 0x125   : > { %v8182_v10 = vld [vmem:[#allocation5 + $0x44] ss:$8 sps:$4 sm:$0xff]   ;;  %1042 = vmatprep.subr.bf16.mxu1 %v8190_v8  ;;  %v8184_v15 = vld [vmem:[#allocation5 + $0x40] ss:$8 sps:$4 sm:$0xff]   ;;  %v8185_v16 = vld [vmem:[#allocation5 + $0x54] ss:$8 sps:$4 sm:$0xff]  }
 0x126   : > { %v8196_v12 = vld [vmem:[#allocation8 + $0x24] ss:$16 sps:$4 sm:$0xff]   ;;  %1043 = vmatpush1.bf16.msra.mxu1 %v8195_v11  ;;  %v8201_v13 = vld [vmem:[#allocation8 + $0x20] ss:$16 sps:$4 sm:$0xff]   ;;  %v8194_v27 = vld [vmem:[#allocation8 + $0xc] ss:$16 sps:$4 sm:$0xff]  }
 0x127   : > { %590 = vmatpush1.bf16.msra.mxu0 %v8175_v4  ;;  %1044 = vmatprep.subr.bf16.mxu1 %v8196_v12  ;;  %v8202_v14 = vld [vmem:[#allocation8 + $0x44] ss:$16 sps:$4 sm:$0xff]   ;;  %v8207_v18 = vld [vmem:[#allocation8 + $0x40] ss:$16 sps:$4 sm:$0xff]   ;;  %v8192_v31 = vld [vmem:[#allocation8 + $0x8] ss:$16 sps:$4 sm:$0xff]  }
 0x128   : > { %591 = vmatprep.subr.bf16.mxu0 %v8176_v5  ;;  %v498_v17 = vld [vmem:[#allocation5 + $0x60] sm:$0x33]  ;;  %v8187_v20 = vld [vmem:[#allocation5 + $0x50] ss:$8 sps:$4 sm:$0xff]   ;;  %v484_v25 = vld [vmem:[#allocation2] sm:$0x3] }
 0x129   : > { %v8208_v19 = vld [vmem:[#allocation8 + $0x64] ss:$16 sps:$4 sm:$0xff]   ;;  %v7116_v21 = vcombine.high %v498_v17, %v498_v17  ;;  %v7115_v22 = vcombine.low %v498_v17, %v498_v17  ;;  %v8213_v23 = vld [vmem:[#allocation8 + $0x60] ss:$16 sps:$4 sm:$0xff]   ;;  %v485_v29 = vpack.c.bf16 %v484_v25, %v484_v25  ;;  %v8200_v32 = vld [vmem:[#allocation8 + $0x2c] ss:$16 sps:$4 sm:$0xff]  }
 0x12a   : > { %1045 = vmatpush1.bf16.msra.mxu1 %v8201_v13  ;;  %v8214_v24 = vld [vmem:[#allocation8 + $0x84] ss:$16 sps:$4 sm:$0xff]   ;;  %v8219_v28 = vld [vmem:[#allocation8 + $0x80] ss:$16 sps:$4 sm:$0xff]   ;;  %v8198_v35 = vld [vmem:[#allocation8 + $0x28] ss:$16 sps:$4 sm:$0xff]  }
 0x12b   : > { %592 = vmatpush1.bf16.msra.mxu0 %v8178_v6  ;;  %1046 = vmatprep.subr.bf16.mxu1 %v8202_v14  ;;  %v582_v26 = vsel %vm580_vm0, %v7115_v22, 0  ;;  %v8220_v30 = vld [vmem:[#allocation8 + $0xa4] ss:$16 sps:$4 sm:$0xff]   ;;  %v8225_v33 = vld [vmem:[#allocation8 + $0xa0] ss:$16 sps:$4 sm:$0xff]   ;;  %s7101_s21 = sshll.u32 %s9041_s14, 3 }
 0x12c   : > { %593 = vmatprep.subr.bf16.mxu0 %v8179_v7  ;;  %v8226_v34 = vld [vmem:[#allocation8 + $0xc4] ss:$16 sps:$4 sm:$0xff]   ;;  %v8206_v36 = vld [vmem:[#allocation8 + $0x4c] ss:$16 sps:$4 sm:$0xff]   ;;  %v8231_v37 = vld [vmem:[#allocation8 + $0xc0] ss:$16 sps:$4 sm:$0xff]  }
 0x12d   : > { %v8232_v38 = vld [vmem:[#allocation8 + $0xe4] ss:$16 sps:$4 sm:$0xff]   ;;  %v8204_v39 = vld [vmem:[#allocation8 + $0x48] ss:$16 sps:$4 sm:$0xff]   ;;  %v8212_v40 = vld [vmem:[#allocation8 + $0x6c] ss:$16 sps:$4 sm:$0xff]  }
 0x12e   : > { %1047 = vmatpush1.bf16.msra.mxu1 %v8207_v18  ;;  %v8237_v41 = vld [vmem:[#allocation8 + $0xe0] ss:$16 sps:$4 sm:$0xff]   ;;  %v8238_v42 = vld [vmem:[#allocation8 + $0x104] ss:$16 sps:$4 sm:$0xff]   ;;  %v8210_v43 = vld [vmem:[#allocation8 + $0x68] ss:$16 sps:$4 sm:$0xff]  }
 0x12f   : > { %594 = vmatpush1.bf16.msra.mxu0 %v8181_v9  ;;  %1048 = vmatprep.subr.bf16.mxu1 %v8208_v19  ;;  %v8218_v44 = vld [vmem:[#allocation8 + $0x8c] ss:$16 sps:$4 sm:$0xff]   ;;  %v8243_v45 = vld [vmem:[#allocation8 + $0x100] ss:$16 sps:$4 sm:$0xff]   ;;  %v8244_v46 = vld [vmem:[#allocation8 + $0x124] ss:$16 sps:$4 sm:$0xff]  }
 0x130   : > { %595 = vmatprep.subr.bf16.mxu0 %v8182_v10  ;;  %v8216_v47 = vld [vmem:[#allocation8 + $0x88] ss:$16 sps:$4 sm:$0xff]   ;;  %v8224_v48 = vld [vmem:[#allocation8 + $0xac] ss:$16 sps:$4 sm:$0xff]   ;;  %v8249_v50 = vld [vmem:[#allocation8 + $0x120] ss:$16 sps:$4 sm:$0xff]  }
 0x131   : > { %v8222_v49 = vld [vmem:[#allocation8 + $0xa8] ss:$16 sps:$4 sm:$0xff]   ;;  %v8230_v51 = vld [vmem:[#allocation8 + $0xcc] ss:$16 sps:$4 sm:$0xff]   ;;  %v8250_v52 = vld [vmem:[#allocation8 + $0x144] ss:$16 sps:$4 sm:$0xff]  }
 0x132   : > { %1049 = vmatpush1.bf16.msra.mxu1 %v8213_v23  ;;  %v8255_v53 = vld [vmem:[#allocation8 + $0x140] ss:$16 sps:$4 sm:$0xff]   ;;  %v8256_v54 = vld [vmem:[#allocation8 + $0x164] ss:$16 sps:$4 sm:$0xff]   ;;  %v8228_v55 = vld [vmem:[#allocation8 + $0xc8] ss:$16 sps:$4 sm:$0xff]  }
 0x133   : > { %596 = vmatpush1.bf16.msra.mxu0 %v8184_v15  ;;  %1050 = vmatprep.subr.bf16.mxu1 %v8214_v24  ;;  %v8236_v56 = vld [vmem:[#allocation8 + $0xec] ss:$16 sps:$4 sm:$0xff]   ;;  %v8261_v57 = vld [vmem:[#allocation8 + $0x160] ss:$16 sps:$4 sm:$0xff]   ;;  %v8262_v58 = vld [vmem:[#allocation8 + $0x184] ss:$16 sps:$4 sm:$0xff]  }
 0x134   : > { %597 = vmatprep.subr.bf16.mxu0 %v8185_v16  ;;  %v8234_v59 = vld [vmem:[#allocation8 + $0xe8] ss:$16 sps:$4 sm:$0xff]   ;;  %v8242_v60 = vld [vmem:[#allocation8 + $0x10c] ss:$16 sps:$4 sm:$0xff]   ;;  %v8267_v61 = vld [vmem:[#allocation8 + $0x180] ss:$16 sps:$4 sm:$0xff]  }
 0x135   : > { %v8268_v62 = vld [vmem:[#allocation8 + $0x1a4] ss:$16 sps:$4 sm:$0xff]   ;;  %v8240_v63 = vld [vmem:[#allocation8 + $0x108] ss:$16 sps:$4 sm:$0xff]   ;;  %v8248_v0 = vld [vmem:[#allocation8 + $0x12c] ss:$16 sps:$4 sm:$0xff]  }
 0x136   : > { %1051 = vmatpush1.bf16.msra.mxu1 %v8219_v28  ;;  %v8273_v1 = vld [vmem:[#allocation8 + $0x1a0] ss:$16 sps:$4 sm:$0xff]   ;;  %v8246_v2 = vld [vmem:[#allocation8 + $0x128] ss:$16 sps:$4 sm:$0xff]   ;;  %v8254_v3 = vld [vmem:[#allocation8 + $0x14c] ss:$16 sps:$4 sm:$0xff]  }
 0x137   : > { %598 = vmatpush1.bf16.msra.mxu0 %v8187_v20  ;;  %1052 = vmatprep.subr.bf16.mxu1 %v8220_v30  ;;  %v8252_v4 = vld [vmem:[#allocation8 + $0x148] ss:$16 sps:$4 sm:$0xff]   ;;  %v8260_v5 = vld [vmem:[#allocation8 + $0x16c] ss:$16 sps:$4 sm:$0xff]   ;;  %v8274_v11 = vld [vmem:[#allocation8 + $0x1c4] ss:$16 sps:$4 sm:$0xff]  }
 0x138   : > { %7117 = vmatprep.subr.msk.bf16.mxu0 %vm580_vm0, %v7116_v21  ;;  %v8258_v6 = vld [vmem:[#allocation8 + $0x168] ss:$16 sps:$4 sm:$0xff]   ;;  %v8266_v7 = vld [vmem:[#allocation8 + $0x18c] ss:$16 sps:$4 sm:$0xff]   ;;  %v8279_v14 = vld [vmem:[#allocation8 + $0x1c0] ss:$16 sps:$4 sm:$0xff]  }
 0x139   : > { %v8264_v8 = vld [vmem:[#allocation8 + $0x188] ss:$16 sps:$4 sm:$0xff]   ;;  %v8272_v9 = vld [vmem:[#allocation8 + $0x1ac] ss:$16 sps:$4 sm:$0xff]   ;;  %v8280_v15 = vld [vmem:[#allocation8 + $0x1e4] ss:$16 sps:$4 sm:$0xff]  }
 0x13a   : > { %1053 = vmatpush1.bf16.msra.mxu1 %v8225_v33  ;;  %v8270_v10 = vld [vmem:[#allocation8 + $0x1a8] ss:$16 sps:$4 sm:$0xff]   ;;  %v8278_v12 = vld [vmem:[#allocation8 + $0x1cc] ss:$16 sps:$4 sm:$0xff]   ;;  %v8285_v18 = vld [vmem:[#allocation8 + $0x1e0] ss:$16 sps:$4 sm:$0xff]  }
 0x13b   : > { %600 = vmatpush1.bf16.msra.mxu0 %v582_v26  ;;  %1054 = vmatprep.subr.bf16.mxu1 %v8226_v34  ;;  %v8276_v13 = vld [vmem:[#allocation8 + $0x1c8] ss:$16 sps:$4 sm:$0xff]   ;;  %v8284_v17 = vld [vmem:[#allocation8 + $0x1ec] ss:$16 sps:$4 sm:$0xff]   ;;  %s440_s25 = scalar_lea.vmem [#allocation16], %s7101_s21  ;;  %s7102_s20 = sshll.u32 %s9041_s14, 4 }
 0x13c   : > { %1083 = vmatprep.subr.bf16.mxu0 %v8194_v27  ;;  %v8282_v16 = vld [vmem:[#allocation8 + $0x1e8] ss:$16 sps:$4 sm:$0xff]   ;;  %v1141_v21 = vld [vmem:[#allocation11 + $0x8] sm:$0xff]  ;;  %v501_v27 = vlaneseq  ;;  %v499_v30 = vld [vmem:[#allocation7] sm:$0x3]  ;;  %s9697_s5 = scalar_lea.vmem [#allocation17], %s7102_s20 }
 0x13d   : > { %v1140_v19 = vld [vmem:[#allocation11] sm:$0xff]  ;;  %v1145_v24 = vld [vmem:[#allocation11 + $0x28] sm:$0xff]  ;;  %s7958_s19 = sshll.u32 %s8733_s15, 8  ;;  %s6917_s1 = sshll.u32 %s9697_s5, 4  ;;  %s9735_s1 = int_to_ptr.vmem [resolvable:$true] %s6917_s1 }
 0x13e   : > { %7118 = vmatmul.mubr.msk.bf16.vlgmr.msra.gmra.mrb[0].mxu0 %vm576_vm1, %v485_v29  ;;  %1055 = vmatpush1.bf16.msra.mxu1 %v8231_v37  ;;  %v1144_v20 = vld [vmem:[#allocation11 + $0x20] sm:$0xff]  ;;  %v7185_v25 = vcombine.low %v1141_v21, %v1145_v24  ;;  %v7186_v26 = vcombine.high %v1141_v21, %v1145_v24  ;;  %v9050_v28 = vshrl.u32 %v501_v27, 7  ;;  %s9842_s30 = sld [smem:[#allocation32_spill]]  ;;  %s6903_s9 = scalar_lea.sflag [#allocation4], %s9041_s14 }
 0x13f   : > { %1084 = vmatpush1.bf16.msra.mxu0 %v8192_v31  ;;  %1056 = vmatprep.subr.bf16.mxu1 %v8232_v38  ;;  %v7183_v22 = vcombine.low %v1140_v19, %v1144_v20  ;;  %v7184_v23 = vcombine.high %v1140_v19, %v1144_v20  ;;  %v1188_v20 = vld [vmem:[#allocation11 + $0x180] sm:$0xff]  ;;  %s8559_s18 = scalar_lea.vmem %s9735_s1, 256  ;;  %p9844_p5 = scmp.ne.s32.totalorder %s9820_s28, 0 }
 0x140   : > { %1085 = vmatprep.subr.bf16.mxu0 %v8200_v32  ;;  %v9053_v29 = vsub.s32 0, %v9050_v28  ;;  %v9056_v31 = vsub.s32 1, %v9050_v28  ;;  %v1192_v21 = vld [vmem:[#allocation11 + $0x1a0] sm:$0xff]  ;;  %p8560_p10 = scmp.ne.s32.totalorder %s9735_s1, %s8559_s18  ;;  %s8661_s15 = smov [#allocation17]  }
 0x141   : > { %s8563_s24 = sshll.u32 %s8661_s15, 4  ;;  %s8564_s24 = int_to_ptr.vmem [resolvable:$false] %s8563_s24 }
 0x142   : > { %1057 = vmatpush1.bf16.msra.mxu1 %v8237_v41  ;;  %v504_v32 = vrot.slane %v499_v30, %v9053_v29  ;;  %v508_v33 = vrot.slane %v499_v30, %v9056_v31  ;;  %v1196_v30 = vld [vmem:[#allocation11 + $0x1c0] sm:$0xff]  ;;  %p8561_p1 = pnand %p8560_p10, %p9844_p5  ;;  %s8565_s29 = scalar_lea.vmem %s8564_s24, 512 }
 0x143   : > { %1086 = vmatpush1.bf16.msra.mxu0 %v8198_v35  ;;  %1058 = vmatprep.subr.bf16.mxu1 %v8238_v42  ;;  %v1148_v42 = vld [vmem:[#allocation11 + $0x40] sm:$0xff]  ;;  %p8566_p11 = scmp.lt.s32.totalorder %s9735_s1, %s8564_s24  ;;  %p8567_p9 = scmp.lt.s32.totalorder %s8565_s29, %s8559_s18 }
 0x144   : > { %1087 = vmatprep.subr.bf16.mxu0 %v8206_v36  ;;  %s9843_s3 = smov %s9842_s30  ;;  %s9733_s26 = scalar_lea.hbm %s9842_s30, %s7958_s19 }
 0x145   : > { %p8562_p13 = pneg %p8561_p1  ;;  %p8568_p3 = por %p8567_p9, %p8566_p11 }
 0x146   : > { %1059 = vmatpush1.bf16.msra.mxu1 %v8243_v45  ;;  %v1149_v45 = vld [vmem:[#allocation11 + $0x48] sm:$0xff] }
 0x147   : > { %1088 = vmatpush1.bf16.msra.mxu0 %v8204_v39  ;;  %1060 = vmatprep.subr.bf16.mxu1 %v8244_v46  ;;  %v1153_v46 = vld [vmem:[#allocation11 + $0x68] sm:$0xff]  ;;  %p8569_p12 = pnand %p8568_p3, %p8562_p13 }
 0x148   : > { %1089 = vmatprep.subr.bf16.mxu0 %v8212_v40 }
 0x14a   : > { %1061 = vmatpush1.bf16.msra.mxu1 %v8249_v50 }
 0x14b   : > { %1090 = vmatpush1.bf16.msra.mxu0 %v8210_v43  ;;  %1062 = vmatprep.subr.bf16.mxu1 %v8250_v52  ;;  %v1156_v52 = vld [vmem:[#allocation11 + $0x80] sm:$0xff] }
 0x14c   : > { %1091 = vmatprep.subr.bf16.mxu0 %v8218_v44  ;;  %v1152_v44 = vld [vmem:[#allocation11 + $0x60] sm:$0xff] }
 0x14d   : > { %v7192_v50 = vcombine.high %v1148_v42, %v1152_v44 }
 0x14e   : > { %1063 = vmatpush1.bf16.msra.mxu1 %v8255_v53  ;;  %v1160_v53 = vld [vmem:[#allocation11 + $0xa0] sm:$0xff] }
 0x14f   : > { %1092 = vmatpush1.bf16.msra.mxu0 %v8216_v47  ;;  %1064 = vmatprep.subr.bf16.mxu1 %v8256_v54  ;;  %v1157_v54 = vld [vmem:[#allocation11 + $0x88] sm:$0xff] }
 0x150   : > { %1093 = vmatprep.subr.bf16.mxu0 %v8224_v48 }
 0x152   : > { %1065 = vmatpush1.bf16.msra.mxu1 %v8261_v57  ;;  %v7193_v57 = vcombine.low %v1149_v45, %v1153_v46 }
 0x153   : > { %1094 = vmatpush1.bf16.msra.mxu0 %v8222_v49  ;;  %1066 = vmatprep.subr.bf16.mxu1 %v8262_v58  ;;  %v7200_v58 = vcombine.high %v1156_v52, %v1160_v53 }
 0x154   : > { %1095 = vmatprep.subr.bf16.mxu0 %v8230_v51  ;;  %v7194_v51 = vcombine.high %v1149_v45, %v1153_v46 }
 0x156   : > { %1067 = vmatpush1.bf16.msra.mxu1 %v8267_v61  ;;  %v1168_v61 = vld [vmem:[#allocation11 + $0xe0] sm:$0xff] }
 0x157   : > { %1096 = vmatpush1.bf16.msra.mxu0 %v8228_v55  ;;  %1068 = vmatprep.subr.bf16.mxu1 %v8268_v62  ;;  %v1161_v55 = vld [vmem:[#allocation11 + $0xa8] sm:$0xff] }
 0x158   : > { %1097 = vmatprep.subr.bf16.mxu0 %v8236_v56  ;;  %v7191_v56 = vcombine.low %v1148_v42, %v1152_v44  ;;  %v1165_v62 = vld [vmem:[#allocation11 + $0xc8] sm:$0xff] }
 0x159   : > { %v1209_v42 = vld [vmem:[#allocation11 + $0x228] sm:$0xff] }
 0x15a   : > { %1069 = vmatpush1.bf16.msra.mxu1 %v8273_v1  ;;  %v7201_v1 = vcombine.low %v1157_v54, %v1161_v55 }
 0x15b   : > { %1098 = vmatpush1.bf16.msra.mxu0 %v8234_v59  ;;  %1070 = vmatprep.subr.bf16.mxu1 %v8274_v11  ;;  %v7202_v59 = vcombine.high %v1157_v54, %v1161_v55  ;;  %v1220_v55 = vld [vmem:[#allocation11 + $0x280] sm:$0xff] }
 0x15c   : > { %1099 = vmatprep.subr.bf16.mxu0 %v8242_v60  ;;  %v1164_v60 = vld [vmem:[#allocation11 + $0xc0] sm:$0xff] }
 0x15e   : > { %1071 = vmatpush1.bf16.msra.mxu1 %v8279_v14  ;;  %v1181_v14 = vld [vmem:[#allocation11 + $0x148] sm:$0xff] }
 0x15f   : > { %1100 = vmatpush1.bf16.msra.mxu0 %v8240_v63  ;;  %1072 = vmatprep.subr.bf16.mxu1 %v8280_v15  ;;  %v1169_v63 = vld [vmem:[#allocation11 + $0xe8] sm:$0xff] }
 0x160   : > { %1101 = vmatprep.subr.bf16.mxu0 %v8248_v0  ;;  %v7199_v0 = vcombine.low %v1156_v52, %v1160_v53  ;;  %v1185_v15 = vld [vmem:[#allocation11 + $0x168] sm:$0xff] }
 0x161   : > { %v7226_v19 = vcombine.high %v1181_v14, %v1185_v15 }
 0x162   : > { %1073 = vmatpush1.bf16.msra.mxu1 %v8285_v18 }
 0x163   : > { %1102 = vmatpush1.bf16.msra.mxu0 %v8246_v2  ;;  %2718 = vmatprep.subr.bf16.mxu1 %v7184_v23  ;;  %v7208_v2 = vcombine.high %v1164_v60, %v1168_v61  ;;  %v1193_v23 = vld [vmem:[#allocation11 + $0x1a8] sm:$0xff] }
 0x164   : > { %1103 = vmatprep.subr.bf16.mxu0 %v8254_v3  ;;  %v7210_v3 = vcombine.high %v1165_v62, %v1169_v63 }
 0x167   : > { %1104 = vmatpush1.bf16.msra.mxu0 %v8252_v4  ;;  %v1172_v4 = vld [vmem:[#allocation11 + $0x100] sm:$0xff] }
 0x168   : > { %1105 = vmatprep.subr.bf16.mxu0 %v8260_v5  ;;  %v1176_v5 = vld [vmem:[#allocation11 + $0x120] sm:$0xff] }
 0x16b   : > { %1106 = vmatpush1.bf16.msra.mxu0 %v8258_v6  ;;  %v1173_v6 = vld [vmem:[#allocation11 + $0x108] sm:$0xff] }
 0x16c   : > { %1107 = vmatprep.subr.bf16.mxu0 %v8266_v7  ;;  %v1177_v7 = vld [vmem:[#allocation11 + $0x128] sm:$0xff] }
 0x16d   : > { %v7218_v11 = vcombine.high %v1173_v6, %v1177_v7 }
 0x16f   : > { %1108 = vmatpush1.bf16.msra.mxu0 %v8264_v8  ;;  %v7207_v8 = vcombine.low %v1164_v60, %v1168_v61 }
 0x170   : > { %1109 = vmatprep.subr.bf16.mxu0 %v8272_v9  ;;  %v7209_v9 = vcombine.low %v1165_v62, %v1169_v63  ;;  %v1228_v63 = vld [vmem:[#allocation11 + $0x2c0] sm:$0xff] }
 0x173   : > { %1110 = vmatpush1.bf16.msra.mxu0 %v8270_v10  ;;  %v7216_v10 = vcombine.high %v1172_v4, %v1176_v5 }
 0x174   : > { %1111 = vmatprep.subr.bf16.mxu0 %v8278_v12  ;;  %v1180_v12 = vld [vmem:[#allocation11 + $0x140] sm:$0xff] }
 0x177   : > { %1112 = vmatpush1.bf16.msra.mxu0 %v8276_v13  ;;  %v1184_v13 = vld [vmem:[#allocation11 + $0x160] sm:$0xff] }
 0x178   : > { %1113 = vmatprep.subr.bf16.mxu0 %v8284_v17  ;;  %v7217_v17 = vcombine.low %v1173_v6, %v1177_v7  ;;  %v7224_v18 = vcombine.high %v1180_v12, %v1184_v13  ;;  %v7223_v24 = vcombine.low %v1180_v12, %v1184_v13  ;;  %v1236_v7 = vld [vmem:[#allocation11 + $0x300] sm:$0xff] }
 0x17b   : > { %1114 = vmatpush1.bf16.msra.mxu0 %v8282_v16  ;;  %v7215_v16 = vcombine.low %v1172_v4, %v1176_v5 }
 0x17c   : > { %2800 = vmatprep.subr.bf16.mxu0 %v7186_v26  ;;  %v7232_v26 = vcombine.high %v1188_v20, %v1192_v21 }
 0x211   : > { %v621_v34 = vpop.f32.mrb[0].mxu0 }
 0x212   : > { %v622_v35 = vadd.f32 %v621_v34, %v504_v32  ;;  %v623_v36 = vpop.f32.mrb[1].mxu0  ;;  %v1200_v32 = vld [vmem:[#allocation11 + $0x1e0] sm:$0xff]  ;;  %v1201_v34 = vld [vmem:[#allocation11 + $0x1e8] sm:$0xff] }
 0x213   : > { %v624_v37 = vadd.f32 %v623_v36, %v508_v33  ;;  %v625_v38 = vpop.f32.mrb[2].mxu0  ;;  %v1197_v33 = vld [vmem:[#allocation11 + $0x1c8] sm:$0xff] }
 0x214   : > { %vm628_vm2 = vcmp.gt.f32.partialorder %v622_v35, 0.0  ;;  %v630_v39 = vmul.f32 0.01, %v622_v35  ;;  %v626_v40 = vpop.f32.mrb[3].mxu0  ;;  %v7242_v38 = vcombine.high %v1197_v33, %v1201_v34  ;;  %v7241_v44 = vcombine.low %v1197_v33, %v1201_v34 }
 0x215   : > { %v631_v41 = vmul.f32 0.01, %v624_v37  ;;  %vm629_vm3 = vcmp.gt.f32.partialorder %v624_v37, 0.0  ;;  %v1208_v40 = vld [vmem:[#allocation11 + $0x220] sm:$0xff] }
 0x216   : > { %v632_v43 = vsel %vm628_vm2, %v622_v35, %v630_v39  ;;  %v7231_v35 = vcombine.low %v1188_v20, %v1192_v21  ;;  %v1204_v39 = vld [vmem:[#allocation11 + $0x200] sm:$0xff] }
 0x217   : > { %v633_v47 = vsel %vm629_vm3, %v624_v37, %v631_v41  ;;  %v634_v49 = vpack.c.bf16 %v632_v43, %v632_v43  ;;  %v7240_v37 = vcombine.high %v1196_v30, %v1200_v32  ;;  %v1205_v41 = vld [vmem:[#allocation11 + $0x208] sm:$0xff]  ;;  %v7239_v43 = vcombine.low %v1196_v30, %v1200_v32 }
 0x218   : > { %v635_v48 = vpack.c.bf16 %v633_v47, %v633_v47  ;;  %v7248_v45 = vcombine.high %v1204_v39, %v1208_v40  ;;  %v7250_v46 = vcombine.high %v1205_v41, %v1209_v42  ;;  %v1212_v47 = vld [vmem:[#allocation11 + $0x240] sm:$0xff]  ;;  %v7249_v52 = vcombine.low %v1205_v41, %v1209_v42  ;;  %v1257_v32 = vld [vmem:[#allocation11 + $0x3a8] sm:$0xff] }
 0x21a   : > { %1074 = vmatprep.mubr.bf16.mxu1 %v635_v48  ;;  %1115 = vmatprep.mubr.bf16.mxu0 %v635_v48  ;;  %v1216_v48 = vld [vmem:[#allocation11 + $0x260] sm:$0xff] }
 0x21b   : > { %1075 = vmatmul.mubr.bf16.vlgmr.msra.gmra.mrb[0].mxu1 %v634_v49  ;;  %1116 = vmatmul.mubr.bf16.vlgmr.msra.gmra.mrb[4].mxu0 %v634_v49  ;;  %v1213_v49 = vld [vmem:[#allocation11 + $0x248] sm:$0xff]  ;;  %v7256_v53 = vcombine.high %v1212_v47, %v1216_v48 }
 0x21c   : > { %2719 = vmatpush1.bf16.msra.mxu1 %v7183_v22  ;;  %2801 = vmatpush1.bf16.msra.mxu0 %v7185_v25  ;;  %v1189_v22 = vld [vmem:[#allocation11 + $0x188] sm:$0xff]  ;;  %v7225_v25 = vcombine.low %v1181_v14, %v1185_v15  ;;  %v1244_v15 = vld [vmem:[#allocation11 + $0x340] sm:$0xff] }
 0x21d   : > { %2720 = vmatprep.subr.bf16.mxu1 %v7192_v50  ;;  %2802 = vmatprep.subr.bf16.mxu0 %v7194_v51  ;;  %v7234_v27 = vcombine.high %v1189_v22, %v1193_v23  ;;  %v7233_v36 = vcombine.low %v1189_v22, %v1193_v23  ;;  %v1217_v50 = vld [vmem:[#allocation11 + $0x268] sm:$0xff]  ;;  %v7247_v51 = vcombine.low %v1204_v39, %v1208_v40 }
 0x21e   : > { %v7258_v54 = vcombine.high %v1213_v49, %v1217_v50  ;;  %v7257_v60 = vcombine.low %v1213_v49, %v1217_v50  ;;  %v1265_v40 = vld [vmem:[#allocation11 + $0x3e8] sm:$0xff] }
 0x21f   : > { %v1273_v49 = vld [vmem:[#allocation11 + $0x428] sm:$0xff] }
 0x220   : > { %2721 = vmatpush1.bf16.msra.mxu1 %v7191_v56  ;;  %2803 = vmatpush1.bf16.msra.mxu0 %v7193_v57  ;;  %v1224_v56 = vld [vmem:[#allocation11 + $0x2a0] sm:$0xff]  ;;  %v1221_v57 = vld [vmem:[#allocation11 + $0x288] sm:$0xff] }
 0x221   : > { %2722 = vmatprep.subr.bf16.mxu1 %v7200_v58  ;;  %2804 = vmatprep.subr.bf16.mxu0 %v7202_v59  ;;  %v1225_v58 = vld [vmem:[#allocation11 + $0x2a8] sm:$0xff]  ;;  %v7255_v59 = vcombine.low %v1212_v47, %v1216_v48  ;;  %v7264_v61 = vcombine.high %v1220_v55, %v1224_v56 }
 0x222   : > { %v7266_v62 = vcombine.high %v1221_v57, %v1225_v58  ;;  %v7265_v4 = vcombine.low %v1221_v57, %v1225_v58 }
 0x224   : > { %2723 = vmatpush1.bf16.msra.mxu1 %v7199_v0  ;;  %2805 = vmatpush1.bf16.msra.mxu0 %v7201_v1  ;;  %v1232_v0 = vld [vmem:[#allocation11 + $0x2e0] sm:$0xff]  ;;  %v1229_v1 = vld [vmem:[#allocation11 + $0x2c8] sm:$0xff] }
 0x225   : > { %2724 = vmatprep.subr.bf16.mxu1 %v7208_v2  ;;  %2806 = vmatprep.subr.bf16.mxu0 %v7210_v3  ;;  %v1233_v2 = vld [vmem:[#allocation11 + $0x2e8] sm:$0xff]  ;;  %v7263_v3 = vcombine.low %v1220_v55, %v1224_v56  ;;  %v7272_v5 = vcombine.high %v1228_v63, %v1232_v0 }
 0x226   : > { %v7274_v6 = vcombine.high %v1229_v1, %v1233_v2  ;;  %v7273_v12 = vcombine.low %v1229_v1, %v1233_v2 }
 0x228   : > { %2725 = vmatpush1.bf16.msra.mxu1 %v7207_v8  ;;  %2807 = vmatpush1.bf16.msra.mxu0 %v7209_v9  ;;  %v1240_v8 = vld [vmem:[#allocation11 + $0x320] sm:$0xff]  ;;  %v1237_v9 = vld [vmem:[#allocation11 + $0x308] sm:$0xff] }
 0x229   : > { %2726 = vmatprep.subr.bf16.mxu1 %v7216_v10  ;;  %2808 = vmatprep.subr.bf16.mxu0 %v7218_v11  ;;  %v1241_v10 = vld [vmem:[#allocation11 + $0x328] sm:$0xff]  ;;  %v7271_v11 = vcombine.low %v1228_v63, %v1232_v0  ;;  %v7280_v13 = vcombine.high %v1236_v7, %v1240_v8 }
 0x22a   : > { %v7282_v14 = vcombine.high %v1237_v9, %v1241_v10  ;;  %v7281_v20 = vcombine.low %v1237_v9, %v1241_v10  ;;  %v1280_v10 = vld [vmem:[#allocation11 + $0x460] sm:$0xff] }
 0x22c   : > { %2727 = vmatpush1.bf16.msra.mxu1 %v7215_v16  ;;  %2809 = vmatpush1.bf16.msra.mxu0 %v7217_v17  ;;  %v1248_v16 = vld [vmem:[#allocation11 + $0x360] sm:$0xff]  ;;  %v1245_v17 = vld [vmem:[#allocation11 + $0x348] sm:$0xff] }
 0x22d   : > { %2728 = vmatprep.subr.bf16.mxu1 %v7224_v18  ;;  %2810 = vmatprep.subr.bf16.mxu0 %v7226_v19  ;;  %v1249_v18 = vld [vmem:[#allocation11 + $0x368] sm:$0xff]  ;;  %v7279_v19 = vcombine.low %v1236_v7, %v1240_v8  ;;  %v7288_v21 = vcombine.high %v1244_v15, %v1248_v16  ;;  %v7287_v23 = vcombine.low %v1244_v15, %v1248_v16  ;;  %v1276_v8 = vld [vmem:[#allocation11 + $0x440] sm:$0xff] }
 0x22e   : > { %v7290_v22 = vcombine.high %v1245_v17, %v1249_v18  ;;  %v1284_v16 = vld [vmem:[#allocation11 + $0x480] sm:$0xff] }
 0x230   : > { %2729 = vmatpush1.bf16.msra.mxu1 %v7223_v24  ;;  %2811 = vmatpush1.bf16.msra.mxu0 %v7225_v25  ;;  %v7289_v24 = vcombine.low %v1245_v17, %v1249_v18  ;;  %v1252_v25 = vld [vmem:[#allocation11 + $0x380] sm:$0xff]  ;;  %v7320_v17 = vcombine.high %v1276_v8, %v1280_v10 }
 0x231   : > { %2730 = vmatprep.subr.bf16.mxu1 %v7232_v26  ;;  %2812 = vmatprep.subr.bf16.mxu0 %v7234_v27  ;;  %v1256_v26 = vld [vmem:[#allocation11 + $0x3a0] sm:$0xff]  ;;  %v1253_v27 = vld [vmem:[#allocation11 + $0x388] sm:$0xff] }
 0x232   : > { %v7296_v30 = vcombine.high %v1252_v25, %v1256_v26  ;;  %v7295_v33 = vcombine.low %v1252_v25, %v1256_v26  ;;  %v7297_v34 = vcombine.low %v1253_v27, %v1257_v32 }
 0x234   : > { %2731 = vmatpush1.bf16.msra.mxu1 %v7231_v35  ;;  %2813 = vmatpush1.bf16.msra.mxu0 %v7233_v36  ;;  %v7298_v35 = vcombine.high %v1253_v27, %v1257_v32  ;;  %v1260_v36 = vld [vmem:[#allocation11 + $0x3c0] sm:$0xff]  ;;  %v1293_v32 = vld [vmem:[#allocation11 + $0x4c8] sm:$0xff] }
 0x235   : > { %2732 = vmatprep.subr.bf16.mxu1 %v7240_v37  ;;  %2814 = vmatprep.subr.bf16.mxu0 %v7242_v38  ;;  %v1264_v37 = vld [vmem:[#allocation11 + $0x3e0] sm:$0xff]  ;;  %v1261_v38 = vld [vmem:[#allocation11 + $0x3c8] sm:$0xff] }
 0x236   : > { %v7304_v39 = vcombine.high %v1260_v36, %v1264_v37  ;;  %v7303_v41 = vcombine.low %v1260_v36, %v1264_v37  ;;  %v7305_v42 = vcombine.low %v1261_v38, %v1265_v40  ;;  %v1292_v27 = vld [vmem:[#allocation11 + $0x4c0] sm:$0xff] }
 0x238   : > { %2733 = vmatpush1.bf16.msra.mxu1 %v7239_v43  ;;  %2815 = vmatpush1.bf16.msra.mxu0 %v7241_v44  ;;  %v7306_v43 = vcombine.high %v1261_v38, %v1265_v40  ;;  %v1268_v44 = vld [vmem:[#allocation11 + $0x400] sm:$0xff]  ;;  %v1301_v40 = vld [vmem:[#allocation11 + $0x508] sm:$0xff] }
 0x239   : > { %2734 = vmatprep.subr.bf16.mxu1 %v7248_v45  ;;  %2816 = vmatprep.subr.bf16.mxu0 %v7250_v46  ;;  %v1272_v45 = vld [vmem:[#allocation11 + $0x420] sm:$0xff]  ;;  %v1269_v46 = vld [vmem:[#allocation11 + $0x408] sm:$0xff] }
 0x23a   : > { %v7311_v47 = vcombine.low %v1268_v44, %v1272_v45  ;;  %v7312_v48 = vcombine.high %v1268_v44, %v1272_v45  ;;  %v7313_v50 = vcombine.low %v1269_v46, %v1273_v49  ;;  %v1300_v38 = vld [vmem:[#allocation11 + $0x500] sm:$0xff] }
 0x23c   : > { %2735 = vmatpush1.bf16.msra.mxu1 %v7247_v51  ;;  %2817 = vmatpush1.bf16.msra.mxu0 %v7249_v52  ;;  %v7314_v51 = vcombine.high %v1269_v46, %v1273_v49  ;;  %v9060_v52 = vld [vmem:[#allocation10] sm:$0xf]  ;;  %v1308_v46 = vld [vmem:[#allocation11 + $0x540] sm:$0xff]  ;;  %v1313_v49 = vld [vmem:[#allocation11 + $0x568] sm:$0xff] }
 0x23d   : > { %2736 = vmatprep.subr.bf16.mxu1 %v7256_v53  ;;  %2818 = vmatprep.subr.bf16.mxu0 %v7258_v54  ;;  %v9063_v53 = vsub.s32 3, %v9050_v28  ;;  %v705_v54 = vrot.slane %v9060_v52, %v9053_v29  ;;  %v709_v55 = vrot.slane %v9060_v52, %v9056_v31 }
 0x23f   : > { %v717_v56 = vrot.slane %v9060_v52, %v9063_v53 }
 0x240   : > { %2737 = vmatpush1.bf16.msra.mxu1 %v7255_v59  ;;  %2819 = vmatpush1.bf16.msra.mxu0 %v7257_v60 }
 0x241   : > { %2738 = vmatprep.subr.bf16.mxu1 %v7264_v61  ;;  %2820 = vmatprep.subr.bf16.mxu0 %v7266_v62 }
 0x244   : > { %2739 = vmatpush1.bf16.msra.mxu1 %v7263_v3  ;;  %2821 = vmatpush1.bf16.msra.mxu0 %v7265_v4 }
 0x245   : > { %2740 = vmatprep.subr.bf16.mxu1 %v7272_v5  ;;  %2822 = vmatprep.subr.bf16.mxu0 %v7274_v6 }
 0x248   : > { %2741 = vmatpush1.bf16.msra.mxu1 %v7271_v11  ;;  %2823 = vmatpush1.bf16.msra.mxu0 %v7273_v12  ;;  %v1277_v11 = vld [vmem:[#allocation11 + $0x448] sm:$0xff] }
 0x249   : > { %2742 = vmatprep.subr.bf16.mxu1 %v7280_v13  ;;  %2824 = vmatprep.subr.bf16.mxu0 %v7282_v14  ;;  %v1281_v12 = vld [vmem:[#allocation11 + $0x468] sm:$0xff] }
 0x24a   : > { %v7322_v18 = vcombine.high %v1277_v11, %v1281_v12 }
 0x24c   : > { %2743 = vmatpush1.bf16.msra.mxu1 %v7279_v19  ;;  %2825 = vmatpush1.bf16.msra.mxu0 %v7281_v20  ;;  %v1288_v19 = vld [vmem:[#allocation11 + $0x4a0] sm:$0xff]  ;;  %v1285_v20 = vld [vmem:[#allocation11 + $0x488] sm:$0xff] }
 0x24d   : > { %2744 = vmatprep.subr.bf16.mxu1 %v7288_v21  ;;  %2826 = vmatprep.subr.bf16.mxu0 %v7290_v22  ;;  %v1289_v21 = vld [vmem:[#allocation11 + $0x4a8] sm:$0xff]  ;;  %v7328_v25 = vcombine.high %v1284_v16, %v1288_v19 }
 0x24e   : > { %v7330_v26 = vcombine.high %v1285_v20, %v1289_v21 }
 0x250   : > { %2745 = vmatpush1.bf16.msra.mxu1 %v7287_v23  ;;  %2827 = vmatpush1.bf16.msra.mxu0 %v7289_v24  ;;  %v7319_v23 = vcombine.low %v1276_v8, %v1280_v10  ;;  %v7321_v24 = vcombine.low %v1277_v11, %v1281_v12  ;;  %v1336_v10 = vld [vmem:[#allocation11 + $0x620] sm:$0xff]  ;;  %v1333_v11 = vld [vmem:[#allocation11 + $0x608] sm:$0xff] }
 0x251   : > { %2746 = vmatprep.subr.bf16.mxu1 %v7296_v30  ;;  %2828 = vmatprep.subr.bf16.mxu0 %v7298_v35  ;;  %v1296_v30 = vld [vmem:[#allocation11 + $0x4e0] sm:$0xff]  ;;  %v7329_v35 = vcombine.low %v1285_v20, %v1289_v21  ;;  %v1337_v12 = vld [vmem:[#allocation11 + $0x628] sm:$0xff] }
 0x252   : > { %v7336_v36 = vcombine.high %v1292_v27, %v1296_v30  ;;  %v1344_v20 = vld [vmem:[#allocation11 + $0x660] sm:$0xff]  ;;  %v1341_v21 = vld [vmem:[#allocation11 + $0x648] sm:$0xff] }
 0x254   : > { %2747 = vmatpush1.bf16.msra.mxu1 %v7295_v33  ;;  %2829 = vmatpush1.bf16.msra.mxu0 %v7297_v34  ;;  %v1297_v33 = vld [vmem:[#allocation11 + $0x4e8] sm:$0xff]  ;;  %v7327_v34 = vcombine.low %v1284_v16, %v1288_v19  ;;  %v1340_v19 = vld [vmem:[#allocation11 + $0x640] sm:$0xff] }
 0x255   : > { %2748 = vmatprep.subr.bf16.mxu1 %v7304_v39  ;;  %2830 = vmatprep.subr.bf16.mxu0 %v7306_v43  ;;  %v7338_v37 = vcombine.high %v1293_v32, %v1297_v33  ;;  %v1304_v39 = vld [vmem:[#allocation11 + $0x520] sm:$0xff]  ;;  %v7337_v43 = vcombine.low %v1293_v32, %v1297_v33  ;;  %v1349_v33 = vld [vmem:[#allocation11 + $0x688] sm:$0xff] }
 0x256   : > { %v7344_v44 = vcombine.high %v1300_v38, %v1304_v39  ;;  %v1352_v32 = vld [vmem:[#allocation11 + $0x6a0] sm:$0xff] }
 0x258   : > { %2749 = vmatpush1.bf16.msra.mxu1 %v7303_v41  ;;  %2831 = vmatpush1.bf16.msra.mxu0 %v7305_v42  ;;  %v1305_v41 = vld [vmem:[#allocation11 + $0x528] sm:$0xff]  ;;  %v7335_v42 = vcombine.low %v1292_v27, %v1296_v30  ;;  %v1348_v30 = vld [vmem:[#allocation11 + $0x680] sm:$0xff] }
 0x259   : > { %2759 = vmatprep.subr.bf16.mxu1 %v7312_v48  ;;  %2841 = vmatprep.subr.bf16.mxu0 %v7314_v51  ;;  %v7346_v45 = vcombine.high %v1301_v40, %v1305_v41  ;;  %v1309_v48 = vld [vmem:[#allocation11 + $0x548] sm:$0xff]  ;;  %v7345_v51 = vcombine.low %v1301_v40, %v1305_v41  ;;  %v1360_v40 = vld [vmem:[#allocation11 + $0x6e0] sm:$0xff] }
 0x25a   : > { %v1357_v41 = vld [vmem:[#allocation11 + $0x6c8] sm:$0xff] }
 0x2ee   : > { %v1076_v57 = vpop.f32.mrb[0].mxu1  ;;  %v9071_v58 = vpop.f32.mrb[4].mxu0 }
 0x2ef   : > { %v1077_v59 = vadd.f32 %v1076_v57, %v705_v54  ;;  %v1078_v60 = vpop.f32.mrb[1].mxu1  ;;  %v1119_v61 = vpop.f32.mrb[5].mxu0  ;;  %v1320_v57 = vld [vmem:[#allocation11 + $0x5a0] sm:$0xff] }
 0x2f0   : > { %v1079_v62 = vadd.f32 %v1078_v60, %v709_v55  ;;  %v1120_v63 = vadd.f32 %v1119_v61, %v717_v56  ;;  %v1080_v0 = vpop.f32.mrb[2].mxu1  ;;  %v1121_v1 = vpop.f32.mrb[6].mxu0  ;;  %v7354_v55 = vcombine.high %v1309_v48, %v1313_v49  ;;  %v1316_v56 = vld [vmem:[#allocation11 + $0x580] sm:$0xff]  ;;  %v1321_v60 = vld [vmem:[#allocation11 + $0x5a8] sm:$0xff] }
 0x2f1   : > { %vm1124_vm4 = vcmp.gt.f32.partialorder %v1077_v59, 0.0  ;;  %v1128_v2 = vmul.f32 0.01, %v1077_v59  ;;  %v1081_v6 = vpop.f32.mrb[3].mxu1  ;;  %v1122_v7 = vpop.f32.mrb[7].mxu0  ;;  %v1324_v1 = vld [vmem:[#allocation11 + $0x5c0] sm:$0xff] }
 0x2f2   : > { %vm1125_vm5 = vcmp.gt.f32.partialorder %v1079_v62, 0.0  ;;  %v1129_v3 = vmul.f32 0.01, %v1079_v62  ;;  %vm1127_vm6 = vcmp.gt.f32.partialorder %v1120_v63, 0.0  ;;  %v1131_v4 = vmul.f32 0.01, %v1120_v63 }
 0x2f3   : > { %v1132_v5 = vsel %vm1124_vm4, %v1077_v59, %v1128_v2  ;;  %v1317_v59 = vld [vmem:[#allocation11 + $0x588] sm:$0xff]  ;;  %v1328_v2 = vld [vmem:[#allocation11 + $0x5e0] sm:$0xff] }
 0x2f4   : > { %v1133_v9 = vsel %vm1125_vm5, %v1079_v62, %v1129_v3  ;;  %v1135_v14 = vsel %vm1127_vm6, %v1120_v63, %v1131_v4  ;;  %v9075_v15 = vpack.c.bf16 %v1132_v5, %v1132_v5  ;;  %v7353_v62 = vcombine.low %v1309_v48, %v1313_v49  ;;  %v1325_v3 = vld [vmem:[#allocation11 + $0x5c8] sm:$0xff]  ;;  %v1368_v48 = vld [vmem:[#allocation11 + $0x720] sm:$0xff] }
 0x2f5   : > { %v9073_v13 = vpack.c.bf16 %v1133_v9, %v1133_v9  ;;  %v9079_v22 = vpack.c.bf16 %v1135_v14, %v1135_v14  ;;  %v7360_v63 = vcombine.high %v1316_v56, %v1320_v57  ;;  %v7362_v0 = vcombine.high %v1317_v59, %v1321_v60  ;;  %v1329_v4 = vld [vmem:[#allocation11 + $0x5e8] sm:$0xff]  ;;  %v1332_v9 = vld [vmem:[#allocation11 + $0x600] sm:$0xff] }
 0x2f6   : > { %v7359_v5 = vcombine.low %v1316_v56, %v1320_v57  ;;  %v7361_v6 = vcombine.low %v1317_v59, %v1321_v60  ;;  %v7368_v7 = vcombine.high %v1324_v1, %v1328_v2  ;;  %v7370_v8 = vcombine.high %v1325_v3, %v1329_v4  ;;  %v1365_v49 = vld [vmem:[#allocation11 + $0x708] sm:$0xff]  ;;  %v1372_v57 = vld [vmem:[#allocation11 + $0x740] sm:$0xff] }
 0x2f7   : > { %2750 = vmatprep.mubr.bf16.mxu1 %v9073_v13  ;;  %2832 = vmatprep.mubr.bf16.mxu0 %v9073_v13  ;;  %v7367_v14 = vcombine.low %v1324_v1, %v1328_v2  ;;  %v7369_v16 = vcombine.low %v1325_v3, %v1329_v4  ;;  %v9086_v59 = vsub.s32 2, %v9050_v28  ;;  %v1376_v60 = vld [vmem:[#allocation11 + $0x760] sm:$0xff] }
 0x2f8   : > { %2751 = vmatmul.mubr.bf16.vlgmr.msra.gmra.mrb[4].mxu1 %v9075_v15  ;;  %2833 = vmatmul.mubr.bf16.vlgmr.msra.gmra.mrb[8].mxu0 %v9075_v15  ;;  %v7416_v1 = vcombine.high %v1372_v57, %v1376_v60  ;;  %v1380_v3 = vld [vmem:[#allocation11 + $0x780] sm:$0xff] }
 0x2f9   : > { %2760 = vmatpush1.bf16.msra.mxu1 %v7311_v47  ;;  %2842 = vmatpush1.bf16.msra.mxu0 %v7313_v50  ;;  %v1312_v47 = vld [vmem:[#allocation11 + $0x560] sm:$0xff]  ;;  %v7343_v50 = vcombine.low %v1300_v38, %v1304_v39  ;;  %v713_v4 = vrot.slane %v9060_v52, %v9086_v59 }
 0x2fa   : > { %2791 = vmatprep.mubr.bf16.mxu1 %v9079_v22  ;;  %2873 = vmatprep.mubr.bf16.mxu0 %v9079_v22  ;;  %v7352_v54 = vcombine.high %v1308_v46, %v1312_v47  ;;  %v7351_v61 = vcombine.low %v1308_v46, %v1312_v47  ;;  %v1356_v39 = vld [vmem:[#allocation11 + $0x6c0] sm:$0xff] }
 0x2fb   : > { %2761 = vmatprep.subr.bf16.mxu1 %v7320_v17  ;;  %2843 = vmatprep.subr.bf16.mxu0 %v7322_v18  ;;  %v7376_v17 = vcombine.high %v1332_v9, %v1336_v10  ;;  %v7378_v18 = vcombine.high %v1333_v11, %v1337_v12  ;;  %v1364_v47 = vld [vmem:[#allocation11 + $0x700] sm:$0xff] }
 0x2fd   : > { %2762 = vmatpush1.bf16.msra.mxu1 %v7319_v23  ;;  %2844 = vmatpush1.bf16.msra.mxu0 %v7321_v24  ;;  %v1345_v23 = vld [vmem:[#allocation11 + $0x668] sm:$0xff]  ;;  %v7375_v24 = vcombine.low %v1332_v9, %v1336_v10 }
 0x2fe   : > { %2763 = vmatprep.subr.bf16.mxu1 %v7328_v25  ;;  %2845 = vmatprep.subr.bf16.mxu0 %v7330_v26  ;;  %v7377_v25 = vcombine.low %v1333_v11, %v1337_v12  ;;  %v7384_v26 = vcombine.high %v1340_v19, %v1344_v20  ;;  %v7386_v27 = vcombine.high %v1341_v21, %v1345_v23  ;;  %v1388_v12 = vld [vmem:[#allocation11 + $0x7c0] sm:$0xff] }
 0x301   : > { %2764 = vmatpush1.bf16.msra.mxu1 %v7327_v34  ;;  %2846 = vmatpush1.bf16.msra.mxu0 %v7329_v35  ;;  %v1353_v34 = vld [vmem:[#allocation11 + $0x6a8] sm:$0xff]  ;;  %v7383_v35 = vcombine.low %v1340_v19, %v1344_v20 }
 0x302   : > { %2765 = vmatprep.subr.bf16.mxu1 %v7336_v36  ;;  %2847 = vmatprep.subr.bf16.mxu0 %v7338_v37  ;;  %v7385_v36 = vcombine.low %v1341_v21, %v1345_v23  ;;  %v7392_v37 = vcombine.high %v1348_v30, %v1352_v32  ;;  %v7394_v38 = vcombine.high %v1349_v33, %v1353_v34  ;;  %v1142_v23 = vld [vmem:[#allocation11 + $0x10] sm:$0xff] }
 0x305   : > { %2766 = vmatpush1.bf16.msra.mxu1 %v7335_v42  ;;  %2848 = vmatpush1.bf16.msra.mxu0 %v7337_v43  ;;  %v1361_v42 = vld [vmem:[#allocation11 + $0x6e8] sm:$0xff]  ;;  %v7391_v43 = vcombine.low %v1348_v30, %v1352_v32 }
 0x306   : > { %2767 = vmatprep.subr.bf16.mxu1 %v7344_v44  ;;  %2849 = vmatprep.subr.bf16.mxu0 %v7346_v45  ;;  %v7393_v44 = vcombine.low %v1349_v33, %v1353_v34  ;;  %v7400_v45 = vcombine.high %v1356_v39, %v1360_v40  ;;  %v7402_v46 = vcombine.high %v1357_v41, %v1361_v42 }
 0x309   : > { %2768 = vmatpush1.bf16.msra.mxu1 %v7343_v50  ;;  %2850 = vmatpush1.bf16.msra.mxu0 %v7345_v51  ;;  %v1369_v50 = vld [vmem:[#allocation11 + $0x728] sm:$0xff]  ;;  %v7399_v51 = vcombine.low %v1356_v39, %v1360_v40 }
 0x30a   : > { %2769 = vmatprep.subr.bf16.mxu1 %v7352_v54  ;;  %2851 = vmatprep.subr.bf16.mxu0 %v7354_v55  ;;  %v7401_v54 = vcombine.low %v1357_v41, %v1361_v42  ;;  %v7408_v55 = vcombine.high %v1364_v47, %v1368_v48  ;;  %v7410_v56 = vcombine.high %v1365_v49, %v1369_v50 }
 0x30d   : > { %2770 = vmatpush1.bf16.msra.mxu1 %v7351_v61  ;;  %2852 = vmatpush1.bf16.msra.mxu0 %v7353_v62  ;;  %v1373_v61 = vld [vmem:[#allocation11 + $0x748] sm:$0xff] }
 0x30e   : > { %2771 = vmatprep.subr.bf16.mxu1 %v7360_v63  ;;  %2853 = vmatprep.subr.bf16.mxu0 %v7362_v0  ;;  %v1377_v62 = vld [vmem:[#allocation11 + $0x768] sm:$0xff]  ;;  %v7407_v63 = vcombine.low %v1364_v47, %v1368_v48  ;;  %v7409_v0 = vcombine.low %v1365_v49, %v1369_v50  ;;  %v1163_v47 = vld [vmem:[#allocation11 + $0xb8] sm:$0xff] }
 0x30f   : > { %v7418_v2 = vcombine.high %v1373_v61, %v1377_v62  ;;  %v7417_v9 = vcombine.low %v1373_v61, %v1377_v62 }
 0x311   : > { %2772 = vmatpush1.bf16.msra.mxu1 %v7359_v5  ;;  %2854 = vmatpush1.bf16.msra.mxu0 %v7361_v6  ;;  %v1384_v5 = vld [vmem:[#allocation11 + $0x7a0] sm:$0xff]  ;;  %v1381_v6 = vld [vmem:[#allocation11 + $0x788] sm:$0xff] }
 0x312   : > { %2773 = vmatprep.subr.bf16.mxu1 %v7368_v7  ;;  %2855 = vmatprep.subr.bf16.mxu0 %v7370_v8  ;;  %v1385_v7 = vld [vmem:[#allocation11 + $0x7a8] sm:$0xff]  ;;  %v7415_v8 = vcombine.low %v1372_v57, %v1376_v60  ;;  %v7424_v10 = vcombine.high %v1380_v3, %v1384_v5  ;;  %v7423_v52 = vcombine.low %v1380_v3, %v1384_v5  ;;  %v1171_v57 = vld [vmem:[#allocation11 + $0xf8] sm:$0xff] }
 0x313   : > { %v7426_v11 = vcombine.high %v1381_v6, %v1385_v7  ;;  %v7425_v19 = vcombine.low %v1381_v6, %v1385_v7  ;;  %v1182_v7 = vld [vmem:[#allocation11 + $0x150] sm:$0xff] }
 0x315   : > { %2774 = vmatpush1.bf16.msra.mxu1 %v7367_v14  ;;  %2856 = vmatpush1.bf16.msra.mxu0 %v7369_v16  ;;  %v1118_v14 = vadd.f32 %v9071_v58, %v713_v4  ;;  %v1392_v16 = vld [vmem:[#allocation11 + $0x7e0] sm:$0xff] }
 0x316   : > { %2775 = vmatprep.subr.bf16.mxu1 %v7376_v17  ;;  %2857 = vmatprep.subr.bf16.mxu0 %v7378_v18  ;;  %v1389_v17 = vld [vmem:[#allocation11 + $0x7c8] sm:$0xff]  ;;  %v7432_v20 = vcombine.high %v1388_v12, %v1392_v16  ;;  %v7431_v58 = vcombine.low %v1388_v12, %v1392_v16 }
 0x317   : > { %v1393_v18 = vld [vmem:[#allocation11 + $0x7e8] sm:$0xff]  ;;  %vm1126_vm7 = vcmp.gt.f32.partialorder %v1118_v14, 0.0 }
 0x318   : > { %v7434_v21 = vcombine.high %v1389_v17, %v1393_v18  ;;  %v7433_v30 = vcombine.low %v1389_v17, %v1393_v18  ;;  %v1190_v17 = vld [vmem:[#allocation11 + $0x190] sm:$0xff] }
 0x319   : > { %2776 = vmatpush1.bf16.msra.mxu1 %v7375_v24  ;;  %2858 = vmatpush1.bf16.msra.mxu0 %v7377_v25  ;;  %v1130_v24 = vmul.f32 0.01, %v1118_v14  ;;  %v1146_v25 = vld [vmem:[#allocation11 + $0x30] sm:$0xff] }
 0x31a   : > { %2777 = vmatprep.subr.bf16.mxu1 %v7384_v26  ;;  %2859 = vmatprep.subr.bf16.mxu0 %v7386_v27  ;;  %v1143_v26 = vld [vmem:[#allocation11 + $0x18] sm:$0xff]  ;;  %v7188_v32 = vcombine.high %v1142_v23, %v1146_v25  ;;  %v7187_v39 = vcombine.low %v1142_v23, %v1146_v25  ;;  %v1194_v18 = vld [vmem:[#allocation11 + $0x1b0] sm:$0xff] }
 0x31b   : > { %v1147_v27 = vld [vmem:[#allocation11 + $0x38] sm:$0xff]  ;;  %v1134_v34 = vsel %vm1126_vm7, %v1118_v14, %v1130_v24  ;;  %v7236_v23 = vcombine.high %v1190_v17, %v1194_v18  ;;  %v1198_v25 = vld [vmem:[#allocation11 + $0x1d0] sm:$0xff] }
 0x31c   : > { %v7190_v33 = vcombine.high %v1143_v26, %v1147_v27  ;;  %v9091_v40 = vpack.c.bf16 %v1134_v34, %v1134_v34  ;;  %v7189_v41 = vcombine.low %v1143_v26, %v1147_v27  ;;  %v1202_v26 = vld [vmem:[#allocation11 + $0x1f0] sm:$0xff]  ;;  %v1199_v27 = vld [vmem:[#allocation11 + $0x1d8] sm:$0xff] }
 0x31d   : > { %2778 = vmatpush1.bf16.msra.mxu1 %v7383_v35  ;;  %2860 = vmatpush1.bf16.msra.mxu0 %v7385_v36  ;;  %v1150_v35 = vld [vmem:[#allocation11 + $0x50] sm:$0xff] }
 0x31e   : > { %2779 = vmatprep.subr.bf16.mxu1 %v7392_v37  ;;  %2861 = vmatprep.subr.bf16.mxu0 %v7394_v38  ;;  %v1154_v36 = vld [vmem:[#allocation11 + $0x70] sm:$0xff]  ;;  %v1151_v37 = vld [vmem:[#allocation11 + $0x58] sm:$0xff] }
 0x31f   : > { %v1155_v38 = vld [vmem:[#allocation11 + $0x78] sm:$0xff]  ;;  %v7196_v42 = vcombine.high %v1150_v35, %v1154_v36  ;;  %v7195_v48 = vcombine.low %v1150_v35, %v1154_v36  ;;  %v1206_v35 = vld [vmem:[#allocation11 + $0x210] sm:$0xff] }
 0x320   : > { %v7197_v49 = vcombine.low %v1151_v37, %v1155_v38  ;;  %v1210_v36 = vld [vmem:[#allocation11 + $0x230] sm:$0xff] }
 0x321   : > { %2780 = vmatpush1.bf16.msra.mxu1 %v7391_v43  ;;  %2862 = vmatpush1.bf16.msra.mxu0 %v7393_v44  ;;  %v7198_v43 = vcombine.high %v1151_v37, %v1155_v38  ;;  %v1158_v44 = vld [vmem:[#allocation11 + $0x90] sm:$0xff]  ;;  %v1207_v37 = vld [vmem:[#allocation11 + $0x218] sm:$0xff] }
 0x322   : > { %2781 = vmatprep.subr.bf16.mxu1 %v7400_v45  ;;  %2863 = vmatprep.subr.bf16.mxu0 %v7402_v46  ;;  %v1162_v45 = vld [vmem:[#allocation11 + $0xb0] sm:$0xff]  ;;  %v1159_v46 = vld [vmem:[#allocation11 + $0x98] sm:$0xff] }
 0x323   : > { %v7204_v50 = vcombine.high %v1158_v44, %v1162_v45  ;;  %v7203_v60 = vcombine.low %v1158_v44, %v1162_v45  ;;  %v7205_v61 = vcombine.low %v1159_v46, %v1163_v47  ;;  %v1211_v38 = vld [vmem:[#allocation11 + $0x238] sm:$0xff]  ;;  %v1214_v44 = vld [vmem:[#allocation11 + $0x250] sm:$0xff] }
 0x324   : > { %v1218_v45 = vld [vmem:[#allocation11 + $0x270] sm:$0xff] }
 0x325   : > { %2782 = vmatpush1.bf16.msra.mxu1 %v7399_v51  ;;  %2864 = vmatpush1.bf16.msra.mxu0 %v7401_v54  ;;  %v7206_v51 = vcombine.high %v1159_v46, %v1163_v47  ;;  %v1166_v54 = vld [vmem:[#allocation11 + $0xd0] sm:$0xff]  ;;  %v1215_v46 = vld [vmem:[#allocation11 + $0x258] sm:$0xff] }
 0x326   : > { %2783 = vmatprep.subr.bf16.mxu1 %v7408_v55  ;;  %2865 = vmatprep.subr.bf16.mxu0 %v7410_v56  ;;  %v1170_v55 = vld [vmem:[#allocation11 + $0xf0] sm:$0xff]  ;;  %v1167_v56 = vld [vmem:[#allocation11 + $0xd8] sm:$0xff] }
 0x327   : > { %v7212_v62 = vcombine.high %v1166_v54, %v1170_v55  ;;  %v7211_v3 = vcombine.low %v1166_v54, %v1170_v55  ;;  %v7213_v4 = vcombine.low %v1167_v56, %v1171_v57  ;;  %v1219_v47 = vld [vmem:[#allocation11 + $0x278] sm:$0xff]  ;;  %v1222_v54 = vld [vmem:[#allocation11 + $0x290] sm:$0xff] }
 0x328   : > { %v1226_v55 = vld [vmem:[#allocation11 + $0x2b0] sm:$0xff] }
 0x329   : > { %2784 = vmatpush1.bf16.msra.mxu1 %v7407_v63  ;;  %2866 = vmatpush1.bf16.msra.mxu0 %v7409_v0  ;;  %v7214_v63 = vcombine.high %v1167_v56, %v1171_v57  ;;  %v1174_v0 = vld [vmem:[#allocation11 + $0x110] sm:$0xff]  ;;  %v1223_v56 = vld [vmem:[#allocation11 + $0x298] sm:$0xff] }
 0x32a   : > { %2785 = vmatprep.subr.bf16.mxu1 %v7416_v1  ;;  %2867 = vmatprep.subr.bf16.mxu0 %v7418_v2  ;;  %v1178_v1 = vld [vmem:[#allocation11 + $0x130] sm:$0xff]  ;;  %v1179_v2 = vld [vmem:[#allocation11 + $0x138] sm:$0xff] }
 0x32b   : > { %v7220_v5 = vcombine.high %v1174_v0, %v1178_v1  ;;  %v1227_v57 = vld [vmem:[#allocation11 + $0x2b8] sm:$0xff] }
 0x32d   : > { %2786 = vmatpush1.bf16.msra.mxu1 %v7415_v8  ;;  %2868 = vmatpush1.bf16.msra.mxu0 %v7417_v9  ;;  %v1186_v8 = vld [vmem:[#allocation11 + $0x170] sm:$0xff]  ;;  %v1183_v9 = vld [vmem:[#allocation11 + $0x158] sm:$0xff] }
 0x32e   : > { %2787 = vmatprep.subr.bf16.mxu1 %v7424_v10  ;;  %2869 = vmatprep.subr.bf16.mxu0 %v7426_v11  ;;  %v1187_v10 = vld [vmem:[#allocation11 + $0x178] sm:$0xff]  ;;  %v7219_v11 = vcombine.low %v1174_v0, %v1178_v1  ;;  %v7228_v14 = vcombine.high %v1182_v7, %v1186_v8  ;;  %v1230_v0 = vld [vmem:[#allocation11 + $0x2d0] sm:$0xff] }
 0x32f   : > { %v7230_v16 = vcombine.high %v1183_v9, %v1187_v10  ;;  %v1234_v1 = vld [vmem:[#allocation11 + $0x2f0] sm:$0xff] }
 0x331   : > { %2788 = vmatpush1.bf16.msra.mxu1 %v7423_v52  ;;  %2870 = vmatpush1.bf16.msra.mxu0 %v7425_v19  ;;  %v1191_v52 = vld [vmem:[#allocation11 + $0x198] sm:$0xff] }
 0x332   : > { %2789 = vmatprep.subr.bf16.mxu1 %v7432_v20  ;;  %2871 = vmatprep.subr.bf16.mxu0 %v7434_v21  ;;  %v1195_v19 = vld [vmem:[#allocation11 + $0x1b8] sm:$0xff]  ;;  %v7227_v20 = vcombine.low %v1182_v7, %v1186_v8  ;;  %v7229_v21 = vcombine.low %v1183_v9, %v1187_v10  ;;  %v1238_v7 = vld [vmem:[#allocation11 + $0x310] sm:$0xff] }
 0x333   : > { %v7238_v24 = vcombine.high %v1191_v52, %v1195_v19  ;;  %v1242_v8 = vld [vmem:[#allocation11 + $0x330] sm:$0xff]  ;;  %v1239_v9 = vld [vmem:[#allocation11 + $0x318] sm:$0xff] }
 0x334   : > { %v1243_v10 = vld [vmem:[#allocation11 + $0x338] sm:$0xff] }
 0x335   : > { %2790 = vmatpush1.bf16.msra.mxu1 %v7431_v58  ;;  %2872 = vmatpush1.bf16.msra.mxu0 %v7433_v30  ;;  %v1203_v58 = vld [vmem:[#allocation11 + $0x1f8] sm:$0xff]  ;;  %v7235_v30 = vcombine.low %v1190_v17, %v1194_v18  ;;  %v1246_v17 = vld [vmem:[#allocation11 + $0x350] sm:$0xff] }
 0x336   : > { %2882 = vmatprep.subr.bf16.mxu1 %v7188_v32  ;;  %2964 = vmatprep.subr.bf16.mxu0 %v7190_v33  ;;  %v7237_v32 = vcombine.low %v1191_v52, %v1195_v19  ;;  %v7244_v33 = vcombine.high %v1198_v25, %v1202_v26  ;;  %v7246_v34 = vcombine.high %v1199_v27, %v1203_v58  ;;  %v1250_v18 = vld [vmem:[#allocation11 + $0x370] sm:$0xff]  ;;  %v1247_v52 = vld [vmem:[#allocation11 + $0x358] sm:$0xff] }
 0x337   : > { %v1251_v19 = vld [vmem:[#allocation11 + $0x378] sm:$0xff] }
 0x338   : > { %2792 = vmatmul.mubr.bf16.vlgmr.msra.gmra.mrb[4].mxu1 %v9091_v40  ;;  %2874 = vmatmul.mubr.bf16.vlgmr.msra.gmra.mrb[8].mxu0 %v9091_v40 }
 0x339   : > { %2883 = vmatpush1.bf16.msra.mxu1 %v7187_v39  ;;  %2914 = vmatprep.mubr.bf16.mxu1 %v9073_v13  ;;  %v7243_v39 = vcombine.low %v1198_v25, %v1202_v26  ;;  %v1254_v25 = vld [vmem:[#allocation11 + $0x390] sm:$0xff] }
 0x33a   : > { %2965 = vmatpush1.bf16.msra.mxu0 %v7189_v41  ;;  %2996 = vmatprep.mubr.bf16.mxu0 %v9073_v13  ;;  %v1175_v13 = vld [vmem:[#allocation11 + $0x118] sm:$0xff]  ;;  %v7245_v41 = vcombine.low %v1199_v27, %v1203_v58  ;;  %v1258_v26 = vld [vmem:[#allocation11 + $0x3b0] sm:$0xff] }
 0x33b   : > { %2884 = vmatprep.subr.bf16.mxu1 %v7196_v42  ;;  %2966 = vmatprep.subr.bf16.mxu0 %v7198_v43  ;;  %v7222_v6 = vcombine.high %v1175_v13, %v1179_v2  ;;  %v7221_v12 = vcombine.low %v1175_v13, %v1179_v2  ;;  %v7252_v42 = vcombine.high %v1206_v35, %v1210_v36  ;;  %v1231_v13 = vld [vmem:[#allocation11 + $0x2d8] sm:$0xff] }
 0x33c   : > { %v7254_v43 = vcombine.high %v1207_v37, %v1211_v38  ;;  %v1235_v2 = vld [vmem:[#allocation11 + $0x2f8] sm:$0xff] }
 0x33d   : > { %2885 = vmatpush1.bf16.msra.mxu1 %v7195_v48  ;;  %v7251_v48 = vcombine.low %v1206_v35, %v1210_v36  ;;  %v1255_v27 = vld [vmem:[#allocation11 + $0x398] sm:$0xff]  ;;  %v1262_v35 = vld [vmem:[#allocation11 + $0x3d0] sm:$0xff] }
 0x33e   : > { %2967 = vmatpush1.bf16.msra.mxu0 %v7197_v49  ;;  %2886 = vmatprep.subr.bf16.mxu1 %v7204_v50  ;;  %v7253_v49 = vcombine.low %v1207_v37, %v1211_v38  ;;  %v7260_v50 = vcombine.high %v1214_v44, %v1218_v45  ;;  %v1259_v58 = vld [vmem:[#allocation11 + $0x3b8] sm:$0xff]  ;;  %v1266_v36 = vld [vmem:[#allocation11 + $0x3f0] sm:$0xff] }
 0x33f   : > { %2968 = vmatprep.subr.bf16.mxu0 %v7206_v51  ;;  %v7262_v51 = vcombine.high %v1215_v46, %v1219_v47  ;;  %v1263_v37 = vld [vmem:[#allocation11 + $0x3d8] sm:$0xff] }
 0x340   : > { %v1267_v38 = vld [vmem:[#allocation11 + $0x3f8] sm:$0xff] }
 0x341   : > { %2887 = vmatpush1.bf16.msra.mxu1 %v7203_v60  ;;  %v7259_v60 = vcombine.low %v1214_v44, %v1218_v45  ;;  %v1270_v44 = vld [vmem:[#allocation11 + $0x410] sm:$0xff] }
 0x342   : > { %2969 = vmatpush1.bf16.msra.mxu0 %v7205_v61  ;;  %2888 = vmatprep.subr.bf16.mxu1 %v7212_v62  ;;  %v7261_v61 = vcombine.low %v1215_v46, %v1219_v47  ;;  %v7268_v62 = vcombine.high %v1222_v54, %v1226_v55  ;;  %v1274_v45 = vld [vmem:[#allocation11 + $0x430] sm:$0xff]  ;;  %v1271_v46 = vld [vmem:[#allocation11 + $0x418] sm:$0xff] }
 0x343   : > { %2970 = vmatprep.subr.bf16.mxu0 %v7214_v63  ;;  %v7270_v63 = vcombine.high %v1223_v56, %v1227_v57  ;;  %v1275_v47 = vld [vmem:[#allocation11 + $0x438] sm:$0xff] }
 0x345   : > { %2889 = vmatpush1.bf16.msra.mxu1 %v7211_v3  ;;  %v7267_v3 = vcombine.low %v1222_v54, %v1226_v55  ;;  %v1278_v54 = vld [vmem:[#allocation11 + $0x450] sm:$0xff] }
 0x346   : > { %2971 = vmatpush1.bf16.msra.mxu0 %v7213_v4  ;;  %2890 = vmatprep.subr.bf16.mxu1 %v7220_v5  ;;  %v7269_v4 = vcombine.low %v1223_v56, %v1227_v57  ;;  %v7276_v5 = vcombine.high %v1230_v0, %v1234_v1  ;;  %v1282_v55 = vld [vmem:[#allocation11 + $0x470] sm:$0xff]  ;;  %v7315_v56 = vcombine.low %v1270_v44, %v1274_v45  ;;  %v1279_v57 = vld [vmem:[#allocation11 + $0x458] sm:$0xff] }
 0x347   : > { %2972 = vmatprep.subr.bf16.mxu0 %v7222_v6  ;;  %v7278_v6 = vcombine.high %v1231_v13, %v1235_v2 }
 0x349   : > { %2891 = vmatpush1.bf16.msra.mxu1 %v7219_v11  ;;  %v7275_v11 = vcombine.low %v1230_v0, %v1234_v1  ;;  %v1290_v0 = vld [vmem:[#allocation11 + $0x4b0] sm:$0xff] }
 0x34a   : > { %2973 = vmatpush1.bf16.msra.mxu0 %v7221_v12  ;;  %2892 = vmatprep.subr.bf16.mxu1 %v7228_v14  ;;  %v7277_v12 = vcombine.low %v1231_v13, %v1235_v2  ;;  %v7284_v14 = vcombine.high %v1238_v7, %v1242_v8  ;;  %v1287_v13 = vld [vmem:[#allocation11 + $0x498] sm:$0xff] }
 0x34b   : > { %2974 = vmatprep.subr.bf16.mxu0 %v7230_v16  ;;  %v7286_v16 = vcombine.high %v1239_v9, %v1243_v10  ;;  %v1291_v2 = vld [vmem:[#allocation11 + $0x4b8] sm:$0xff] }
 0x34d   : > { %2893 = vmatpush1.bf16.msra.mxu1 %v7227_v20  ;;  %v7283_v20 = vcombine.low %v1238_v7, %v1242_v8  ;;  %v1294_v7 = vld [vmem:[#allocation11 + $0x4d0] sm:$0xff] }
 0x34e   : > { %2975 = vmatpush1.bf16.msra.mxu0 %v7229_v21  ;;  %2894 = vmatprep.subr.bf16.mxu1 %v7236_v23  ;;  %v7285_v21 = vcombine.low %v1239_v9, %v1243_v10  ;;  %v7292_v23 = vcombine.high %v1246_v17, %v1250_v18  ;;  %v1298_v8 = vld [vmem:[#allocation11 + $0x4f0] sm:$0xff]  ;;  %v1295_v9 = vld [vmem:[#allocation11 + $0x4d8] sm:$0xff] }
 0x34f   : > { %2976 = vmatprep.subr.bf16.mxu0 %v7238_v24  ;;  %v7294_v24 = vcombine.high %v1247_v52, %v1251_v19  ;;  %v1299_v10 = vld [vmem:[#allocation11 + $0x4f8] sm:$0xff] }
 0x351   : > { %2895 = vmatpush1.bf16.msra.mxu1 %v7235_v30  ;;  %v7291_v30 = vcombine.low %v1246_v17, %v1250_v18  ;;  %v1306_v17 = vld [vmem:[#allocation11 + $0x530] sm:$0xff]  ;;  %v1303_v18 = vld [vmem:[#allocation11 + $0x518] sm:$0xff] }
 0x352   : > { %2977 = vmatpush1.bf16.msra.mxu0 %v7237_v32  ;;  %2896 = vmatprep.subr.bf16.mxu1 %v7244_v33  ;;  %v7293_v32 = vcombine.low %v1247_v52, %v1251_v19  ;;  %v7300_v33 = vcombine.high %v1254_v25, %v1258_v26  ;;  %v1307_v52 = vld [vmem:[#allocation11 + $0x538] sm:$0xff]  ;;  %v7341_v19 = vcombine.low %v1295_v9, %v1299_v10 }
 0x353   : > { %2978 = vmatprep.subr.bf16.mxu0 %v7246_v34  ;;  %v7302_v34 = vcombine.high %v1255_v27, %v1259_v58 }
 0x355   : > { %2897 = vmatpush1.bf16.msra.mxu1 %v7243_v39  ;;  %v7299_v39 = vcombine.low %v1254_v25, %v1258_v26  ;;  %v1311_v25 = vld [vmem:[#allocation11 + $0x558] sm:$0xff] }
 0x356   : > { %2979 = vmatpush1.bf16.msra.mxu0 %v7245_v41  ;;  %2898 = vmatprep.subr.bf16.mxu1 %v7252_v42  ;;  %v7301_v41 = vcombine.low %v1255_v27, %v1259_v58  ;;  %v7308_v42 = vcombine.high %v1262_v35, %v1266_v36  ;;  %v1315_v26 = vld [vmem:[#allocation11 + $0x578] sm:$0xff]  ;;  %v7349_v58 = vcombine.low %v1303_v18, %v1307_v52 }
 0x357   : > { %2980 = vmatprep.subr.bf16.mxu0 %v7254_v43  ;;  %v7310_v43 = vcombine.high %v1263_v37, %v1267_v38 }
 0x359   : > { %2899 = vmatpush1.bf16.msra.mxu1 %v7251_v48  ;;  %v7307_v48 = vcombine.low %v1262_v35, %v1266_v36  ;;  %v1319_v35 = vld [vmem:[#allocation11 + $0x598] sm:$0xff] }
 0x35a   : > { %2981 = vmatpush1.bf16.msra.mxu0 %v7253_v49  ;;  %2900 = vmatprep.subr.bf16.mxu1 %v7260_v50  ;;  %v7309_v49 = vcombine.low %v1263_v37, %v1267_v38  ;;  %v7316_v50 = vcombine.high %v1270_v44, %v1274_v45  ;;  %v1323_v36 = vld [vmem:[#allocation11 + $0x5b8] sm:$0xff]  ;;  %v7357_v38 = vcombine.low %v1311_v25, %v1315_v26 }
 0x35b   : > { %2982 = vmatprep.subr.bf16.mxu0 %v7262_v51  ;;  %v7318_v51 = vcombine.high %v1271_v46, %v1275_v47  ;;  %v1327_v44 = vld [vmem:[#allocation11 + $0x5d8] sm:$0xff] }
 0x35c   : > { %v1331_v45 = vld [vmem:[#allocation11 + $0x5f8] sm:$0xff] }
 0x35d   : > { %2901 = vmatpush1.bf16.msra.mxu1 %v7259_v60  ;;  %v1283_v60 = vld [vmem:[#allocation11 + $0x478] sm:$0xff] }
 0x35e   : > { %2983 = vmatpush1.bf16.msra.mxu0 %v7261_v61  ;;  %2902 = vmatprep.subr.bf16.mxu1 %v7268_v62  ;;  %v7317_v61 = vcombine.low %v1271_v46, %v1275_v47  ;;  %v7324_v62 = vcombine.high %v1278_v54, %v1282_v55  ;;  %v7326_v1 = vcombine.high %v1279_v57, %v1283_v60 }
 0x35f   : > { %2984 = vmatprep.subr.bf16.mxu0 %v7270_v63  ;;  %v1286_v63 = vld [vmem:[#allocation11 + $0x490] sm:$0xff]  ;;  %v7365_v47 = vcombine.low %v1319_v35, %v1323_v36 }
 0x361   : > { %2903 = vmatpush1.bf16.msra.mxu1 %v7267_v3  ;;  %v7323_v3 = vcombine.low %v1278_v54, %v1282_v55  ;;  %v1335_v54 = vld [vmem:[#allocation11 + $0x618] sm:$0xff] }
 0x362   : > { %2985 = vmatpush1.bf16.msra.mxu0 %v7269_v4  ;;  %2904 = vmatprep.subr.bf16.mxu1 %v7276_v5  ;;  %v7325_v4 = vcombine.low %v1279_v57, %v1283_v60  ;;  %v7332_v5 = vcombine.high %v1286_v63, %v1290_v0  ;;  %v1339_v55 = vld [vmem:[#allocation11 + $0x638] sm:$0xff]  ;;  %v7373_v57 = vcombine.low %v1327_v44, %v1331_v45 }
 0x363   : > { %2986 = vmatprep.subr.bf16.mxu0 %v7278_v6  ;;  %v7334_v6 = vcombine.high %v1287_v13, %v1291_v2 }
 0x365   : > { %2905 = vmatpush1.bf16.msra.mxu1 %v7275_v11  ;;  %v7331_v11 = vcombine.low %v1286_v63, %v1290_v0  ;;  %v1346_v63 = vld [vmem:[#allocation11 + $0x670] sm:$0xff]  ;;  %v1343_v0 = vld [vmem:[#allocation11 + $0x658] sm:$0xff] }
 0x366   : > { %2987 = vmatpush1.bf16.msra.mxu0 %v7277_v12  ;;  %2906 = vmatprep.subr.bf16.mxu1 %v7284_v14  ;;  %v7340_v12 = vcombine.high %v1294_v7, %v1298_v8  ;;  %v7342_v14 = vcombine.high %v1295_v9, %v1299_v10 }
 0x367   : > { %2988 = vmatprep.subr.bf16.mxu0 %v7286_v16  ;;  %v1302_v16 = vld [vmem:[#allocation11 + $0x510] sm:$0xff] }
 0x368   : > { %v7347_v27 = vcombine.low %v1302_v16, %v1306_v17 }
 0x369   : > { %2907 = vmatpush1.bf16.msra.mxu1 %v7283_v20  ;;  %v7348_v20 = vcombine.high %v1302_v16, %v1306_v17  ;;  %v1359_v16 = vld [vmem:[#allocation11 + $0x6d8] sm:$0xff] }
 0x36a   : > { %2989 = vmatpush1.bf16.msra.mxu0 %v7285_v21  ;;  %2908 = vmatprep.subr.bf16.mxu1 %v7292_v23  ;;  %v7350_v21 = vcombine.high %v1303_v18, %v1307_v52  ;;  %v1310_v23 = vld [vmem:[#allocation11 + $0x550] sm:$0xff]  ;;  %v1363_v17 = vld [vmem:[#allocation11 + $0x6f8] sm:$0xff] }
 0x36b   : > { %2990 = vmatprep.subr.bf16.mxu0 %v7294_v24  ;;  %v1314_v24 = vld [vmem:[#allocation11 + $0x570] sm:$0xff] }
 0x36c   : > { %v7355_v37 = vcombine.low %v1310_v23, %v1314_v24 }
 0x36d   : > { %2909 = vmatpush1.bf16.msra.mxu1 %v7291_v30  ;;  %v7356_v30 = vcombine.high %v1310_v23, %v1314_v24  ;;  %v1367_v23 = vld [vmem:[#allocation11 + $0x718] sm:$0xff] }
 0x36e   : > { %2991 = vmatpush1.bf16.msra.mxu0 %v7293_v32  ;;  %2910 = vmatprep.subr.bf16.mxu1 %v7300_v33  ;;  %v7358_v32 = vcombine.high %v1311_v25, %v1315_v26  ;;  %v1318_v33 = vld [vmem:[#allocation11 + $0x590] sm:$0xff]  ;;  %v1371_v24 = vld [vmem:[#allocation11 + $0x738] sm:$0xff]  ;;  %v7405_v26 = vcombine.low %v1359_v16, %v1363_v17 }
 0x36f   : > { %2992 = vmatprep.subr.bf16.mxu0 %v7302_v34  ;;  %v1322_v34 = vld [vmem:[#allocation11 + $0x5b0] sm:$0xff] }
 0x370   : > { %v7363_v46 = vcombine.low %v1318_v33, %v1322_v34 }
 0x371   : > { %2911 = vmatpush1.bf16.msra.mxu1 %v7299_v39  ;;  %v7364_v39 = vcombine.high %v1318_v33, %v1322_v34  ;;  %v1375_v33 = vld [vmem:[#allocation11 + $0x758] sm:$0xff] }
 0x372   : > { %2993 = vmatpush1.bf16.msra.mxu0 %v7301_v41  ;;  %2912 = vmatprep.subr.bf16.mxu1 %v7308_v42  ;;  %v7366_v41 = vcombine.high %v1319_v35, %v1323_v36  ;;  %v1326_v42 = vld [vmem:[#allocation11 + $0x5d0] sm:$0xff]  ;;  %v1379_v34 = vld [vmem:[#allocation11 + $0x778] sm:$0xff]  ;;  %v7413_v36 = vcombine.low %v1367_v23, %v1371_v24 }
 0x373   : > { %2994 = vmatprep.subr.bf16.mxu0 %v7310_v43  ;;  %v1330_v43 = vld [vmem:[#allocation11 + $0x5f0] sm:$0xff] }
 0x375   : > { %2913 = vmatpush1.bf16.msra.mxu1 %v7307_v48  ;;  %v7372_v48 = vcombine.high %v1326_v42, %v1330_v43 }
 0x376   : > { %2995 = vmatpush1.bf16.msra.mxu0 %v7309_v49  ;;  %2923 = vmatprep.subr.bf16.mxu1 %v7316_v50  ;;  %v7374_v49 = vcombine.high %v1327_v44, %v1331_v45  ;;  %v1334_v50 = vld [vmem:[#allocation11 + $0x610] sm:$0xff]  ;;  %v7421_v45 = vcombine.low %v1375_v33, %v1379_v34 }
 0x377   : > { %3005 = vmatprep.subr.bf16.mxu0 %v7318_v51  ;;  %v1338_v51 = vld [vmem:[#allocation11 + $0x630] sm:$0xff] }
 0x378   : > { %2915 = vmatmul.mubr.bf16.vlgmr.msra.gmra.mrb[8].mxu1 %v9075_v15  ;;  %v7380_v60 = vcombine.high %v1334_v50, %v1338_v51 }
 0x379   : > { %2997 = vmatmul.mubr.bf16.vlgmr.msra.gmra.mrb[12].mxu0 %v9075_v15  ;;  %2924 = vmatpush1.bf16.msra.mxu1 %v7315_v56  ;;  %v7333_v15 = vcombine.low %v1287_v13, %v1291_v2  ;;  %v7371_v56 = vcombine.low %v1326_v42, %v1330_v43  ;;  %v7379_v13 = vcombine.low %v1334_v50, %v1338_v51  ;;  %v1383_v42 = vld [vmem:[#allocation11 + $0x798] sm:$0xff] }
 0x37a   : > { %2955 = vmatprep.mubr.bf16.mxu1 %v9079_v22  ;;  %3006 = vmatpush1.bf16.msra.mxu0 %v7317_v61  ;;  %v7382_v61 = vcombine.high %v1335_v54, %v1339_v55  ;;  %v7381_v2 = vcombine.low %v1335_v54, %v1339_v55  ;;  %v1387_v43 = vld [vmem:[#allocation11 + $0x7b8] sm:$0xff] }
 0x37b   : > { %3037 = vmatprep.mubr.bf16.mxu0 %v9079_v22  ;;  %2925 = vmatprep.subr.bf16.mxu1 %v7324_v62  ;;  %v7339_v22 = vcombine.low %v1294_v7, %v1298_v8  ;;  %v1342_v62 = vld [vmem:[#allocation11 + $0x650] sm:$0xff]  ;;  %v1351_v7 = vld [vmem:[#allocation11 + $0x698] sm:$0xff]  ;;  %v7429_v55 = vcombine.low %v1383_v42, %v1387_v43 }
 0x37c   : > { %3007 = vmatprep.subr.bf16.mxu0 %v7326_v1  ;;  %v1347_v1 = vld [vmem:[#allocation11 + $0x678] sm:$0xff]  ;;  %v7387_v9 = vcombine.low %v1342_v62, %v1346_v63 }
 0x37d   : > { %2926 = vmatpush1.bf16.msra.mxu1 %v7323_v3  ;;  %v7388_v3 = vcombine.high %v1342_v62, %v1346_v63  ;;  %v1355_v8 = vld [vmem:[#allocation11 + $0x6b8] sm:$0xff]  ;;  %v7389_v10 = vcombine.low %v1343_v0, %v1347_v1  ;;  %v3079_v62 = vld [vmem:[%s9044_s17 + $0x8] sm:$0xff] }
 0x37e   : > { %3008 = vmatpush1.bf16.msra.mxu0 %v7325_v4  ;;  %2927 = vmatprep.subr.bf16.mxu1 %v7332_v5  ;;  %v7390_v4 = vcombine.high %v1343_v0, %v1347_v1  ;;  %v1350_v5 = vld [vmem:[#allocation11 + $0x690] sm:$0xff]  ;;  %v7397_v52 = vcombine.low %v1351_v7, %v1355_v8  ;;  %v1391_v50 = vld [vmem:[#allocation11 + $0x7d8] sm:$0xff] }
 0x37f   : > { %3009 = vmatprep.subr.bf16.mxu0 %v7334_v6  ;;  %v1354_v6 = vld [vmem:[#allocation11 + $0x6b0] sm:$0xff]  ;;  %v1395_v51 = vld [vmem:[#allocation11 + $0x7f8] sm:$0xff] }
 0x380   : > { %v7395_v18 = vcombine.low %v1350_v5, %v1354_v6  ;;  %v3083_v63 = vld [vmem:[%s9044_s17 + $0x28] sm:$0xff]  ;;  %v7437_v1 = vcombine.low %v1391_v50, %v1395_v51 }
 0x381   : > { %2928 = vmatpush1.bf16.msra.mxu1 %v7331_v11  ;;  %v7396_v11 = vcombine.high %v1350_v5, %v1354_v6  ;;  %v3087_v5 = vld [vmem:[%s9044_s17 + $0x48] sm:$0xff] }
 0x382   : > { %3010 = vmatpush1.bf16.msra.mxu0 %v7333_v15  ;;  %2929 = vmatprep.subr.bf16.mxu1 %v7340_v12  ;;  %v7398_v15 = vcombine.high %v1351_v7, %v1355_v8  ;;  %v1358_v12 = vld [vmem:[#allocation11 + $0x6d0] sm:$0xff]  ;;  %v7441_v8 = vcombine.low %v3079_v62, %v3083_v63 }
 0x383   : > { %3011 = vmatprep.subr.bf16.mxu0 %v7342_v14  ;;  %v1362_v14 = vld [vmem:[#allocation11 + $0x6f0] sm:$0xff] }
 0x384   : > { %v7403_v25 = vcombine.low %v1358_v12, %v1362_v14  ;;  %v3091_v6 = vld [vmem:[%s9044_s17 + $0x68] sm:$0xff] }
 0x385   : > { %2930 = vmatpush1.bf16.msra.mxu1 %v7339_v22  ;;  %v7404_v22 = vcombine.high %v1358_v12, %v1362_v14  ;;  %v3095_v12 = vld [vmem:[%s9044_s17 + $0x88] sm:$0xff] }
 0x386   : > { %3012 = vmatpush1.bf16.msra.mxu0 %v7341_v19  ;;  %2931 = vmatprep.subr.bf16.mxu1 %v7348_v20  ;;  %v7406_v19 = vcombine.high %v1359_v16, %v1363_v17  ;;  %v1366_v20 = vld [vmem:[#allocation11 + $0x710] sm:$0xff]  ;;  %v7449_v17 = vcombine.low %v3087_v5, %v3091_v6 }
 0x387   : > { %3013 = vmatprep.subr.bf16.mxu0 %v7350_v21  ;;  %v1370_v21 = vld [vmem:[#allocation11 + $0x730] sm:$0xff] }
 0x388   : > { %v7411_v35 = vcombine.low %v1366_v20, %v1370_v21  ;;  %v3099_v14 = vld [vmem:[%s9044_s17 + $0xa8] sm:$0xff] }
 0x389   : > { %2932 = vmatpush1.bf16.msra.mxu1 %v7347_v27  ;;  %v7412_v27 = vcombine.high %v1366_v20, %v1370_v21  ;;  %v3103_v20 = vld [vmem:[%s9044_s17 + $0xc8] sm:$0xff] }
 0x38a   : > { %3014 = vmatpush1.bf16.msra.mxu0 %v7349_v58  ;;  %2933 = vmatprep.subr.bf16.mxu1 %v7356_v30  ;;  %v7414_v58 = vcombine.high %v1367_v23, %v1371_v24  ;;  %v1374_v30 = vld [vmem:[#allocation11 + $0x750] sm:$0xff] }
 0x38b   : > { %3015 = vmatprep.subr.bf16.mxu0 %v7358_v32  ;;  %v1378_v32 = vld [vmem:[#allocation11 + $0x770] sm:$0xff] }
 0x38c   : > { %v7419_v44 = vcombine.low %v1374_v30, %v1378_v32  ;;  %v3107_v21 = vld [vmem:[%s9044_s17 + $0xe8] sm:$0xff] }
 0x38d   : > { %2934 = vmatpush1.bf16.msra.mxu1 %v7355_v37  ;;  %v7420_v37 = vcombine.high %v1374_v30, %v1378_v32  ;;  %v3115_v30 = vld [vmem:[%s9044_s17 + $0x128] sm:$0xff] }
 0x38e   : > { %3016 = vmatpush1.bf16.msra.mxu0 %v7357_v38  ;;  %2935 = vmatprep.subr.bf16.mxu1 %v7364_v39  ;;  %v7422_v38 = vcombine.high %v1375_v33, %v1379_v34  ;;  %v1382_v39 = vld [vmem:[#allocation11 + $0x790] sm:$0xff]  ;;  %v7465_v33 = vcombine.low %v3103_v20, %v3107_v21 }
 0x38f   : > { %3017 = vmatprep.subr.bf16.mxu0 %v7366_v41  ;;  %v1386_v41 = vld [vmem:[#allocation11 + $0x7b0] sm:$0xff] }
 0x390   : > { %v7427_v54 = vcombine.low %v1382_v39, %v1386_v41 }
 0x391   : > { %2936 = vmatpush1.bf16.msra.mxu1 %v7363_v46  ;;  %v7428_v46 = vcombine.high %v1382_v39, %v1386_v41  ;;  %v3123_v39 = vld [vmem:[%s9044_s17 + $0x168] sm:$0xff] }
 0x392   : > { %3018 = vmatpush1.bf16.msra.mxu0 %v7365_v47  ;;  %2937 = vmatprep.subr.bf16.mxu1 %v7372_v48  ;;  %v7430_v47 = vcombine.high %v1383_v42, %v1387_v43  ;;  %v1390_v48 = vld [vmem:[#allocation11 + $0x7d0] sm:$0xff] }
 0x393   : > { %3019 = vmatprep.subr.bf16.mxu0 %v7374_v49  ;;  %v1394_v49 = vld [vmem:[#allocation11 + $0x7f0] sm:$0xff] }
 0x394   : > { %v7435_v0 = vcombine.low %v1390_v48, %v1394_v49 }
 0x395   : > { %2938 = vmatpush1.bf16.msra.mxu1 %v7371_v56  ;;  %v7436_v56 = vcombine.high %v1390_v48, %v1394_v49  ;;  %v3131_v48 = vld [vmem:[%s9044_s17 + $0x1a8] sm:$0xff] }
 0x396   : > { %3020 = vmatpush1.bf16.msra.mxu0 %v7373_v57  ;;  %2939 = vmatprep.subr.bf16.mxu1 %v7380_v60  ;;  %v7438_v57 = vcombine.high %v1391_v50, %v1395_v51  ;;  %v3078_v60 = vld [vmem:[%s9044_s17] sm:$0xff] }
 0x397   : > { %3021 = vmatprep.subr.bf16.mxu0 %v7382_v61  ;;  %v3082_v61 = vld [vmem:[%s9044_s17 + $0x20] sm:$0xff] }
 0x398   : > { %v7439_v7 = vcombine.low %v3078_v60, %v3082_v61 }
 0x399   : > { %2940 = vmatpush1.bf16.msra.mxu1 %v7379_v13  ;;  %v7440_v13 = vcombine.high %v3078_v60, %v3082_v61  ;;  %v3139_v60 = vld [vmem:[%s9044_s17 + $0x1e8] sm:$0xff] }
 0x39a   : > { %3022 = vmatpush1.bf16.msra.mxu0 %v7381_v2  ;;  %2941 = vmatprep.subr.bf16.mxu1 %v7388_v3  ;;  %v7442_v2 = vcombine.high %v3079_v62, %v3083_v63  ;;  %v3086_v3 = vld [vmem:[%s9044_s17 + $0x40] sm:$0xff] }
 0x39b   : > { %3023 = vmatprep.subr.bf16.mxu0 %v7390_v4  ;;  %v3090_v4 = vld [vmem:[%s9044_s17 + $0x60] sm:$0xff] }
 0x39c   : > { %v7447_v16 = vcombine.low %v3086_v3, %v3090_v4 }
 0x39d   : > { %2942 = vmatpush1.bf16.msra.mxu1 %v7387_v9  ;;  %v7448_v9 = vcombine.high %v3086_v3, %v3090_v4  ;;  %v3147_v3 = vld [vmem:[%s9044_s17 + $0x228] sm:$0xff] }
 0x39e   : > { %3024 = vmatpush1.bf16.msra.mxu0 %v7389_v10  ;;  %2943 = vmatprep.subr.bf16.mxu1 %v7396_v11  ;;  %v7450_v10 = vcombine.high %v3087_v5, %v3091_v6  ;;  %v3094_v11 = vld [vmem:[%s9044_s17 + $0x80] sm:$0xff] }
 0x39f   : > { %3025 = vmatprep.subr.bf16.mxu0 %v7398_v15  ;;  %v3098_v15 = vld [vmem:[%s9044_s17 + $0xa0] sm:$0xff] }
 0x3a0   : > { %v7455_v23 = vcombine.low %v3094_v11, %v3098_v15 }
 0x3a1   : > { %2944 = vmatpush1.bf16.msra.mxu1 %v7395_v18  ;;  %v7456_v18 = vcombine.high %v3094_v11, %v3098_v15  ;;  %v3155_v11 = vld [vmem:[%s9044_s17 + $0x268] sm:$0xff] }
 0x3a2   : > { %3026 = vmatpush1.bf16.msra.mxu0 %v7397_v52  ;;  %2945 = vmatprep.subr.bf16.mxu1 %v7404_v22  ;;  %v7458_v52 = vcombine.high %v3095_v12, %v3099_v14  ;;  %v3102_v22 = vld [vmem:[%s9044_s17 + $0xc0] sm:$0xff] }
 0x3a3   : > { %3027 = vmatprep.subr.bf16.mxu0 %v7406_v19  ;;  %v3106_v19 = vld [vmem:[%s9044_s17 + $0xe0] sm:$0xff] }
 0x3a4   : > { %v7464_v24 = vcombine.high %v3102_v22, %v3106_v19  ;;  %v7463_v32 = vcombine.low %v3102_v22, %v3106_v19  ;;  %v3163_v22 = vld [vmem:[%s9044_s17 + $0x2a8] sm:$0xff] }
 0x3a5   : > { %2946 = vmatpush1.bf16.msra.mxu1 %v7403_v25  ;;  %v7466_v25 = vcombine.high %v3103_v20, %v3107_v21 }
 0x3a6   : > { %3028 = vmatpush1.bf16.msra.mxu0 %v7405_v26  ;;  %2947 = vmatprep.subr.bf16.mxu1 %v7412_v27  ;;  %v3110_v26 = vld [vmem:[%s9044_s17 + $0x100] sm:$0xff] }
 0x3a7   : > { %3029 = vmatprep.subr.bf16.mxu0 %v7414_v58  ;;  %v3114_v27 = vld [vmem:[%s9044_s17 + $0x120] sm:$0xff]  ;;  %v3111_v58 = vld [vmem:[%s9044_s17 + $0x108] sm:$0xff] }
 0x3a8   : > { %v7472_v34 = vcombine.high %v3110_v26, %v3114_v27  ;;  %v7471_v41 = vcombine.low %v3110_v26, %v3114_v27  ;;  %v7473_v42 = vcombine.low %v3111_v58, %v3115_v30  ;;  %v3171_v26 = vld [vmem:[%s9044_s17 + $0x2e8] sm:$0xff] }
 0x3a9   : > { %2948 = vmatpush1.bf16.msra.mxu1 %v7411_v35  ;;  %v7474_v35 = vcombine.high %v3111_v58, %v3115_v30 }
 0x3aa   : > { %3030 = vmatpush1.bf16.msra.mxu0 %v7413_v36  ;;  %2949 = vmatprep.subr.bf16.mxu1 %v7420_v37  ;;  %v3118_v36 = vld [vmem:[%s9044_s17 + $0x140] sm:$0xff] }
 0x3ab   : > { %3031 = vmatprep.subr.bf16.mxu0 %v7422_v38  ;;  %v3122_v37 = vld [vmem:[%s9044_s17 + $0x160] sm:$0xff]  ;;  %v3119_v38 = vld [vmem:[%s9044_s17 + $0x148] sm:$0xff] }
 0x3ac   : > { %v7480_v43 = vcombine.high %v3118_v36, %v3122_v37  ;;  %v7479_v49 = vcombine.low %v3118_v36, %v3122_v37  ;;  %v7481_v50 = vcombine.low %v3119_v38, %v3123_v39  ;;  %v3179_v36 = vld [vmem:[%s9044_s17 + $0x328] sm:$0xff] }
 0x3ad   : > { %2950 = vmatpush1.bf16.msra.mxu1 %v7419_v44  ;;  %v7482_v44 = vcombine.high %v3119_v38, %v3123_v39 }
 0x3ae   : > { %3032 = vmatpush1.bf16.msra.mxu0 %v7421_v45  ;;  %2951 = vmatprep.subr.bf16.mxu1 %v7428_v46  ;;  %v3126_v45 = vld [vmem:[%s9044_s17 + $0x180] sm:$0xff] }
 0x3af   : > { %3033 = vmatprep.subr.bf16.mxu0 %v7430_v47  ;;  %v3130_v46 = vld [vmem:[%s9044_s17 + $0x1a0] sm:$0xff]  ;;  %v3127_v47 = vld [vmem:[%s9044_s17 + $0x188] sm:$0xff] }
 0x3b0   : > { %v7488_v51 = vcombine.high %v3126_v45, %v3130_v46  ;;  %v7487_v61 = vcombine.low %v3126_v45, %v3130_v46  ;;  %v7489_v62 = vcombine.low %v3127_v47, %v3131_v48  ;;  %v3187_v45 = vld [vmem:[%s9044_s17 + $0x368] sm:$0xff] }
 0x3b1   : > { %2952 = vmatpush1.bf16.msra.mxu1 %v7427_v54  ;;  %v7490_v54 = vcombine.high %v3127_v47, %v3131_v48 }
 0x3b2   : > { %3034 = vmatpush1.bf16.msra.mxu0 %v7429_v55  ;;  %2953 = vmatprep.subr.bf16.mxu1 %v7436_v56  ;;  %v3134_v55 = vld [vmem:[%s9044_s17 + $0x1c0] sm:$0xff] }
 0x3b3   : > { %3035 = vmatprep.subr.bf16.mxu0 %v7438_v57  ;;  %v3138_v56 = vld [vmem:[%s9044_s17 + $0x1e0] sm:$0xff]  ;;  %v3135_v57 = vld [vmem:[%s9044_s17 + $0x1c8] sm:$0xff] }
 0x3b4   : > { %v7496_v63 = vcombine.high %v3134_v55, %v3138_v56  ;;  %v7495_v4 = vcombine.low %v3134_v55, %v3138_v56  ;;  %v7497_v5 = vcombine.low %v3135_v57, %v3139_v60  ;;  %v3195_v55 = vld [vmem:[%s9044_s17 + $0x3a8] sm:$0xff] }
 0x3b5   : > { %2954 = vmatpush1.bf16.msra.mxu1 %v7435_v0  ;;  %v7498_v0 = vcombine.high %v3135_v57, %v3139_v60 }
 0x3b6   : > { %3036 = vmatpush1.bf16.msra.mxu0 %v7437_v1  ;;  %6192 = vmatprep.subr.bf16.mxu1 %v7440_v13  ;;  %v3142_v1 = vld [vmem:[%s9044_s17 + $0x200] sm:$0xff] }
 0x3b7   : > { %6356 = vmatprep.subr.bf16.mxu0 %v7442_v2  ;;  %v3146_v13 = vld [vmem:[%s9044_s17 + $0x220] sm:$0xff]  ;;  %v3143_v2 = vld [vmem:[%s9044_s17 + $0x208] sm:$0xff] }
 0x3b8   : > { %2956 = vmatmul.mubr.bf16.vlgmr.msra.gmra.mrb[8].mxu1 %v9091_v40  ;;  %v7504_v6 = vcombine.high %v3142_v1, %v3146_v13  ;;  %v7503_v15 = vcombine.low %v3142_v1, %v3146_v13  ;;  %v3203_v1 = vld [vmem:[%s9044_s17 + $0x3e8] sm:$0xff] }
 0x3b9   : > { %3038 = vmatmul.mubr.bf16.vlgmr.msra.gmra.mrb[12].mxu0 %v9091_v40  ;;  %6193 = vmatpush1.bf16.msra.mxu1 %v7439_v7  ;;  %v7457_v40 = vcombine.low %v3095_v12, %v3099_v14  ;;  %v7506_v7 = vcombine.high %v3143_v2, %v3147_v3  ;;  %v7505_v12 = vcombine.low %v3143_v2, %v3147_v3 }
 0x3ba   : > { %6357 = vmatpush1.bf16.msra.mxu0 %v7441_v8  ;;  %6194 = vmatprep.subr.bf16.mxu1 %v7448_v9  ;;  %v3150_v8 = vld [vmem:[%s9044_s17 + $0x240] sm:$0xff] }
 0x3bb   : > { %6358 = vmatprep.subr.bf16.mxu0 %v7450_v10  ;;  %v3154_v9 = vld [vmem:[%s9044_s17 + $0x260] sm:$0xff]  ;;  %v3151_v10 = vld [vmem:[%s9044_s17 + $0x248] sm:$0xff] }
 0x3bc   : > { %v7512_v14 = vcombine.high %v3150_v8, %v3154_v9  ;;  %v7511_v19 = vcombine.low %v3150_v8, %v3154_v9  ;;  %v7513_v20 = vcombine.low %v3151_v10, %v3155_v11  ;;  %v3211_v8 = vld [vmem:[%s9044_s17 + $0x428] sm:$0xff] }
 0x3bd   : > { %6195 = vmatpush1.bf16.msra.mxu1 %v7447_v16  ;;  %v7514_v16 = vcombine.high %v3151_v10, %v3155_v11 }
 0x3be   : > { %6359 = vmatpush1.bf16.msra.mxu0 %v7449_v17  ;;  %6196 = vmatprep.subr.bf16.mxu1 %v7456_v18  ;;  %v3158_v17 = vld [vmem:[%s9044_s17 + $0x280] sm:$0xff] }
 0x3bf   : > { %6360 = vmatprep.subr.bf16.mxu0 %v7458_v52  ;;  %v3162_v18 = vld [vmem:[%s9044_s17 + $0x2a0] sm:$0xff]  ;;  %v3159_v52 = vld [vmem:[%s9044_s17 + $0x288] sm:$0xff] }
 0x3c0   : > { %v7520_v21 = vcombine.high %v3158_v17, %v3162_v18  ;;  %v7519_v27 = vcombine.low %v3158_v17, %v3162_v18  ;;  %v7521_v58 = vcombine.low %v3159_v52, %v3163_v22 }
 0x3c1   : > { %6197 = vmatpush1.bf16.msra.mxu1 %v7455_v23  ;;  %v7522_v23 = vcombine.high %v3159_v52, %v3163_v22 }
 0x3c2   : > { %6361 = vmatpush1.bf16.msra.mxu0 %v7457_v40  ;;  %6198 = vmatprep.subr.bf16.mxu1 %v7464_v24  ;;  %v3166_v40 = vld [vmem:[%s9044_s17 + $0x2c0] sm:$0xff] }
 0x3c3   : > { %6362 = vmatprep.subr.bf16.mxu0 %v7466_v25  ;;  %v3170_v24 = vld [vmem:[%s9044_s17 + $0x2e0] sm:$0xff]  ;;  %v3167_v25 = vld [vmem:[%s9044_s17 + $0x2c8] sm:$0xff] }
 0x3c4   : > { %v7528_v30 = vcombine.high %v3166_v40, %v3170_v24  ;;  %v7527_v37 = vcombine.low %v3166_v40, %v3170_v24  ;;  %v7529_v38 = vcombine.low %v3167_v25, %v3171_v26 }
 0x3c5   : > { %6199 = vmatpush1.bf16.msra.mxu1 %v7463_v32  ;;  %v7530_v32 = vcombine.high %v3167_v25, %v3171_v26 }
 0x3c6   : > { %6363 = vmatpush1.bf16.msra.mxu0 %v7465_v33  ;;  %6200 = vmatprep.subr.bf16.mxu1 %v7472_v34  ;;  %v3174_v33 = vld [vmem:[%s9044_s17 + $0x300] sm:$0xff] }
 0x3c7   : > { %6364 = vmatprep.subr.bf16.mxu0 %v7474_v35  ;;  %v3178_v34 = vld [vmem:[%s9044_s17 + $0x320] sm:$0xff]  ;;  %v3175_v35 = vld [vmem:[%s9044_s17 + $0x308] sm:$0xff] }
 0x3c8   : > { %v7536_v39 = vcombine.high %v3174_v33, %v3178_v34  ;;  %v7535_v46 = vcombine.low %v3174_v33, %v3178_v34  ;;  %v7537_v47 = vcombine.low %v3175_v35, %v3179_v36  ;;  %v3214_v33 = vld [vmem:[%s9044_s17 + $0x440] sm:$0xff] }
 0x3c9   : > { %6201 = vmatpush1.bf16.msra.mxu1 %v7471_v41  ;;  %v7538_v41 = vcombine.high %v3175_v35, %v3179_v36  ;;  %v3218_v35 = vld [vmem:[%s9044_s17 + $0x460] sm:$0xff]  ;;  %v3215_v36 = vld [vmem:[%s9044_s17 + $0x448] sm:$0xff] }
 0x3ca   : > { %6365 = vmatpush1.bf16.msra.mxu0 %v7473_v42  ;;  %6202 = vmatprep.subr.bf16.mxu1 %v7480_v43  ;;  %v3182_v42 = vld [vmem:[%s9044_s17 + $0x340] sm:$0xff] }
 0x3cb   : > { %6366 = vmatprep.subr.bf16.mxu0 %v7482_v44  ;;  %v3186_v43 = vld [vmem:[%s9044_s17 + $0x360] sm:$0xff]  ;;  %v3183_v44 = vld [vmem:[%s9044_s17 + $0x348] sm:$0xff] }
 0x3cc   : > { %v7544_v48 = vcombine.high %v3182_v42, %v3186_v43  ;;  %v7543_v56 = vcombine.low %v3182_v42, %v3186_v43  ;;  %v7545_v57 = vcombine.low %v3183_v44, %v3187_v45 }
 0x3cd   : > { %6203 = vmatpush1.bf16.msra.mxu1 %v7479_v49  ;;  %v7546_v49 = vcombine.high %v3183_v44, %v3187_v45  ;;  %v3222_v44 = vld [vmem:[%s9044_s17 + $0x480] sm:$0xff]  ;;  %v7576_v45 = vcombine.high %v3214_v33, %v3218_v35 }
 0x3ce   : > { %6367 = vmatpush1.bf16.msra.mxu0 %v7481_v50  ;;  %6204 = vmatprep.subr.bf16.mxu1 %v7488_v51  ;;  %v3190_v50 = vld [vmem:[%s9044_s17 + $0x380] sm:$0xff] }
 0x3cf   : > { %6368 = vmatprep.subr.bf16.mxu0 %v7490_v54  ;;  %v3194_v51 = vld [vmem:[%s9044_s17 + $0x3a0] sm:$0xff]  ;;  %v3191_v54 = vld [vmem:[%s9044_s17 + $0x388] sm:$0xff] }
 0x3d0   : > { %v7552_v60 = vcombine.high %v3190_v50, %v3194_v51  ;;  %v7551_v13 = vcombine.low %v3190_v50, %v3194_v51  ;;  %v7553_v2 = vcombine.low %v3191_v54, %v3195_v55  ;;  %v7575_v51 = vcombine.low %v3214_v33, %v3218_v35 }
 0x3d1   : > { %6205 = vmatpush1.bf16.msra.mxu1 %v7487_v61  ;;  %v7554_v61 = vcombine.high %v3191_v54, %v3195_v55 }
 0x3d2   : > { %6369 = vmatpush1.bf16.msra.mxu0 %v7489_v62  ;;  %6206 = vmatprep.subr.bf16.mxu1 %v7496_v63  ;;  %v3198_v62 = vld [vmem:[%s9044_s17 + $0x3c0] sm:$0xff] }
 0x3d3   : > { %6370 = vmatprep.subr.bf16.mxu0 %v7498_v0  ;;  %v3202_v63 = vld [vmem:[%s9044_s17 + $0x3e0] sm:$0xff]  ;;  %v3199_v0 = vld [vmem:[%s9044_s17 + $0x3c8] sm:$0xff] }
 0x3d4   : > { %v7560_v3 = vcombine.high %v3198_v62, %v3202_v63  ;;  %v7559_v9 = vcombine.low %v3198_v62, %v3202_v63  ;;  %v7561_v10 = vcombine.low %v3199_v0, %v3203_v1  ;;  %v3235_v62 = vld [vmem:[%s9044_s17 + $0x4e8] sm:$0xff] }
 0x3d5   : > { %6207 = vmatpush1.bf16.msra.mxu1 %v7495_v4  ;;  %v7562_v4 = vcombine.high %v3199_v0, %v3203_v1 }
 0x3d6   : > { %6371 = vmatpush1.bf16.msra.mxu0 %v7497_v5  ;;  %6208 = vmatprep.subr.bf16.mxu1 %v7504_v6  ;;  %v3206_v5 = vld [vmem:[%s9044_s17 + $0x400] sm:$0xff] }
 0x3d7   : > { %6372 = vmatprep.subr.bf16.mxu0 %v7506_v7  ;;  %v3210_v6 = vld [vmem:[%s9044_s17 + $0x420] sm:$0xff]  ;;  %v3207_v7 = vld [vmem:[%s9044_s17 + $0x408] sm:$0xff] }
 0x3d8   : > { %v7568_v11 = vcombine.high %v3206_v5, %v3210_v6  ;;  %v7569_v42 = vcombine.low %v3207_v7, %v3211_v8 }
 0x3d9   : > { %6209 = vmatpush1.bf16.msra.mxu1 %v7503_v15  ;;  %v7570_v15 = vcombine.high %v3207_v7, %v3211_v8 }
 0x3da   : > { %6373 = vmatpush1.bf16.msra.mxu0 %v7505_v12  ;;  %6210 = vmatprep.subr.bf16.mxu1 %v7512_v14  ;;  %v9171_v12 = vld [vmem:[#allocation13] sm:$0xff] }
 0x3db   : > { %6374 = vmatprep.subr.bf16.mxu0 %v7514_v16  ;;  %v1401_v14 = vrot.slane %v9171_v12, %v9053_v29  ;;  %v1405_v16 = vrot.slane %v9171_v12, %v9056_v31  ;;  %v1413_v17 = vrot.slane %v9171_v12, %v9063_v53 }
 0x3dd   : > { %6211 = vmatpush1.bf16.msra.mxu1 %v7511_v19 }
 0x3de   : > { %6375 = vmatpush1.bf16.msra.mxu0 %v7513_v20  ;;  %6212 = vmatprep.subr.bf16.mxu1 %v7520_v21 }
 0x3df   : > { %6376 = vmatprep.subr.bf16.mxu0 %v7522_v23 }
 0x3e1   : > { %6213 = vmatpush1.bf16.msra.mxu1 %v7519_v27 }
 0x3e2   : > { %6377 = vmatpush1.bf16.msra.mxu0 %v7521_v58  ;;  %6214 = vmatprep.subr.bf16.mxu1 %v7528_v30 }
 0x3e3   : > { %6378 = vmatprep.subr.bf16.mxu0 %v7530_v32 }
 0x3e5   : > { %6215 = vmatpush1.bf16.msra.mxu1 %v7527_v37  ;;  %v3219_v37 = vld [vmem:[%s9044_s17 + $0x468] sm:$0xff] }
 0x3e6   : > { %6379 = vmatpush1.bf16.msra.mxu0 %v7529_v38  ;;  %6216 = vmatprep.subr.bf16.mxu1 %v7536_v39  ;;  %v7577_v54 = vcombine.low %v3215_v36, %v3219_v37 }
 0x3e7   : > { %6380 = vmatprep.subr.bf16.mxu0 %v7538_v41  ;;  %v7567_v41 = vcombine.low %v3206_v5, %v3210_v6  ;;  %v3243_v5 = vld [vmem:[%s9044_s17 + $0x528] sm:$0xff] }
 0x3e9   : > { %6217 = vmatpush1.bf16.msra.mxu1 %v7535_v46  ;;  %v7578_v46 = vcombine.high %v3215_v36, %v3219_v37  ;;  %v3270_v37 = vld [vmem:[%s9044_s17 + $0x600] sm:$0xff] }
 0x3ea   : > { %6381 = vmatpush1.bf16.msra.mxu0 %v7537_v47  ;;  %6218 = vmatprep.subr.bf16.mxu1 %v7544_v48  ;;  %v3226_v47 = vld [vmem:[%s9044_s17 + $0x4a0] sm:$0xff]  ;;  %v3223_v48 = vld [vmem:[%s9044_s17 + $0x488] sm:$0xff] }
 0x3eb   : > { %6382 = vmatprep.subr.bf16.mxu0 %v7546_v49  ;;  %v3227_v49 = vld [vmem:[%s9044_s17 + $0x4a8] sm:$0xff]  ;;  %v7584_v55 = vcombine.high %v3222_v44, %v3226_v47  ;;  %v7583_v63 = vcombine.low %v3222_v44, %v3226_v47 }
 0x3ec   : > { %v7585_v0 = vcombine.low %v3223_v48, %v3227_v49 }
 0x3ed   : > { %6219 = vmatpush1.bf16.msra.mxu1 %v7543_v56  ;;  %v7586_v56 = vcombine.high %v3223_v48, %v3227_v49  ;;  %v3278_v48 = vld [vmem:[%s9044_s17 + $0x640] sm:$0xff] }
 0x3ee   : > { %6383 = vmatpush1.bf16.msra.mxu0 %v7545_v57  ;;  %6220 = vmatprep.subr.bf16.mxu1 %v7552_v60  ;;  %v3230_v57 = vld [vmem:[%s9044_s17 + $0x4c0] sm:$0xff] }
 0x3ef   : > { %6384 = vmatprep.subr.bf16.mxu0 %v7554_v61  ;;  %v3234_v60 = vld [vmem:[%s9044_s17 + $0x4e0] sm:$0xff]  ;;  %v3231_v61 = vld [vmem:[%s9044_s17 + $0x4c8] sm:$0xff] }
 0x3f0   : > { %v7592_v1 = vcombine.high %v3230_v57, %v3234_v60  ;;  %v7591_v6 = vcombine.low %v3230_v57, %v3234_v60  ;;  %v7593_v7 = vcombine.low %v3231_v61, %v3235_v62  ;;  %v3282_v49 = vld [vmem:[%s9044_s17 + $0x660] sm:$0xff] }
 0x3f1   : > { %6221 = vmatpush1.bf16.msra.mxu1 %v7551_v13  ;;  %v7594_v13 = vcombine.high %v3231_v61, %v3235_v62  ;;  %v7640_v57 = vcombine.high %v3278_v48, %v3282_v49  ;;  %v3286_v61 = vld [vmem:[%s9044_s17 + $0x680] sm:$0xff] }
 0x3f2   : > { %6385 = vmatpush1.bf16.msra.mxu0 %v7553_v2  ;;  %6222 = vmatprep.subr.bf16.mxu1 %v7560_v3  ;;  %v3238_v2 = vld [vmem:[%s9044_s17 + $0x500] sm:$0xff] }
 0x3f3   : > { %6386 = vmatprep.subr.bf16.mxu0 %v7562_v4  ;;  %v3242_v3 = vld [vmem:[%s9044_s17 + $0x520] sm:$0xff]  ;;  %v3239_v4 = vld [vmem:[%s9044_s17 + $0x508] sm:$0xff] }
 0x3f4   : > { %v7600_v8 = vcombine.high %v3238_v2, %v3242_v3  ;;  %v3290_v62 = vld [vmem:[%s9044_s17 + $0x6a0] sm:$0xff] }
 0x3f5   : > { %6223 = vmatpush1.bf16.msra.mxu1 %v7559_v9  ;;  %v7602_v9 = vcombine.high %v3239_v4, %v3243_v5 }
 0x3f6   : > { %6387 = vmatpush1.bf16.msra.mxu0 %v7561_v10  ;;  %6233 = vmatprep.subr.bf16.mxu1 %v7568_v11  ;;  %v3246_v10 = vld [vmem:[%s9044_s17 + $0x540] sm:$0xff] }
 0x3f7   : > { %6397 = vmatprep.subr.bf16.mxu0 %v7570_v15  ;;  %v3250_v11 = vld [vmem:[%s9044_s17 + $0x560] sm:$0xff]  ;;  %v3247_v15 = vld [vmem:[%s9044_s17 + $0x548] sm:$0xff] }
 0x40b   : > { %v2793_v18 = vpop.f32.mrb[4].mxu1  ;;  %v9179_v52 = vpop.f32.mrb[8].mxu0 }
 0x40c   : > { %v7959_v22 = vadd.f32 %v2793_v18, %v1401_v14  ;;  %v2795_v19 = vpop.f32.mrb[5].mxu1  ;;  %v2877_v20 = vpop.f32.mrb[9].mxu0  ;;  %v3251_v14 = vld [vmem:[%s9044_s17 + $0x568] sm:$0xff]  ;;  %v7608_v18 = vcombine.high %v3246_v10, %v3250_v11 }
 0x40d   : > { %v7960_v21 = vadd.f32 %v2795_v19, %v1405_v16  ;;  %v7962_v23 = vadd.f32 %v2877_v20, %v1413_v17  ;;  %v2797_v40 = vpop.f32.mrb[6].mxu1  ;;  %v2879_v24 = vpop.f32.mrb[10].mxu0  ;;  %v7599_v16 = vcombine.low %v3238_v2, %v3242_v3  ;;  %v7601_v17 = vcombine.low %v3239_v4, %v3243_v5  ;;  %v3254_v19 = vld [vmem:[%s9044_s17 + $0x580] sm:$0xff] }
 0x40e   : > { %vm3046_vm8 = vcmp.gt.f32.partialorder %v7959_v22, 0.0  ;;  %v3054_v25 = vmul.f32 0.01, %v7959_v22  ;;  %v2798_v30 = vpop.f32.mrb[7].mxu1  ;;  %v2880_v32 = vpop.f32.mrb[11].mxu0  ;;  %v3258_v20 = vld [vmem:[%s9044_s17 + $0x5a0] sm:$0xff]  ;;  %v7607_v40 = vcombine.low %v3246_v10, %v3250_v11  ;;  %v7609_v24 = vcombine.low %v3247_v15, %v3251_v14 }
 0x40f   : > { %vm3047_vm9 = vcmp.gt.f32.partialorder %v7960_v21, 0.0  ;;  %v3055_v26 = vmul.f32 0.01, %v7960_v21  ;;  %vm3049_vm10 = vcmp.gt.f32.partialorder %v7962_v23, 0.0  ;;  %v3057_v27 = vmul.f32 0.01, %v7962_v23 }
 0x410   : > { %v3062_v58 = vsel %vm3046_vm8, %v7959_v22, %v3054_v25  ;;  %v7610_v22 = vcombine.high %v3247_v15, %v3251_v14  ;;  %v7616_v25 = vcombine.high %v3254_v19, %v3258_v20  ;;  %v3263_v30 = vld [vmem:[%s9044_s17 + $0x5c8] sm:$0xff]  ;;  %v7615_v33 = vcombine.low %v3254_v19, %v3258_v20  ;;  %v3294_v4 = vld [vmem:[%s9044_s17 + $0x6c0] sm:$0xff] }
 0x411   : > { %v3063_v34 = vsel %vm3047_vm9, %v7960_v21, %v3055_v26  ;;  %v3065_v39 = vsel %vm3049_vm10, %v7962_v23, %v3057_v27  ;;  %v9187_v43 = vpack.c.bf16 %v3062_v58, %v3062_v58  ;;  %v3255_v21 = vld [vmem:[%s9044_s17 + $0x588] sm:$0xff]  ;;  %v3262_v27 = vld [vmem:[%s9044_s17 + $0x5c0] sm:$0xff]  ;;  %v7648_v2 = vcombine.high %v3286_v61, %v3290_v62 }
 0x412   : > { %v9185_v38 = vpack.c.bf16 %v3063_v34, %v3063_v34  ;;  %v9195_v50 = vpack.c.bf16 %v3065_v39, %v3065_v39  ;;  %v3259_v23 = vld [vmem:[%s9044_s17 + $0x5a8] sm:$0xff]  ;;  %v3266_v58 = vld [vmem:[%s9044_s17 + $0x5e0] sm:$0xff] }
 0x413   : > { %v7618_v26 = vcombine.high %v3255_v21, %v3259_v23  ;;  %v3267_v32 = vld [vmem:[%s9044_s17 + $0x5e8] sm:$0xff]  ;;  %v7617_v34 = vcombine.low %v3255_v21, %v3259_v23  ;;  %v7624_v35 = vcombine.high %v3262_v27, %v3266_v58  ;;  %v3274_v39 = vld [vmem:[%s9044_s17 + $0x620] sm:$0xff]  ;;  %v7623_v44 = vcombine.low %v3262_v27, %v3266_v58 }
 0x414   : > { %6224 = vmatprep.mubr.bf16.mxu1 %v9185_v38  ;;  %6388 = vmatprep.mubr.bf16.mxu0 %v9185_v38  ;;  %v7626_v36 = vcombine.high %v3263_v30, %v3267_v32  ;;  %v3298_v5 = vld [vmem:[%s9044_s17 + $0x6e0] sm:$0xff] }
 0x415   : > { %6225 = vmatmul.mubr.bf16.vlgmr.msra.gmra.mrb[12].mxu1 %v9187_v43  ;;  %6389 = vmatmul.mubr.bf16.vlgmr.msra.gmra.mrb[16].mxu0 %v9187_v43  ;;  %v7656_v10 = vcombine.high %v3294_v4, %v3298_v5  ;;  %v3302_v15 = vld [vmem:[%s9044_s17 + $0x700] sm:$0xff] }
 0x416   : > { %6234 = vmatpush1.bf16.msra.mxu1 %v7567_v41  ;;  %6398 = vmatpush1.bf16.msra.mxu0 %v7569_v42  ;;  %v3271_v41 = vld [vmem:[%s9044_s17 + $0x608] sm:$0xff]  ;;  %v3306_v14 = vld [vmem:[%s9044_s17 + $0x720] sm:$0xff] }
 0x417   : > { %6265 = vmatprep.mubr.bf16.mxu1 %v9195_v50  ;;  %6429 = vmatprep.mubr.bf16.mxu0 %v9195_v50  ;;  %v3275_v42 = vld [vmem:[%s9044_s17 + $0x628] sm:$0xff]  ;;  %v7664_v19 = vcombine.high %v3302_v15, %v3306_v14  ;;  %v3310_v21 = vld [vmem:[%s9044_s17 + $0x740] sm:$0xff] }
 0x418   : > { %6235 = vmatprep.subr.bf16.mxu1 %v7576_v45  ;;  %6399 = vmatprep.subr.bf16.mxu0 %v7578_v46  ;;  %v7625_v45 = vcombine.low %v3263_v30, %v3267_v32  ;;  %v7632_v46 = vcombine.high %v3270_v37, %v3274_v39  ;;  %v7634_v47 = vcombine.high %v3271_v41, %v3275_v42  ;;  %v3314_v23 = vld [vmem:[%s9044_s17 + $0x760] sm:$0xff] }
 0x419   : > { %v7672_v27 = vcombine.high %v3310_v21, %v3314_v23  ;;  %v3318_v30 = vld [vmem:[%s9044_s17 + $0x780] sm:$0xff]  ;;  %v1409_v32 = vrot.slane %v9171_v12, %v9086_v59 }
 0x41a   : > { %6236 = vmatpush1.bf16.msra.mxu1 %v7575_v51  ;;  %6400 = vmatpush1.bf16.msra.mxu0 %v7577_v54  ;;  %v3279_v51 = vld [vmem:[%s9044_s17 + $0x648] sm:$0xff] }
 0x41b   : > { %6237 = vmatprep.subr.bf16.mxu1 %v7584_v55  ;;  %6401 = vmatprep.subr.bf16.mxu0 %v7586_v56  ;;  %v3283_v54 = vld [vmem:[%s9044_s17 + $0x668] sm:$0xff]  ;;  %v7631_v55 = vcombine.low %v3270_v37, %v3274_v39  ;;  %v7633_v56 = vcombine.low %v3271_v41, %v3275_v42  ;;  %v3326_v42 = vld [vmem:[%s9044_s17 + $0x7c0] sm:$0xff] }
 0x41c   : > { %v7642_v60 = vcombine.high %v3279_v51, %v3283_v54 }
 0x41e   : > { %6238 = vmatpush1.bf16.msra.mxu1 %v7583_v63  ;;  %6402 = vmatpush1.bf16.msra.mxu0 %v7585_v0  ;;  %v3287_v63 = vld [vmem:[%s9044_s17 + $0x688] sm:$0xff] }
 0x41f   : > { %6239 = vmatprep.subr.bf16.mxu1 %v7592_v1  ;;  %6403 = vmatprep.subr.bf16.mxu0 %v7594_v13  ;;  %v3291_v0 = vld [vmem:[%s9044_s17 + $0x6a8] sm:$0xff]  ;;  %v7639_v1 = vcombine.low %v3278_v48, %v3282_v49  ;;  %v7641_v13 = vcombine.low %v3279_v51, %v3283_v54 }
 0x420   : > { %v7650_v3 = vcombine.high %v3287_v63, %v3291_v0 }
 0x422   : > { %6240 = vmatpush1.bf16.msra.mxu1 %v7591_v6  ;;  %6404 = vmatpush1.bf16.msra.mxu0 %v7593_v7  ;;  %v3295_v6 = vld [vmem:[%s9044_s17 + $0x6c8] sm:$0xff] }
 0x423   : > { %6241 = vmatprep.subr.bf16.mxu1 %v7600_v8  ;;  %6405 = vmatprep.subr.bf16.mxu0 %v7602_v9  ;;  %v3299_v7 = vld [vmem:[%s9044_s17 + $0x6e8] sm:$0xff]  ;;  %v7647_v8 = vcombine.low %v3286_v61, %v3290_v62  ;;  %v7649_v9 = vcombine.low %v3287_v63, %v3291_v0 }
 0x424   : > { %v7658_v11 = vcombine.high %v3295_v6, %v3299_v7 }
 0x426   : > { %6242 = vmatpush1.bf16.msra.mxu1 %v7599_v16  ;;  %6406 = vmatpush1.bf16.msra.mxu0 %v7601_v17  ;;  %v3303_v16 = vld [vmem:[%s9044_s17 + $0x708] sm:$0xff] }
 0x427   : > { %6243 = vmatprep.subr.bf16.mxu1 %v7608_v18  ;;  %6407 = vmatprep.subr.bf16.mxu0 %v7610_v22  ;;  %v3307_v17 = vld [vmem:[%s9044_s17 + $0x728] sm:$0xff]  ;;  %v7655_v18 = vcombine.low %v3294_v4, %v3298_v5  ;;  %v7657_v22 = vcombine.low %v3295_v6, %v3299_v7 }
 0x428   : > { %v7666_v20 = vcombine.high %v3303_v16, %v3307_v17  ;;  %v3347_v4 = vld [vmem:[%s9044_s17 + $0x868] sm:$0xff] }
 0x42a   : > { %6244 = vmatpush1.bf16.msra.mxu1 %v7607_v40  ;;  %6408 = vmatpush1.bf16.msra.mxu0 %v7609_v24  ;;  %v3311_v40 = vld [vmem:[%s9044_s17 + $0x748] sm:$0xff] }
 0x42b   : > { %6245 = vmatprep.subr.bf16.mxu1 %v7616_v25  ;;  %6409 = vmatprep.subr.bf16.mxu0 %v7618_v26  ;;  %v3315_v24 = vld [vmem:[%s9044_s17 + $0x768] sm:$0xff]  ;;  %v7663_v25 = vcombine.low %v3302_v15, %v3306_v14  ;;  %v7665_v26 = vcombine.low %v3303_v16, %v3307_v17 }
 0x42c   : > { %v7674_v58 = vcombine.high %v3311_v40, %v3315_v24  ;;  %v7673_v37 = vcombine.low %v3311_v40, %v3315_v24  ;;  %v3351_v15 = vld [vmem:[%s9044_s17 + $0x888] sm:$0xff] }
 0x42d   : > { %v3355_v14 = vld [vmem:[%s9044_s17 + $0x8a8] sm:$0xff] }
 0x42e   : > { %6246 = vmatpush1.bf16.msra.mxu1 %v7615_v33  ;;  %6410 = vmatpush1.bf16.msra.mxu0 %v7617_v34  ;;  %v3322_v33 = vld [vmem:[%s9044_s17 + $0x7a0] sm:$0xff]  ;;  %v3319_v34 = vld [vmem:[%s9044_s17 + $0x788] sm:$0xff]  ;;  %v7713_v24 = vcombine.low %v3351_v15, %v3355_v14 }
 0x42f   : > { %6247 = vmatprep.subr.bf16.mxu1 %v7624_v35  ;;  %6411 = vmatprep.subr.bf16.mxu0 %v7626_v36  ;;  %v3323_v35 = vld [vmem:[%s9044_s17 + $0x7a8] sm:$0xff]  ;;  %v7671_v36 = vcombine.low %v3310_v21, %v3314_v23  ;;  %v7680_v39 = vcombine.high %v3318_v30, %v3322_v33  ;;  %v7679_v48 = vcombine.low %v3318_v30, %v3322_v33 }
 0x430   : > { %v7682_v41 = vcombine.high %v3319_v34, %v3323_v35  ;;  %v7681_v49 = vcombine.low %v3319_v34, %v3323_v35  ;;  %v3359_v21 = vld [vmem:[%s9044_s17 + $0x8c8] sm:$0xff] }
 0x431   : > { %v3363_v23 = vld [vmem:[%s9044_s17 + $0x8e8] sm:$0xff] }
 0x432   : > { %6248 = vmatpush1.bf16.msra.mxu1 %v7623_v44  ;;  %6412 = vmatpush1.bf16.msra.mxu0 %v7625_v45  ;;  %v7961_v44 = vadd.f32 %v9179_v52, %v1409_v32  ;;  %v3330_v45 = vld [vmem:[%s9044_s17 + $0x7e0] sm:$0xff]  ;;  %v3335_v52 = vld [vmem:[%s9044_s17 + $0x808] sm:$0xff]  ;;  %v7721_v34 = vcombine.low %v3359_v21, %v3363_v23 }
 0x433   : > { %6249 = vmatprep.subr.bf16.mxu1 %v7632_v46  ;;  %6413 = vmatprep.subr.bf16.mxu0 %v7634_v47  ;;  %v3327_v46 = vld [vmem:[%s9044_s17 + $0x7c8] sm:$0xff]  ;;  %v7688_v51 = vcombine.high %v3326_v42, %v3330_v45  ;;  %v7687_v61 = vcombine.low %v3326_v42, %v3330_v45 }
 0x434   : > { %v3331_v47 = vld [vmem:[%s9044_s17 + $0x7e8] sm:$0xff]  ;;  %vm3048_vm11 = vcmp.gt.f32.partialorder %v7961_v44, 0.0 }
 0x435   : > { %v7690_v54 = vcombine.high %v3327_v46, %v3331_v47  ;;  %v7689_v62 = vcombine.low %v3327_v46, %v3331_v47  ;;  %v3367_v30 = vld [vmem:[%s9044_s17 + $0x908] sm:$0xff] }
 0x436   : > { %6250 = vmatpush1.bf16.msra.mxu1 %v7631_v55  ;;  %6414 = vmatpush1.bf16.msra.mxu0 %v7633_v56  ;;  %v3334_v55 = vld [vmem:[%s9044_s17 + $0x800] sm:$0xff]  ;;  %v3056_v56 = vmul.f32 0.01, %v7961_v44  ;;  %v3371_v32 = vld [vmem:[%s9044_s17 + $0x928] sm:$0xff] }
 0x437   : > { %6251 = vmatprep.subr.bf16.mxu1 %v7640_v57  ;;  %6415 = vmatprep.subr.bf16.mxu0 %v7642_v60  ;;  %v3338_v57 = vld [vmem:[%s9044_s17 + $0x820] sm:$0xff]  ;;  %v3339_v60 = vld [vmem:[%s9044_s17 + $0x828] sm:$0xff]  ;;  %v7729_v45 = vcombine.low %v3367_v30, %v3371_v32 }
 0x438   : > { %v7696_v63 = vcombine.high %v3334_v55, %v3338_v57  ;;  %v7698_v0 = vcombine.high %v3335_v52, %v3339_v60  ;;  %v7695_v5 = vcombine.low %v3334_v55, %v3338_v57  ;;  %v7697_v6 = vcombine.low %v3335_v52, %v3339_v60  ;;  %v3379_v42 = vld [vmem:[%s9044_s17 + $0x968] sm:$0xff]  ;;  %v3390_v60 = vld [vmem:[%s9044_s17 + $0x9c0] sm:$0xff] }
 0x43a   : > { %6252 = vmatpush1.bf16.msra.mxu1 %v7639_v1  ;;  %6416 = vmatpush1.bf16.msra.mxu0 %v7641_v13  ;;  %v3342_v1 = vld [vmem:[%s9044_s17 + $0x840] sm:$0xff]  ;;  %v3064_v13 = vsel %vm3048_vm11, %v7961_v44, %v3056_v56 }
 0x43b   : > { %6253 = vmatprep.subr.bf16.mxu1 %v7648_v2  ;;  %6417 = vmatprep.subr.bf16.mxu0 %v7650_v3  ;;  %v3346_v2 = vld [vmem:[%s9044_s17 + $0x860] sm:$0xff]  ;;  %v3343_v3 = vld [vmem:[%s9044_s17 + $0x848] sm:$0xff]  ;;  %v9264_v7 = vpack.c.bf16 %v3064_v13, %v3064_v13 }
 0x43c   : > { %v7703_v16 = vcombine.low %v3342_v1, %v3346_v2  ;;  %v7705_v17 = vcombine.low %v3343_v3, %v3347_v4 }
 0x43e   : > { %6254 = vmatpush1.bf16.msra.mxu1 %v7647_v8  ;;  %6418 = vmatpush1.bf16.msra.mxu0 %v7649_v9  ;;  %v7704_v8 = vcombine.high %v3342_v1, %v3346_v2  ;;  %v7706_v9 = vcombine.high %v3343_v3, %v3347_v4  ;;  %v3398_v3 = vld [vmem:[%s9044_s17 + $0xa00] sm:$0xff] }
 0x43f   : > { %6255 = vmatprep.subr.bf16.mxu1 %v7656_v10  ;;  %6419 = vmatprep.subr.bf16.mxu0 %v7658_v11  ;;  %v3350_v10 = vld [vmem:[%s9044_s17 + $0x880] sm:$0xff] }
 0x440   : > { %v3354_v11 = vld [vmem:[%s9044_s17 + $0x8a0] sm:$0xff] }
 0x441   : > { %v7711_v40 = vcombine.low %v3350_v10, %v3354_v11  ;;  %v3402_v4 = vld [vmem:[%s9044_s17 + $0xa20] sm:$0xff] }
 0x442   : > { %6256 = vmatpush1.bf16.msra.mxu1 %v7655_v18  ;;  %6420 = vmatpush1.bf16.msra.mxu0 %v7657_v22  ;;  %v7712_v18 = vcombine.high %v3350_v10, %v3354_v11  ;;  %v7714_v22 = vcombine.high %v3351_v15, %v3355_v14  ;;  %v7760_v10 = vcombine.high %v3398_v3, %v3402_v4  ;;  %v3406_v15 = vld [vmem:[%s9044_s17 + $0xa40] sm:$0xff] }
 0x443   : > { %6257 = vmatprep.subr.bf16.mxu1 %v7664_v19  ;;  %6421 = vmatprep.subr.bf16.mxu0 %v7666_v20  ;;  %v3358_v19 = vld [vmem:[%s9044_s17 + $0x8c0] sm:$0xff] }
 0x444   : > { %v3362_v20 = vld [vmem:[%s9044_s17 + $0x8e0] sm:$0xff] }
 0x445   : > { %v7719_v33 = vcombine.low %v3358_v19, %v3362_v20  ;;  %v3410_v14 = vld [vmem:[%s9044_s17 + $0xa60] sm:$0xff] }
 0x446   : > { %6258 = vmatpush1.bf16.msra.mxu1 %v7663_v25  ;;  %6422 = vmatpush1.bf16.msra.mxu0 %v7665_v26  ;;  %v7720_v25 = vcombine.high %v3358_v19, %v3362_v20  ;;  %v7722_v26 = vcombine.high %v3359_v21, %v3363_v23  ;;  %v7768_v19 = vcombine.high %v3406_v15, %v3410_v14  ;;  %v3414_v21 = vld [vmem:[%s9044_s17 + $0xa80] sm:$0xff] }
 0x447   : > { %6259 = vmatprep.subr.bf16.mxu1 %v7672_v27  ;;  %6423 = vmatprep.subr.bf16.mxu0 %v7674_v58  ;;  %v3366_v27 = vld [vmem:[%s9044_s17 + $0x900] sm:$0xff] }
 0x448   : > { %v3370_v58 = vld [vmem:[%s9044_s17 + $0x920] sm:$0xff] }
 0x449   : > { %v7728_v35 = vcombine.high %v3366_v27, %v3370_v58  ;;  %v7727_v44 = vcombine.low %v3366_v27, %v3370_v58  ;;  %v3418_v23 = vld [vmem:[%s9044_s17 + $0xaa0] sm:$0xff] }
 0x44a   : > { %6260 = vmatpush1.bf16.msra.mxu1 %v7671_v36  ;;  %6424 = vmatpush1.bf16.msra.mxu0 %v7673_v37  ;;  %v7730_v36 = vcombine.high %v3367_v30, %v3371_v32  ;;  %v3374_v37 = vld [vmem:[%s9044_s17 + $0x940] sm:$0xff]  ;;  %v7776_v27 = vcombine.high %v3414_v21, %v3418_v23 }
 0x44b   : > { %6261 = vmatprep.subr.bf16.mxu1 %v7680_v39  ;;  %6425 = vmatprep.subr.bf16.mxu0 %v7682_v41  ;;  %v3378_v39 = vld [vmem:[%s9044_s17 + $0x960] sm:$0xff]  ;;  %v3375_v41 = vld [vmem:[%s9044_s17 + $0x948] sm:$0xff] }
 0x44c   : > { %v7736_v46 = vcombine.high %v3374_v37, %v3378_v39  ;;  %v7738_v47 = vcombine.high %v3375_v41, %v3379_v42  ;;  %v7735_v55 = vcombine.low %v3374_v37, %v3378_v39  ;;  %v7737_v56 = vcombine.low %v3375_v41, %v3379_v42  ;;  %v3422_v30 = vld [vmem:[%s9044_s17 + $0xac0] sm:$0xff] }
 0x44d   : > { %v3426_v32 = vld [vmem:[%s9044_s17 + $0xae0] sm:$0xff] }
 0x44e   : > { %6262 = vmatpush1.bf16.msra.mxu1 %v7679_v48  ;;  %6426 = vmatpush1.bf16.msra.mxu0 %v7681_v49  ;;  %v3382_v48 = vld [vmem:[%s9044_s17 + $0x980] sm:$0xff]  ;;  %v7784_v37 = vcombine.high %v3422_v30, %v3426_v32 }
 0x44f   : > { %6263 = vmatprep.subr.bf16.mxu1 %v7688_v51  ;;  %6427 = vmatprep.subr.bf16.mxu0 %v7690_v54  ;;  %v3386_v49 = vld [vmem:[%s9044_s17 + $0x9a0] sm:$0xff]  ;;  %v3383_v51 = vld [vmem:[%s9044_s17 + $0x988] sm:$0xff] }
 0x450   : > { %v3387_v54 = vld [vmem:[%s9044_s17 + $0x9a8] sm:$0xff]  ;;  %v7744_v57 = vcombine.high %v3382_v48, %v3386_v49  ;;  %v3430_v41 = vld [vmem:[%s9044_s17 + $0xb00] sm:$0xff] }
 0x451   : > { %v7746_v52 = vcombine.high %v3383_v51, %v3387_v54  ;;  %v7745_v1 = vcombine.low %v3383_v51, %v3387_v54  ;;  %v3434_v42 = vld [vmem:[%s9044_s17 + $0xb20] sm:$0xff] }
 0x452   : > { %6264 = vmatpush1.bf16.msra.mxu1 %v7687_v61  ;;  %6428 = vmatpush1.bf16.msra.mxu0 %v7689_v62  ;;  %v3394_v61 = vld [vmem:[%s9044_s17 + $0x9e0] sm:$0xff]  ;;  %v3391_v62 = vld [vmem:[%s9044_s17 + $0x9c8] sm:$0xff] }
 0x453   : > { %6274 = vmatprep.subr.bf16.mxu1 %v7696_v63  ;;  %6438 = vmatprep.subr.bf16.mxu0 %v7698_v0  ;;  %v3395_v63 = vld [vmem:[%s9044_s17 + $0x9e8] sm:$0xff]  ;;  %v7743_v0 = vcombine.low %v3382_v48, %v3386_v49  ;;  %v7752_v13 = vcombine.high %v3390_v60, %v3394_v61  ;;  %v7792_v48 = vcombine.high %v3430_v41, %v3434_v42  ;;  %v3438_v51 = vld [vmem:[%s9044_s17 + $0xb40] sm:$0xff] }
 0x454   : > { %v7754_v2 = vcombine.high %v3391_v62, %v3395_v63  ;;  %v3442_v54 = vld [vmem:[%s9044_s17 + $0xb60] sm:$0xff] }
 0x455   : > { %6266 = vmatmul.mubr.bf16.vlgmr.msra.gmra.mrb[12].mxu1 %v9264_v7  ;;  %6430 = vmatmul.mubr.bf16.vlgmr.msra.gmra.mrb[16].mxu0 %v9264_v7 }
 0x456   : > { %6275 = vmatpush1.bf16.msra.mxu1 %v7695_v5  ;;  %6439 = vmatpush1.bf16.msra.mxu0 %v7697_v6  ;;  %v3399_v5 = vld [vmem:[%s9044_s17 + $0xa08] sm:$0xff] }
 0x457   : > { %6276 = vmatprep.subr.bf16.mxu1 %v7704_v8  ;;  %6440 = vmatprep.subr.bf16.mxu0 %v7706_v9  ;;  %v3403_v6 = vld [vmem:[%s9044_s17 + $0xa28] sm:$0xff]  ;;  %v7751_v8 = vcombine.low %v3390_v60, %v3394_v61  ;;  %v7753_v9 = vcombine.low %v3391_v62, %v3395_v63  ;;  %v7800_v60 = vcombine.high %v3438_v51, %v3442_v54  ;;  %v3446_v62 = vld [vmem:[%s9044_s17 + $0xb80] sm:$0xff]  ;;  %v1416_v63 = vsub.s32 4, %v9050_v28 }
 0x458   : > { %v7762_v11 = vcombine.high %v3399_v5, %v3403_v6 }
 0x45a   : > { %6277 = vmatpush1.bf16.msra.mxu1 %v7703_v16  ;;  %6441 = vmatpush1.bf16.msra.mxu0 %v7705_v17  ;;  %v3407_v16 = vld [vmem:[%s9044_s17 + $0xa48] sm:$0xff] }
 0x45b   : > { %6278 = vmatprep.subr.bf16.mxu1 %v7712_v18  ;;  %6442 = vmatprep.subr.bf16.mxu0 %v7714_v22  ;;  %v3411_v17 = vld [vmem:[%s9044_s17 + $0xa68] sm:$0xff]  ;;  %v7759_v18 = vcombine.low %v3398_v3, %v3402_v4  ;;  %v7761_v22 = vcombine.low %v3399_v5, %v3403_v6  ;;  %v7799_v3 = vcombine.low %v3438_v51, %v3442_v54  ;;  %v1428_v5 = vsub.s32 7, %v9050_v28  ;;  %v3474_v54 = vld [vmem:[%s9044_s17 + $0xc60] sm:$0xff] }
 0x45c   : > { %v7770_v20 = vcombine.high %v3407_v16, %v3411_v17 }
 0x45e   : > { %6279 = vmatpush1.bf16.msra.mxu1 %v7711_v40  ;;  %6443 = vmatpush1.bf16.msra.mxu0 %v7713_v24  ;;  %v3415_v40 = vld [vmem:[%s9044_s17 + $0xa88] sm:$0xff] }
 0x45f   : > { %6280 = vmatprep.subr.bf16.mxu1 %v7720_v25  ;;  %6444 = vmatprep.subr.bf16.mxu0 %v7722_v26  ;;  %v3419_v24 = vld [vmem:[%s9044_s17 + $0xaa8] sm:$0xff]  ;;  %v7767_v25 = vcombine.low %v3406_v15, %v3410_v14  ;;  %v7769_v26 = vcombine.low %v3407_v16, %v3411_v17  ;;  %v1429_v17 = vrot.slane %v9171_v12, %v1428_v5 }
 0x460   : > { %v7778_v58 = vcombine.high %v3415_v40, %v3419_v24  ;;  %v3455_v15 = vld [vmem:[%s9044_s17 + $0xbc8] sm:$0xff] }
 0x461   : > { %v3459_v14 = vld [vmem:[%s9044_s17 + $0xbe8] sm:$0xff] }
 0x462   : > { %6281 = vmatpush1.bf16.msra.mxu1 %v7719_v33  ;;  %6445 = vmatpush1.bf16.msra.mxu0 %v7721_v34  ;;  %v3423_v33 = vld [vmem:[%s9044_s17 + $0xac8] sm:$0xff] }
 0x463   : > { %6282 = vmatprep.subr.bf16.mxu1 %v7728_v35  ;;  %6446 = vmatprep.subr.bf16.mxu0 %v7730_v36  ;;  %v3427_v34 = vld [vmem:[%s9044_s17 + $0xae8] sm:$0xff]  ;;  %v7775_v35 = vcombine.low %v3414_v21, %v3418_v23  ;;  %v7777_v36 = vcombine.low %v3415_v40, %v3419_v24  ;;  %v7818_v21 = vcombine.high %v3455_v15, %v3459_v14  ;;  %v3462_v23 = vld [vmem:[%s9044_s17 + $0xc00] sm:$0xff] }
 0x464   : > { %v7786_v39 = vcombine.high %v3423_v33, %v3427_v34 }
 0x466   : > { %6283 = vmatpush1.bf16.msra.mxu1 %v7727_v44  ;;  %6447 = vmatpush1.bf16.msra.mxu0 %v7729_v45  ;;  %v3431_v44 = vld [vmem:[%s9044_s17 + $0xb08] sm:$0xff] }
 0x467   : > { %6284 = vmatprep.subr.bf16.mxu1 %v7736_v46  ;;  %6448 = vmatprep.subr.bf16.mxu0 %v7738_v47  ;;  %v3435_v45 = vld [vmem:[%s9044_s17 + $0xb28] sm:$0xff]  ;;  %v7783_v46 = vcombine.low %v3422_v30, %v3426_v32  ;;  %v7785_v47 = vcombine.low %v3423_v33, %v3427_v34 }
 0x468   : > { %v7794_v49 = vcombine.high %v3431_v44, %v3435_v45 }
 0x46a   : > { %6285 = vmatpush1.bf16.msra.mxu1 %v7735_v55  ;;  %6449 = vmatpush1.bf16.msra.mxu0 %v7737_v56  ;;  %v3439_v55 = vld [vmem:[%s9044_s17 + $0xb48] sm:$0xff] }
 0x46b   : > { %6286 = vmatprep.subr.bf16.mxu1 %v7744_v57  ;;  %6450 = vmatprep.subr.bf16.mxu0 %v7746_v52  ;;  %v3443_v56 = vld [vmem:[%s9044_s17 + $0xb68] sm:$0xff]  ;;  %v7791_v57 = vcombine.low %v3430_v41, %v3434_v42  ;;  %v7793_v52 = vcombine.low %v3431_v44, %v3435_v45 }
 0x46c   : > { %v7802_v61 = vcombine.high %v3439_v55, %v3443_v56  ;;  %v7801_v4 = vcombine.low %v3439_v55, %v3443_v56  ;;  %v3471_v55 = vld [vmem:[%s9044_s17 + $0xc48] sm:$0xff] }
 0x46d   : > { %v3475_v56 = vld [vmem:[%s9044_s17 + $0xc68] sm:$0xff] }
 0x46e   : > { %6287 = vmatpush1.bf16.msra.mxu1 %v7743_v0  ;;  %6451 = vmatpush1.bf16.msra.mxu0 %v7745_v1  ;;  %v3450_v0 = vld [vmem:[%s9044_s17 + $0xba0] sm:$0xff]  ;;  %v3447_v1 = vld [vmem:[%s9044_s17 + $0xb88] sm:$0xff] }
 0x46f   : > { %6288 = vmatprep.subr.bf16.mxu1 %v7752_v13  ;;  %6452 = vmatprep.subr.bf16.mxu0 %v7754_v2  ;;  %v3451_v13 = vld [vmem:[%s9044_s17 + $0xba8] sm:$0xff]  ;;  %v1420_v2 = vsub.s32 5, %v9050_v28  ;;  %v7808_v6 = vcombine.high %v3446_v62, %v3450_v0 }
 0x471   : > { %v1421_v16 = vrot.slane %v9171_v12, %v1420_v2 }
 0x472   : > { %6289 = vmatpush1.bf16.msra.mxu1 %v7751_v8  ;;  %6453 = vmatpush1.bf16.msra.mxu0 %v7753_v9  ;;  %v7810_v8 = vcombine.high %v3447_v1, %v3451_v13  ;;  %v3454_v9 = vld [vmem:[%s9044_s17 + $0xbc0] sm:$0xff] }
 0x473   : > { %6290 = vmatprep.subr.bf16.mxu1 %v7760_v10  ;;  %6454 = vmatprep.subr.bf16.mxu0 %v7762_v11  ;;  %v1417_v10 = vrot.slane %v9171_v12, %v1416_v63  ;;  %v3458_v11 = vld [vmem:[%s9044_s17 + $0xbe0] sm:$0xff] }
 0x474   : > { %v7815_v34 = vcombine.low %v3454_v9, %v3458_v11 }
 0x476   : > { %6291 = vmatpush1.bf16.msra.mxu1 %v7759_v18  ;;  %6455 = vmatpush1.bf16.msra.mxu0 %v7761_v22  ;;  %v7807_v18 = vcombine.low %v3446_v62, %v3450_v0  ;;  %v7809_v22 = vcombine.low %v3447_v1, %v3451_v13  ;;  %v3478_v62 = vld [vmem:[%s9044_s17 + $0xc80] sm:$0xff]  ;;  %v7834_v1 = vcombine.high %v3471_v55, %v3475_v56 }
 0x477   : > { %6292 = vmatprep.subr.bf16.mxu1 %v7768_v19  ;;  %6456 = vmatprep.subr.bf16.mxu0 %v7770_v20  ;;  %v7816_v20 = vcombine.high %v3454_v9, %v3458_v11  ;;  %v3482_v13 = vld [vmem:[%s9044_s17 + $0xca0] sm:$0xff]  ;;  %v7833_v9 = vcombine.low %v3471_v55, %v3475_v56  ;;  %v3519_v55 = vld [vmem:[%s9044_s17 + $0xdc8] sm:$0xff] }
 0x478   : > { %v3523_v56 = vld [vmem:[%s9044_s17 + $0xde8] sm:$0xff] }
 0x47a   : > { %6293 = vmatpush1.bf16.msra.mxu1 %v7767_v25  ;;  %6457 = vmatpush1.bf16.msra.mxu0 %v7769_v26  ;;  %v3466_v26 = vld [vmem:[%s9044_s17 + $0xc20] sm:$0xff] }
 0x47b   : > { %6294 = vmatprep.subr.bf16.mxu1 %v7776_v27  ;;  %6458 = vmatprep.subr.bf16.mxu0 %v7778_v58  ;;  %v3463_v27 = vld [vmem:[%s9044_s17 + $0xc08] sm:$0xff]  ;;  %v7824_v42 = vcombine.high %v3462_v23, %v3466_v26  ;;  %v7823_v51 = vcombine.low %v3462_v23, %v3466_v26  ;;  %v3498_v23 = vld [vmem:[%s9044_s17 + $0xd20] sm:$0xff] }
 0x47c   : > { %v3467_v58 = vld [vmem:[%s9044_s17 + $0xc28] sm:$0xff] }
 0x47d   : > { %v7826_v44 = vcombine.high %v3463_v27, %v3467_v58 }
 0x47e   : > { %6295 = vmatpush1.bf16.msra.mxu1 %v7775_v35  ;;  %6459 = vmatpush1.bf16.msra.mxu0 %v7777_v36 }
 0x47f   : > { %6296 = vmatprep.subr.bf16.mxu1 %v7784_v37  ;;  %6460 = vmatprep.subr.bf16.mxu0 %v7786_v39  ;;  %v7817_v39 = vcombine.low %v3455_v15, %v3459_v14  ;;  %v3486_v15 = vld [vmem:[%s9044_s17 + $0xcc0] sm:$0xff] }
 0x480   : > { %v3490_v14 = vld [vmem:[%s9044_s17 + $0xce0] sm:$0xff] }
 0x481   : > { %v7847_v26 = vcombine.low %v3486_v15, %v3490_v14 }
 0x482   : > { %6297 = vmatpush1.bf16.msra.mxu1 %v7783_v46  ;;  %6461 = vmatpush1.bf16.msra.mxu0 %v7785_v47 }
 0x483   : > { %6298 = vmatprep.subr.bf16.mxu1 %v7792_v48  ;;  %6462 = vmatprep.subr.bf16.mxu0 %v7794_v49  ;;  %v3470_v48 = vld [vmem:[%s9044_s17 + $0xc40] sm:$0xff] }
 0x484   : > { %v7832_v0 = vcombine.high %v3470_v48, %v3474_v54 }
 0x486   : > { %6299 = vmatpush1.bf16.msra.mxu1 %v7791_v57  ;;  %6463 = vmatpush1.bf16.msra.mxu0 %v7793_v52 }
 0x487   : > { %6300 = vmatprep.subr.bf16.mxu1 %v7800_v60  ;;  %6464 = vmatprep.subr.bf16.mxu0 %v7802_v61  ;;  %v7825_v60 = vcombine.low %v3463_v27, %v3467_v58 }
 0x48a   : > { %6301 = vmatpush1.bf16.msra.mxu1 %v7799_v3  ;;  %6465 = vmatpush1.bf16.msra.mxu0 %v7801_v4  ;;  %v3479_v3 = vld [vmem:[%s9044_s17 + $0xc88] sm:$0xff] }
 0x48b   : > { %v2957_v19 = vpop.f32.mrb[8].mxu1  ;;  %6302 = vmatprep.subr.bf16.mxu1 %v7808_v6  ;;  %6466 = vmatprep.subr.bf16.mxu0 %v7810_v8  ;;  %v3483_v4 = vld [vmem:[%s9044_s17 + $0xca8] sm:$0xff]  ;;  %v7831_v8 = vcombine.low %v3470_v48, %v3474_v54  ;;  %v3522_v54 = vld [vmem:[%s9044_s17 + $0xde0] sm:$0xff] }
 0x48c   : > { %v7963_v40 = vadd.f32 %v2957_v19, %v1417_v10  ;;  %v9337_v24 = vpop.f32.mrb[12].mxu0  ;;  %v2959_v25 = vpop.f32.mrb[9].mxu1  ;;  %v7840_v10 = vcombine.high %v3478_v62, %v3482_v13  ;;  %v7842_v11 = vcombine.high %v3479_v3, %v3483_v4  ;;  %v7848_v19 = vcombine.high %v3486_v15, %v3490_v14  ;;  %v3534_v15 = vld [vmem:[%s9044_s17 + $0xe40] sm:$0xff] }
 0x48d   : > { %v7964_v30 = vadd.f32 %v2959_v25, %v1421_v16  ;;  %v3041_v32 = vpop.f32.mrb[13].mxu0  ;;  %v2961_v33 = vpop.f32.mrb[10].mxu1  ;;  %v3487_v16 = vld [vmem:[%s9044_s17 + $0xcc8] sm:$0xff]  ;;  %v3538_v14 = vld [vmem:[%s9044_s17 + $0xe60] sm:$0xff] }
 0x48e   : > { %vm3050_vm12 = vcmp.gt.f32.partialorder %v7963_v40, 0.0  ;;  %v3058_v12 = vmul.f32 0.01, %v7963_v40  ;;  %v7966_v35 = vadd.f32 %v3041_v32, %v1429_v17  ;;  %v3043_v36 = vpop.f32.mrb[14].mxu0  ;;  %6303 = vmatpush1.bf16.msra.mxu1 %v7807_v18  ;;  %6467 = vmatpush1.bf16.msra.mxu0 %v7809_v22  ;;  %v2962_v37 = vpop.f32.mrb[11].mxu1  ;;  %v3491_v17 = vld [vmem:[%s9044_s17 + $0xce8] sm:$0xff]  ;;  %v7839_v18 = vcombine.low %v3478_v62, %v3482_v13 }
 0x48f   : > { %vm3051_vm13 = vcmp.gt.f32.partialorder %v7964_v30, 0.0  ;;  %v3059_v41 = vmul.f32 0.01, %v7964_v30  ;;  %6304 = vmatprep.subr.bf16.mxu1 %v7816_v20  ;;  %6468 = vmatprep.subr.bf16.mxu0 %v7818_v21  ;;  %v3044_v47 = vpop.f32.mrb[15].mxu0  ;;  %v7841_v22 = vcombine.low %v3479_v3, %v3483_v4  ;;  %v7850_v20 = vcombine.high %v3487_v16, %v3491_v17  ;;  %v3494_v21 = vld [vmem:[%s9044_s17 + $0xd00] sm:$0xff]  ;;  %v3499_v25 = vld [vmem:[%s9044_s17 + $0xd28] sm:$0xff] }
 0x490   : > { %v3066_v45 = vsel %vm3050_vm12, %v7963_v40, %v3058_v12  ;;  %vm3053_vm14 = vcmp.gt.f32.partialorder %v7966_v35, 0.0  ;;  %v3061_v46 = vmul.f32 0.01, %v7966_v35  ;;  %v3495_v40 = vld [vmem:[%s9044_s17 + $0xd08] sm:$0xff]  ;;  %v7849_v27 = vcombine.low %v3487_v16, %v3491_v17  ;;  %v3502_v32 = vld [vmem:[%s9044_s17 + $0xd40] sm:$0xff] }
 0x491   : > { %v3067_v49 = vsel %vm3051_vm13, %v7964_v30, %v3059_v41  ;;  %v9348_v61 = vpack.c.bf16 %v3066_v45, %v3066_v45  ;;  %v7856_v58 = vcombine.high %v3494_v21, %v3498_v23  ;;  %v7858_v30 = vcombine.high %v3495_v40, %v3499_v25  ;;  %v3506_v33 = vld [vmem:[%s9044_s17 + $0xd60] sm:$0xff]  ;;  %v3507_v12 = vld [vmem:[%s9044_s17 + $0xd68] sm:$0xff] }
 0x492   : > { %v9346_v57 = vpack.c.bf16 %v3067_v49, %v3067_v49  ;;  %v3069_v52 = vsel %vm3053_vm14, %v7966_v35, %v3061_v46  ;;  %6305 = vmatpush1.bf16.msra.mxu1 %v7815_v34  ;;  %6469 = vmatpush1.bf16.msra.mxu0 %v7817_v39  ;;  %v3503_v34 = vld [vmem:[%s9044_s17 + $0xd48] sm:$0xff]  ;;  %v7855_v35 = vcombine.low %v3494_v21, %v3498_v23  ;;  %v3510_v41 = vld [vmem:[%s9044_s17 + $0xd80] sm:$0xff] }
 0x493   : > { %6315 = vmatprep.subr.bf16.mxu1 %v7824_v42  ;;  %6479 = vmatprep.subr.bf16.mxu0 %v7826_v44  ;;  %v9356_v6 = vpack.c.bf16 %v3069_v52, %v3069_v52  ;;  %v7857_v36 = vcombine.low %v3495_v40, %v3499_v25  ;;  %v7864_v37 = vcombine.high %v3502_v32, %v3506_v33  ;;  %v3514_v42 = vld [vmem:[%s9044_s17 + $0xda0] sm:$0xff]  ;;  %v3511_v44 = vld [vmem:[%s9044_s17 + $0xd88] sm:$0xff] }
 0x494   : > { %6306 = vmatprep.mubr.bf16.mxu1 %v9346_v57  ;;  %6470 = vmatprep.mubr.bf16.mxu0 %v9346_v57  ;;  %v7866_v39 = vcombine.high %v3503_v34, %v3507_v12  ;;  %v3515_v45 = vld [vmem:[%s9044_s17 + $0xda8] sm:$0xff]  ;;  %v7863_v46 = vcombine.low %v3502_v32, %v3506_v33  ;;  %v7865_v47 = vcombine.low %v3503_v34, %v3507_v12  ;;  %v3530_v13 = vld [vmem:[%s9044_s17 + $0xe20] sm:$0xff] }
 0x495   : > { %6307 = vmatmul.mubr.bf16.vlgmr.msra.gmra.mrb[12].mxu1 %v9348_v61  ;;  %6471 = vmatmul.mubr.bf16.vlgmr.msra.gmra.mrb[16].mxu0 %v9348_v61  ;;  %v7872_v48 = vcombine.high %v3510_v41, %v3514_v42  ;;  %v7874_v49 = vcombine.high %v3511_v44, %v3515_v45  ;;  %v7871_v52 = vcombine.low %v3510_v41, %v3514_v42  ;;  %v3527_v3 = vld [vmem:[%s9044_s17 + $0xe08] sm:$0xff]  ;;  %v3542_v21 = vld [vmem:[%s9044_s17 + $0xe80] sm:$0xff] }
 0x496   : > { %6316 = vmatpush1.bf16.msra.mxu1 %v7823_v51  ;;  %6480 = vmatpush1.bf16.msra.mxu0 %v7825_v60  ;;  %v3518_v51 = vld [vmem:[%s9044_s17 + $0xdc0] sm:$0xff]  ;;  %v7873_v60 = vcombine.low %v3511_v44, %v3515_v45  ;;  %v3531_v4 = vld [vmem:[%s9044_s17 + $0xe28] sm:$0xff] }
 0x497   : > { %6347 = vmatprep.mubr.bf16.mxu1 %v9356_v6  ;;  %6511 = vmatprep.mubr.bf16.mxu0 %v9356_v6  ;;  %v7880_v62 = vcombine.high %v3518_v51, %v3522_v54  ;;  %v3535_v16 = vld [vmem:[%s9044_s17 + $0xe48] sm:$0xff]  ;;  %v3546_v23 = vld [vmem:[%s9044_s17 + $0xea0] sm:$0xff] }
 0x498   : > { %6317 = vmatprep.subr.bf16.mxu1 %v7832_v0  ;;  %6481 = vmatprep.subr.bf16.mxu0 %v7834_v1  ;;  %v7882_v0 = vcombine.high %v3519_v55, %v3523_v56  ;;  %v3526_v1 = vld [vmem:[%s9044_s17 + $0xe00] sm:$0xff]  ;;  %v3539_v17 = vld [vmem:[%s9044_s17 + $0xe68] sm:$0xff] }
 0x499   : > { %v3543_v40 = vld [vmem:[%s9044_s17 + $0xe88] sm:$0xff]  ;;  %v3550_v32 = vld [vmem:[%s9044_s17 + $0xec0] sm:$0xff] }
 0x49a   : > { %6318 = vmatpush1.bf16.msra.mxu1 %v7831_v8  ;;  %6482 = vmatpush1.bf16.msra.mxu0 %v7833_v9  ;;  %v7879_v8 = vcombine.low %v3518_v51, %v3522_v54  ;;  %v7881_v9 = vcombine.low %v3519_v55, %v3523_v56  ;;  %v3547_v25 = vld [vmem:[%s9044_s17 + $0xea8] sm:$0xff]  ;;  %v3554_v33 = vld [vmem:[%s9044_s17 + $0xee0] sm:$0xff]  ;;  %v1424_v54 = vsub.s32 6, %v9050_v28 }
 0x49b   : > { %6319 = vmatprep.subr.bf16.mxu1 %v7840_v10  ;;  %6483 = vmatprep.subr.bf16.mxu0 %v7842_v11  ;;  %v7888_v10 = vcombine.high %v3526_v1, %v3530_v13  ;;  %v7890_v11 = vcombine.high %v3527_v3, %v3531_v4  ;;  %v3551_v34 = vld [vmem:[%s9044_s17 + $0xec8] sm:$0xff]  ;;  %v3558_v41 = vld [vmem:[%s9044_s17 + $0xf00] sm:$0xff] }
 0x49c   : > { %v3555_v12 = vld [vmem:[%s9044_s17 + $0xee8] sm:$0xff]  ;;  %v3562_v42 = vld [vmem:[%s9044_s17 + $0xf20] sm:$0xff] }
 0x49d   : > { %v3559_v44 = vld [vmem:[%s9044_s17 + $0xf08] sm:$0xff]  ;;  %v3566_v51 = vld [vmem:[%s9044_s17 + $0xf40] sm:$0xff] }
 0x49e   : > { %6320 = vmatpush1.bf16.msra.mxu1 %v7839_v18  ;;  %6484 = vmatpush1.bf16.msra.mxu0 %v7841_v22  ;;  %v7887_v18 = vcombine.low %v3526_v1, %v3530_v13  ;;  %v7889_v22 = vcombine.low %v3527_v3, %v3531_v4  ;;  %v3563_v45 = vld [vmem:[%s9044_s17 + $0xf28] sm:$0xff]  ;;  %v3570_v55 = vld [vmem:[%s9044_s17 + $0xf60] sm:$0xff]  ;;  %v8302_v3 = vld [vmem:[#allocation13] sm:$0xff] }
 0x49f   : > { %6321 = vmatprep.subr.bf16.mxu1 %v7848_v19  ;;  %6485 = vmatprep.subr.bf16.mxu0 %v7850_v20  ;;  %v7896_v19 = vcombine.high %v3534_v15, %v3538_v14  ;;  %v7898_v20 = vcombine.high %v3535_v16, %v3539_v17  ;;  %v3567_v56 = vld [vmem:[%s9044_s17 + $0xf48] sm:$0xff]  ;;  %v3574_v13 = vld [vmem:[%s9044_s17 + $0xf80] sm:$0xff]  ;;  %v1425_v4 = vrot.slane %v8302_v3, %v1424_v54  ;;  %v3109_v3 = vld [vmem:[%s9044_s17 + $0xf8] sm:$0xff] }
 0x4a2   : > { %6322 = vmatpush1.bf16.msra.mxu1 %v7847_v26  ;;  %6486 = vmatpush1.bf16.msra.mxu0 %v7849_v27  ;;  %v7895_v26 = vcombine.low %v3534_v15, %v3538_v14  ;;  %v7897_v27 = vcombine.low %v3535_v16, %v3539_v17  ;;  %v3582_v17 = vld [vmem:[%s9044_s17 + $0xfc0] sm:$0xff] }
 0x4a3   : > { %6323 = vmatprep.subr.bf16.mxu1 %v7856_v58  ;;  %6487 = vmatprep.subr.bf16.mxu0 %v7858_v30  ;;  %v7904_v58 = vcombine.high %v3542_v21, %v3546_v23  ;;  %v7906_v30 = vcombine.high %v3543_v40, %v3547_v25 }
 0x4a6   : > { %6324 = vmatpush1.bf16.msra.mxu1 %v7855_v35  ;;  %6488 = vmatpush1.bf16.msra.mxu0 %v7857_v36  ;;  %v7903_v35 = vcombine.low %v3542_v21, %v3546_v23  ;;  %v7905_v36 = vcombine.low %v3543_v40, %v3547_v25 }
 0x4a7   : > { %6325 = vmatprep.subr.bf16.mxu1 %v7864_v37  ;;  %6489 = vmatprep.subr.bf16.mxu0 %v7866_v39  ;;  %v7912_v37 = vcombine.high %v3550_v32, %v3554_v33  ;;  %v7914_v39 = vcombine.high %v3551_v34, %v3555_v12 }
 0x4aa   : > { %6326 = vmatpush1.bf16.msra.mxu1 %v7863_v46  ;;  %6490 = vmatpush1.bf16.msra.mxu0 %v7865_v47  ;;  %v7911_v46 = vcombine.low %v3550_v32, %v3554_v33  ;;  %v7913_v47 = vcombine.low %v3551_v34, %v3555_v12 }
 0x4ab   : > { %6327 = vmatprep.subr.bf16.mxu1 %v7872_v48  ;;  %6491 = vmatprep.subr.bf16.mxu0 %v7874_v49  ;;  %v7920_v48 = vcombine.high %v3558_v41, %v3562_v42  ;;  %v7922_v49 = vcombine.high %v3559_v44, %v3563_v45 }
 0x4ae   : > { %6328 = vmatpush1.bf16.msra.mxu1 %v7871_v52  ;;  %6492 = vmatpush1.bf16.msra.mxu0 %v7873_v60  ;;  %v3571_v52 = vld [vmem:[%s9044_s17 + $0xf68] sm:$0xff]  ;;  %v7919_v60 = vcombine.low %v3558_v41, %v3562_v42  ;;  %v3093_v41 = vld [vmem:[%s9044_s17 + $0x78] sm:$0xff] }
 0x4af   : > { %6329 = vmatprep.subr.bf16.mxu1 %v7880_v62  ;;  %6493 = vmatprep.subr.bf16.mxu0 %v7882_v0  ;;  %v7921_v62 = vcombine.low %v3559_v44, %v3563_v45  ;;  %v7928_v0 = vcombine.high %v3566_v51, %v3570_v55  ;;  %v7930_v1 = vcombine.high %v3567_v56, %v3571_v52 }
 0x4b0   : > { %v7929_v15 = vcombine.low %v3567_v56, %v3571_v52 }
 0x4b2   : > { %6330 = vmatpush1.bf16.msra.mxu1 %v7879_v8  ;;  %6494 = vmatpush1.bf16.msra.mxu0 %v7881_v9  ;;  %v3578_v8 = vld [vmem:[%s9044_s17 + $0xfa0] sm:$0xff]  ;;  %v3575_v9 = vld [vmem:[%s9044_s17 + $0xf88] sm:$0xff] }
 0x4b3   : > { %6331 = vmatprep.subr.bf16.mxu1 %v7888_v10  ;;  %6495 = vmatprep.subr.bf16.mxu0 %v7890_v11  ;;  %v3579_v10 = vld [vmem:[%s9044_s17 + $0xfa8] sm:$0xff]  ;;  %v7927_v11 = vcombine.low %v3566_v51, %v3570_v55  ;;  %v7936_v14 = vcombine.high %v3574_v13, %v3578_v8  ;;  %v7935_v21 = vcombine.low %v3574_v13, %v3578_v8  ;;  %v3097_v51 = vld [vmem:[%s9044_s17 + $0x98] sm:$0xff] }
 0x4b4   : > { %v7938_v16 = vcombine.high %v3575_v9, %v3579_v10  ;;  %v7937_v23 = vcombine.low %v3575_v9, %v3579_v10  ;;  %v3101_v55 = vld [vmem:[%s9044_s17 + $0xb8] sm:$0xff]  ;;  %v3112_v10 = vld [vmem:[%s9044_s17 + $0x110] sm:$0xff] }
 0x4b5   : > { %v3105_v13 = vld [vmem:[%s9044_s17 + $0xd8] sm:$0xff]  ;;  %v7461_v8 = vcombine.low %v3097_v51, %v3101_v55 }
 0x4b6   : > { %6332 = vmatpush1.bf16.msra.mxu1 %v7887_v18  ;;  %6496 = vmatpush1.bf16.msra.mxu0 %v7889_v22  ;;  %v7965_v18 = vadd.f32 %v9337_v24, %v1425_v4  ;;  %v3586_v22 = vld [vmem:[%s9044_s17 + $0xfe0] sm:$0xff]  ;;  %v3081_v24 = vld [vmem:[%s9044_s17 + $0x18] sm:$0xff]  ;;  %v7470_v9 = vcombine.high %v3105_v13, %v3109_v3 }
 0x4b7   : > { %6333 = vmatprep.subr.bf16.mxu1 %v7896_v19  ;;  %6497 = vmatprep.subr.bf16.mxu0 %v7898_v20  ;;  %v3583_v19 = vld [vmem:[%s9044_s17 + $0xfc8] sm:$0xff]  ;;  %v7944_v40 = vcombine.high %v3582_v17, %v3586_v22  ;;  %v7943_v32 = vcombine.low %v3582_v17, %v3586_v22  ;;  %v7469_v17 = vcombine.low %v3105_v13, %v3109_v3  ;;  %v3153_v13 = vld [vmem:[%s9044_s17 + $0x258] sm:$0xff] }
 0x4b8   : > { %v3587_v20 = vld [vmem:[%s9044_s17 + $0xfe8] sm:$0xff]  ;;  %vm3052_vm15 = vcmp.gt.f32.partialorder %v7965_v18, 0.0  ;;  %v3157_v3 = vld [vmem:[%s9044_s17 + $0x278] sm:$0xff] }
 0x4b9   : > { %v7946_v25 = vcombine.high %v3583_v19, %v3587_v20  ;;  %v7945_v33 = vcombine.low %v3583_v19, %v3587_v20  ;;  %v3120_v19 = vld [vmem:[%s9044_s17 + $0x150] sm:$0xff] }
 0x4ba   : > { %6334 = vmatpush1.bf16.msra.mxu1 %v7895_v26  ;;  %6498 = vmatpush1.bf16.msra.mxu0 %v7897_v27  ;;  %v3080_v26 = vld [vmem:[%s9044_s17 + $0x10] sm:$0xff]  ;;  %v3060_v27 = vmul.f32 0.01, %v7965_v18 }
 0x4bb   : > { %6335 = vmatprep.subr.bf16.mxu1 %v7904_v58  ;;  %6499 = vmatprep.subr.bf16.mxu0 %v7906_v30  ;;  %v3084_v58 = vld [vmem:[%s9044_s17 + $0x30] sm:$0xff]  ;;  %v3085_v30 = vld [vmem:[%s9044_s17 + $0x38] sm:$0xff] }
 0x4bc   : > { %v7444_v34 = vcombine.high %v3080_v26, %v3084_v58  ;;  %v7446_v12 = vcombine.high %v3081_v24, %v3085_v30  ;;  %v7443_v42 = vcombine.low %v3080_v26, %v3084_v58  ;;  %v7445_v45 = vcombine.low %v3081_v24, %v3085_v30  ;;  %v3124_v20 = vld [vmem:[%s9044_s17 + $0x170] sm:$0xff]  ;;  %v3129_v30 = vld [vmem:[%s9044_s17 + $0x198] sm:$0xff] }
 0x4bd   : > { %v7484_v26 = vcombine.high %v3120_v19, %v3124_v20  ;;  %v3128_v58 = vld [vmem:[%s9044_s17 + $0x190] sm:$0xff] }
 0x4be   : > { %6336 = vmatpush1.bf16.msra.mxu1 %v7903_v35  ;;  %6500 = vmatpush1.bf16.msra.mxu0 %v7905_v36  ;;  %v3068_v35 = vsel %vm3052_vm15, %v7965_v18, %v3060_v27  ;;  %v3088_v36 = vld [vmem:[%s9044_s17 + $0x50] sm:$0xff] }
 0x4bf   : > { %6337 = vmatprep.subr.bf16.mxu1 %v7912_v37  ;;  %6501 = vmatprep.subr.bf16.mxu0 %v7914_v39  ;;  %v3092_v37 = vld [vmem:[%s9044_s17 + $0x70] sm:$0xff]  ;;  %v3089_v39 = vld [vmem:[%s9044_s17 + $0x58] sm:$0xff]  ;;  %v9426_v44 = vpack.c.bf16 %v3068_v35, %v3068_v35 }
 0x4c0   : > { %v7451_v56 = vcombine.low %v3088_v36, %v3092_v37  ;;  %v7453_v52 = vcombine.low %v3089_v39, %v3093_v41  ;;  %v3132_v24 = vld [vmem:[%s9044_s17 + $0x1b0] sm:$0xff] }
 0x4c2   : > { %6338 = vmatpush1.bf16.msra.mxu1 %v7911_v46  ;;  %6502 = vmatpush1.bf16.msra.mxu0 %v7913_v47  ;;  %v7452_v46 = vcombine.high %v3088_v36, %v3092_v37  ;;  %v7454_v47 = vcombine.high %v3089_v39, %v3093_v41  ;;  %v3136_v36 = vld [vmem:[%s9044_s17 + $0x1d0] sm:$0xff]  ;;  %v3137_v39 = vld [vmem:[%s9044_s17 + $0x1d8] sm:$0xff] }
 0x4c3   : > { %6339 = vmatprep.subr.bf16.mxu1 %v7920_v48  ;;  %6503 = vmatprep.subr.bf16.mxu0 %v7922_v49  ;;  %v3096_v48 = vld [vmem:[%s9044_s17 + $0x90] sm:$0xff]  ;;  %v3141_v41 = vld [vmem:[%s9044_s17 + $0x1f8] sm:$0xff] }
 0x4c4   : > { %v3100_v49 = vld [vmem:[%s9044_s17 + $0xb0] sm:$0xff] }
 0x4c5   : > { %v7459_v4 = vcombine.low %v3096_v48, %v3100_v49  ;;  %v3140_v37 = vld [vmem:[%s9044_s17 + $0x1f0] sm:$0xff] }
 0x4c6   : > { %6340 = vmatpush1.bf16.msra.mxu1 %v7919_v60  ;;  %6504 = vmatpush1.bf16.msra.mxu0 %v7921_v62  ;;  %v7460_v60 = vcombine.high %v3096_v48, %v3100_v49  ;;  %v7462_v62 = vcombine.high %v3097_v51, %v3101_v55  ;;  %v3144_v48 = vld [vmem:[%s9044_s17 + $0x210] sm:$0xff]  ;;  %v3145_v51 = vld [vmem:[%s9044_s17 + $0x218] sm:$0xff] }
 0x4c7   : > { %6341 = vmatprep.subr.bf16.mxu1 %v7928_v0  ;;  %6505 = vmatprep.subr.bf16.mxu0 %v7930_v1  ;;  %v3104_v0 = vld [vmem:[%s9044_s17 + $0xd0] sm:$0xff]  ;;  %v3149_v55 = vld [vmem:[%s9044_s17 + $0x238] sm:$0xff] }
 0x4c8   : > { %v3108_v1 = vld [vmem:[%s9044_s17 + $0xf0] sm:$0xff] }
 0x4c9   : > { %v3148_v49 = vld [vmem:[%s9044_s17 + $0x230] sm:$0xff] }
 0x4ca   : > { %6342 = vmatpush1.bf16.msra.mxu1 %v7927_v11  ;;  %6506 = vmatpush1.bf16.msra.mxu0 %v7929_v15  ;;  %v3116_v11 = vld [vmem:[%s9044_s17 + $0x130] sm:$0xff]  ;;  %v3113_v15 = vld [vmem:[%s9044_s17 + $0x118] sm:$0xff] }
 0x4cb   : > { %6343 = vmatprep.subr.bf16.mxu1 %v7936_v14  ;;  %6507 = vmatprep.subr.bf16.mxu0 %v7938_v16  ;;  %v3117_v14 = vld [vmem:[%s9044_s17 + $0x138] sm:$0xff]  ;;  %v7467_v16 = vcombine.low %v3104_v0, %v3108_v1  ;;  %v7476_v18 = vcombine.high %v3112_v10, %v3116_v11 }
 0x4cc   : > { %v7478_v22 = vcombine.high %v3113_v15, %v3117_v14 }
 0x4ce   : > { %6344 = vmatpush1.bf16.msra.mxu1 %v7935_v21  ;;  %6508 = vmatpush1.bf16.msra.mxu0 %v7937_v23  ;;  %v3121_v21 = vld [vmem:[%s9044_s17 + $0x158] sm:$0xff] }
 0x4cf   : > { %6345 = vmatprep.subr.bf16.mxu1 %v7944_v40  ;;  %6509 = vmatprep.subr.bf16.mxu0 %v7946_v25  ;;  %v3125_v23 = vld [vmem:[%s9044_s17 + $0x178] sm:$0xff]  ;;  %v7475_v40 = vcombine.low %v3112_v10, %v3116_v11  ;;  %v7477_v25 = vcombine.low %v3113_v15, %v3117_v14  ;;  %v3160_v10 = vld [vmem:[%s9044_s17 + $0x290] sm:$0xff] }
 0x4d0   : > { %v7486_v27 = vcombine.high %v3121_v21, %v3125_v23  ;;  %v3164_v11 = vld [vmem:[%s9044_s17 + $0x2b0] sm:$0xff]  ;;  %v3161_v15 = vld [vmem:[%s9044_s17 + $0x298] sm:$0xff] }
 0x4d1   : > { %v3165_v14 = vld [vmem:[%s9044_s17 + $0x2b8] sm:$0xff] }
 0x4d2   : > { %6346 = vmatpush1.bf16.msra.mxu1 %v7943_v32  ;;  %6510 = vmatpush1.bf16.msra.mxu0 %v7945_v33  ;;  %v3133_v32 = vld [vmem:[%s9044_s17 + $0x1b8] sm:$0xff]  ;;  %v7483_v33 = vcombine.low %v3120_v19, %v3124_v20  ;;  %v3168_v19 = vld [vmem:[%s9044_s17 + $0x2d0] sm:$0xff] }
 0x4d3   : > { %6520 = vmatprep.subr.bf16.mxu1 %v7444_v34  ;;  %6684 = vmatprep.subr.bf16.mxu0 %v7446_v12  ;;  %v7485_v34 = vcombine.low %v3121_v21, %v3125_v23  ;;  %v7492_v12 = vcombine.high %v3128_v58, %v3132_v24  ;;  %v7494_v35 = vcombine.high %v3129_v30, %v3133_v32  ;;  %v3172_v20 = vld [vmem:[%s9044_s17 + $0x2f0] sm:$0xff]  ;;  %v3169_v21 = vld [vmem:[%s9044_s17 + $0x2d8] sm:$0xff] }
 0x4d4   : > { %v3173_v23 = vld [vmem:[%s9044_s17 + $0x2f8] sm:$0xff] }
 0x4d5   : > { %6348 = vmatmul.mubr.bf16.vlgmr.msra.gmra.mrb[12].mxu1 %v9426_v44  ;;  %6512 = vmatmul.mubr.bf16.vlgmr.msra.gmra.mrb[16].mxu0 %v9426_v44 }
 0x4d6   : > { %6521 = vmatpush1.bf16.msra.mxu1 %v7443_v42  ;;  %6552 = vmatprep.mubr.bf16.mxu1 %v9185_v38  ;;  %v7491_v42 = vcombine.low %v3128_v58, %v3132_v24  ;;  %v3176_v58 = vld [vmem:[%s9044_s17 + $0x310] sm:$0xff] }
 0x4d7   : > { %6685 = vmatpush1.bf16.msra.mxu0 %v7445_v45  ;;  %6716 = vmatprep.mubr.bf16.mxu0 %v9185_v38  ;;  %v7468_v38 = vcombine.high %v3104_v0, %v3108_v1  ;;  %v7493_v45 = vcombine.low %v3129_v30, %v3133_v32  ;;  %v3152_v0 = vld [vmem:[%s9044_s17 + $0x250] sm:$0xff]  ;;  %v3177_v30 = vld [vmem:[%s9044_s17 + $0x318] sm:$0xff] }
 0x4d8   : > { %6522 = vmatprep.subr.bf16.mxu1 %v7452_v46  ;;  %6686 = vmatprep.subr.bf16.mxu0 %v7454_v47  ;;  %v7500_v46 = vcombine.high %v3136_v36, %v3140_v37  ;;  %v7502_v47 = vcombine.high %v3137_v39, %v3141_v41  ;;  %v3156_v1 = vld [vmem:[%s9044_s17 + $0x270] sm:$0xff]  ;;  %v3181_v32 = vld [vmem:[%s9044_s17 + $0x338] sm:$0xff] }
 0x4d9   : > { %v3180_v24 = vld [vmem:[%s9044_s17 + $0x330] sm:$0xff] }
 0x4da   : > { %6523 = vmatpush1.bf16.msra.mxu1 %v7451_v56  ;;  %v7499_v56 = vcombine.low %v3136_v36, %v3140_v37  ;;  %v3184_v36 = vld [vmem:[%s9044_s17 + $0x350] sm:$0xff] }
 0x4db   : > { %6687 = vmatpush1.bf16.msra.mxu0 %v7453_v52  ;;  %6524 = vmatprep.subr.bf16.mxu1 %v7460_v60  ;;  %v7501_v52 = vcombine.low %v3137_v39, %v3141_v41  ;;  %v7508_v60 = vcombine.high %v3144_v48, %v3148_v49  ;;  %v3188_v37 = vld [vmem:[%s9044_s17 + $0x370] sm:$0xff]  ;;  %v3185_v39 = vld [vmem:[%s9044_s17 + $0x358] sm:$0xff] }
 0x4dc   : > { %6688 = vmatprep.subr.bf16.mxu0 %v7462_v62  ;;  %v7510_v62 = vcombine.high %v3145_v51, %v3149_v55  ;;  %v3189_v41 = vld [vmem:[%s9044_s17 + $0x378] sm:$0xff] }
 0x4de   : > { %6525 = vmatpush1.bf16.msra.mxu1 %v7459_v4  ;;  %v7507_v4 = vcombine.low %v3144_v48, %v3148_v49  ;;  %v3192_v48 = vld [vmem:[%s9044_s17 + $0x390] sm:$0xff] }
 0x4df   : > { %6689 = vmatpush1.bf16.msra.mxu0 %v7461_v8  ;;  %6526 = vmatprep.subr.bf16.mxu1 %v7468_v38  ;;  %v7509_v8 = vcombine.low %v3145_v51, %v3149_v55  ;;  %v7516_v38 = vcombine.high %v3152_v0, %v3156_v1  ;;  %v3196_v49 = vld [vmem:[%s9044_s17 + $0x3b0] sm:$0xff]  ;;  %v3193_v51 = vld [vmem:[%s9044_s17 + $0x398] sm:$0xff] }
 0x4e0   : > { %6690 = vmatprep.subr.bf16.mxu0 %v7470_v9  ;;  %v7518_v9 = vcombine.high %v3153_v13, %v3157_v3  ;;  %v3197_v55 = vld [vmem:[%s9044_s17 + $0x3b8] sm:$0xff] }
 0x4e2   : > { %6527 = vmatpush1.bf16.msra.mxu1 %v7467_v16  ;;  %v7515_v16 = vcombine.low %v3152_v0, %v3156_v1  ;;  %v3200_v0 = vld [vmem:[%s9044_s17 + $0x3d0] sm:$0xff] }
 0x4e3   : > { %6691 = vmatpush1.bf16.msra.mxu0 %v7469_v17  ;;  %6528 = vmatprep.subr.bf16.mxu1 %v7476_v18  ;;  %v7517_v17 = vcombine.low %v3153_v13, %v3157_v3  ;;  %v7524_v18 = vcombine.high %v3160_v10, %v3164_v11  ;;  %v3204_v1 = vld [vmem:[%s9044_s17 + $0x3f0] sm:$0xff]  ;;  %v3201_v13 = vld [vmem:[%s9044_s17 + $0x3d8] sm:$0xff] }
 0x4e4   : > { %6692 = vmatprep.subr.bf16.mxu0 %v7478_v22  ;;  %v7526_v22 = vcombine.high %v3161_v15, %v3165_v14  ;;  %v3205_v3 = vld [vmem:[%s9044_s17 + $0x3f8] sm:$0xff] }
 0x4e6   : > { %6529 = vmatpush1.bf16.msra.mxu1 %v7475_v40  ;;  %v7523_v40 = vcombine.low %v3160_v10, %v3164_v11  ;;  %v3208_v10 = vld [vmem:[%s9044_s17 + $0x410] sm:$0xff] }
 0x4e7   : > { %6693 = vmatpush1.bf16.msra.mxu0 %v7477_v25  ;;  %6530 = vmatprep.subr.bf16.mxu1 %v7484_v26  ;;  %v7525_v25 = vcombine.low %v3161_v15, %v3165_v14  ;;  %v7532_v26 = vcombine.high %v3168_v19, %v3172_v20  ;;  %v3212_v11 = vld [vmem:[%s9044_s17 + $0x430] sm:$0xff]  ;;  %v3209_v15 = vld [vmem:[%s9044_s17 + $0x418] sm:$0xff] }
 0x4e8   : > { %6694 = vmatprep.subr.bf16.mxu0 %v7486_v27  ;;  %v7534_v27 = vcombine.high %v3169_v21, %v3173_v23  ;;  %v3213_v14 = vld [vmem:[%s9044_s17 + $0x438] sm:$0xff] }
 0x4ea   : > { %6531 = vmatpush1.bf16.msra.mxu1 %v7483_v33  ;;  %v7531_v33 = vcombine.low %v3168_v19, %v3172_v20  ;;  %v3216_v19 = vld [vmem:[%s9044_s17 + $0x450] sm:$0xff] }
 0x4eb   : > { %6695 = vmatpush1.bf16.msra.mxu0 %v7485_v34  ;;  %6532 = vmatprep.subr.bf16.mxu1 %v7492_v12  ;;  %v7533_v34 = vcombine.low %v3169_v21, %v3173_v23  ;;  %v7540_v12 = vcombine.high %v3176_v58, %v3180_v24  ;;  %v3220_v20 = vld [vmem:[%s9044_s17 + $0x470] sm:$0xff]  ;;  %v7571_v21 = vcombine.low %v3208_v10, %v3212_v11  ;;  %v3217_v23 = vld [vmem:[%s9044_s17 + $0x458] sm:$0xff] }
 0x4ec   : > { %6696 = vmatprep.subr.bf16.mxu0 %v7494_v35  ;;  %v7542_v35 = vcombine.high %v3177_v30, %v3181_v32 }
 0x4ee   : > { %6533 = vmatpush1.bf16.msra.mxu1 %v7491_v42  ;;  %v7539_v42 = vcombine.low %v3176_v58, %v3180_v24  ;;  %v3228_v58 = vld [vmem:[%s9044_s17 + $0x4b0] sm:$0xff] }
 0x4ef   : > { %6697 = vmatpush1.bf16.msra.mxu0 %v7493_v45  ;;  %6534 = vmatprep.subr.bf16.mxu1 %v7500_v46  ;;  %v7541_v45 = vcombine.low %v3177_v30, %v3181_v32  ;;  %v7548_v46 = vcombine.high %v3184_v36, %v3188_v37  ;;  %v3225_v30 = vld [vmem:[%s9044_s17 + $0x498] sm:$0xff] }
 0x4f0   : > { %6698 = vmatprep.subr.bf16.mxu0 %v7502_v47  ;;  %v7550_v47 = vcombine.high %v3185_v39, %v3189_v41  ;;  %v3229_v32 = vld [vmem:[%s9044_s17 + $0x4b8] sm:$0xff] }
 0x4f2   : > { %6535 = vmatpush1.bf16.msra.mxu1 %v7499_v56  ;;  %v7547_v56 = vcombine.low %v3184_v36, %v3188_v37  ;;  %v3232_v36 = vld [vmem:[%s9044_s17 + $0x4d0] sm:$0xff] }
 0x4f3   : > { %6699 = vmatpush1.bf16.msra.mxu0 %v7501_v52  ;;  %6536 = vmatprep.subr.bf16.mxu1 %v7508_v60  ;;  %v7549_v52 = vcombine.low %v3185_v39, %v3189_v41  ;;  %v7556_v60 = vcombine.high %v3192_v48, %v3196_v49  ;;  %v3236_v37 = vld [vmem:[%s9044_s17 + $0x4f0] sm:$0xff]  ;;  %v3233_v39 = vld [vmem:[%s9044_s17 + $0x4d8] sm:$0xff] }
 0x4f4   : > { %6700 = vmatprep.subr.bf16.mxu0 %v7510_v62  ;;  %v7558_v62 = vcombine.high %v3193_v51, %v3197_v55 }
 0x4f6   : > { %6537 = vmatpush1.bf16.msra.mxu1 %v7507_v4  ;;  %v7555_v4 = vcombine.low %v3192_v48, %v3196_v49  ;;  %v3241_v48 = vld [vmem:[%s9044_s17 + $0x518] sm:$0xff] }
 0x4f7   : > { %6701 = vmatpush1.bf16.msra.mxu0 %v7509_v8  ;;  %6538 = vmatprep.subr.bf16.mxu1 %v7516_v38  ;;  %v7557_v8 = vcombine.low %v3193_v51, %v3197_v55  ;;  %v7564_v38 = vcombine.high %v3200_v0, %v3204_v1  ;;  %v3245_v49 = vld [vmem:[%s9044_s17 + $0x538] sm:$0xff]  ;;  %v7595_v51 = vcombine.low %v3232_v36, %v3236_v37 }
 0x4f8   : > { %6702 = vmatprep.subr.bf16.mxu0 %v7518_v9  ;;  %v7566_v9 = vcombine.high %v3201_v13, %v3205_v3 }
 0x4fa   : > { %6539 = vmatpush1.bf16.msra.mxu1 %v7515_v16  ;;  %v7563_v16 = vcombine.low %v3200_v0, %v3204_v1  ;;  %v3249_v0 = vld [vmem:[%s9044_s17 + $0x558] sm:$0xff] }
 0x4fb   : > { %6703 = vmatpush1.bf16.msra.mxu0 %v7517_v17  ;;  %6540 = vmatprep.subr.bf16.mxu1 %v7524_v18  ;;  %v7565_v17 = vcombine.low %v3201_v13, %v3205_v3  ;;  %v7572_v18 = vcombine.high %v3208_v10, %v3212_v11  ;;  %v3253_v1 = vld [vmem:[%s9044_s17 + $0x578] sm:$0xff]  ;;  %v7605_v3 = vcombine.low %v3241_v48, %v3245_v49 }
 0x4fc   : > { %6704 = vmatprep.subr.bf16.mxu0 %v7526_v22  ;;  %v7574_v22 = vcombine.high %v3209_v15, %v3213_v14  ;;  %v3257_v10 = vld [vmem:[%s9044_s17 + $0x598] sm:$0xff] }
 0x4fd   : > { %v3261_v11 = vld [vmem:[%s9044_s17 + $0x5b8] sm:$0xff] }
 0x4fe   : > { %6541 = vmatpush1.bf16.msra.mxu1 %v7523_v40  ;;  %v3221_v40 = vld [vmem:[%s9044_s17 + $0x478] sm:$0xff] }
 0x4ff   : > { %6705 = vmatpush1.bf16.msra.mxu0 %v7525_v25  ;;  %6542 = vmatprep.subr.bf16.mxu1 %v7532_v26  ;;  %v7573_v25 = vcombine.low %v3209_v15, %v3213_v14  ;;  %v7580_v26 = vcombine.high %v3216_v19, %v3220_v20  ;;  %v7582_v24 = vcombine.high %v3217_v23, %v3221_v40 }
 0x500   : > { %6706 = vmatprep.subr.bf16.mxu0 %v7534_v27  ;;  %v3224_v27 = vld [vmem:[%s9044_s17 + $0x490] sm:$0xff]  ;;  %v7613_v14 = vcombine.low %v3249_v0, %v3253_v1 }
 0x501   : > { %v7587_v41 = vcombine.low %v3224_v27, %v3228_v58 }
 0x502   : > { %6543 = vmatpush1.bf16.msra.mxu1 %v7531_v33  ;;  %v7579_v33 = vcombine.low %v3216_v19, %v3220_v20  ;;  %v3265_v19 = vld [vmem:[%s9044_s17 + $0x5d8] sm:$0xff] }
 0x503   : > { %6707 = vmatpush1.bf16.msra.mxu0 %v7533_v34  ;;  %6544 = vmatprep.subr.bf16.mxu1 %v7540_v12  ;;  %v7581_v34 = vcombine.low %v3217_v23, %v3221_v40  ;;  %v7588_v12 = vcombine.high %v3224_v27, %v3228_v58  ;;  %v3269_v20 = vld [vmem:[%s9044_s17 + $0x5f8] sm:$0xff]  ;;  %v7621_v23 = vcombine.low %v3257_v10, %v3261_v11  ;;  %v3276_v27 = vld [vmem:[%s9044_s17 + $0x630] sm:$0xff] }
 0x504   : > { %6708 = vmatprep.subr.bf16.mxu0 %v7542_v35  ;;  %v7590_v35 = vcombine.high %v3225_v30, %v3229_v32  ;;  %v3273_v58 = vld [vmem:[%s9044_s17 + $0x618] sm:$0xff] }
 0x506   : > { %6545 = vmatpush1.bf16.msra.mxu1 %v7539_v42  ;;  %v7589_v42 = vcombine.low %v3225_v30, %v3229_v32  ;;  %v7629_v32 = vcombine.low %v3265_v19, %v3269_v20 }
 0x507   : > { %6709 = vmatpush1.bf16.msra.mxu0 %v7541_v45  ;;  %6546 = vmatprep.subr.bf16.mxu1 %v7548_v46  ;;  %v7596_v45 = vcombine.high %v3232_v36, %v3236_v37  ;;  %v3240_v46 = vld [vmem:[%s9044_s17 + $0x510] sm:$0xff]  ;;  %v3281_v36 = vld [vmem:[%s9044_s17 + $0x658] sm:$0xff] }
 0x508   : > { %6710 = vmatprep.subr.bf16.mxu0 %v7550_v47  ;;  %v3244_v47 = vld [vmem:[%s9044_s17 + $0x530] sm:$0xff]  ;;  %v3285_v37 = vld [vmem:[%s9044_s17 + $0x678] sm:$0xff] }
 0x509   : > { %v7603_v13 = vcombine.low %v3240_v46, %v3244_v47 }
 0x50a   : > { %6547 = vmatpush1.bf16.msra.mxu1 %v7547_v56  ;;  %v7604_v56 = vcombine.high %v3240_v46, %v3244_v47  ;;  %v3289_v46 = vld [vmem:[%s9044_s17 + $0x698] sm:$0xff] }
 0x50b   : > { %6711 = vmatpush1.bf16.msra.mxu0 %v7549_v52  ;;  %6548 = vmatprep.subr.bf16.mxu1 %v7556_v60  ;;  %v7606_v52 = vcombine.high %v3241_v48, %v3245_v49  ;;  %v3248_v60 = vld [vmem:[%s9044_s17 + $0x550] sm:$0xff]  ;;  %v3293_v47 = vld [vmem:[%s9044_s17 + $0x6b8] sm:$0xff]  ;;  %v7645_v49 = vcombine.low %v3281_v36, %v3285_v37 }
 0x50c   : > { %6712 = vmatprep.subr.bf16.mxu0 %v7558_v62  ;;  %v3252_v62 = vld [vmem:[%s9044_s17 + $0x570] sm:$0xff] }
 0x50d   : > { %v7611_v15 = vcombine.low %v3248_v60, %v3252_v62 }
 0x50e   : > { %6549 = vmatpush1.bf16.msra.mxu1 %v7555_v4  ;;  %v7612_v4 = vcombine.high %v3248_v60, %v3252_v62  ;;  %v3297_v60 = vld [vmem:[%s9044_s17 + $0x6d8] sm:$0xff] }
 0x50f   : > { %6713 = vmatpush1.bf16.msra.mxu0 %v7557_v8  ;;  %6550 = vmatprep.subr.bf16.mxu1 %v7564_v38  ;;  %v7614_v8 = vcombine.high %v3249_v0, %v3253_v1  ;;  %v3256_v38 = vld [vmem:[%s9044_s17 + $0x590] sm:$0xff]  ;;  %v3301_v62 = vld [vmem:[%s9044_s17 + $0x6f8] sm:$0xff]  ;;  %v7653_v1 = vcombine.low %v3289_v46, %v3293_v47 }
 0x510   : > { %6714 = vmatprep.subr.bf16.mxu0 %v7566_v9  ;;  %v3260_v9 = vld [vmem:[%s9044_s17 + $0x5b0] sm:$0xff] }
 0x512   : > { %6551 = vmatpush1.bf16.msra.mxu1 %v7563_v16  ;;  %v7620_v16 = vcombine.high %v3256_v38, %v3260_v9 }
 0x513   : > { %6715 = vmatpush1.bf16.msra.mxu0 %v7565_v17  ;;  %6561 = vmatprep.subr.bf16.mxu1 %v7572_v18  ;;  %v7622_v17 = vcombine.high %v3257_v10, %v3261_v11  ;;  %v3264_v18 = vld [vmem:[%s9044_s17 + $0x5d0] sm:$0xff]  ;;  %v7661_v11 = vcombine.low %v3297_v60, %v3301_v62 }
 0x514   : > { %6725 = vmatprep.subr.bf16.mxu0 %v7574_v22  ;;  %v3268_v22 = vld [vmem:[%s9044_s17 + $0x5f0] sm:$0xff] }
 0x515   : > { %6553 = vmatmul.mubr.bf16.vlgmr.msra.gmra.mrb[16].mxu1 %v9187_v43  ;;  %v7628_v40 = vcombine.high %v3264_v18, %v3268_v22  ;;  %v7627_v30 = vcombine.low %v3264_v18, %v3268_v22  ;;  %v3313_v18 = vld [vmem:[%s9044_s17 + $0x758] sm:$0xff] }
 0x516   : > { %6717 = vmatmul.mubr.bf16.vlgmr.msra.gmra.mrb[20].mxu0 %v9187_v43  ;;  %6562 = vmatpush1.bf16.msra.mxu1 %v7571_v21  ;;  %v3237_v43 = vld [vmem:[%s9044_s17 + $0x4f8] sm:$0xff]  ;;  %v7619_v21 = vcombine.low %v3256_v38, %v3260_v9 }
 0x517   : > { %6593 = vmatprep.mubr.bf16.mxu1 %v9195_v50  ;;  %6726 = vmatpush1.bf16.msra.mxu0 %v7573_v25  ;;  %v7597_v55 = vcombine.low %v3233_v39, %v3237_v43  ;;  %v7630_v25 = vcombine.high %v3265_v19, %v3269_v20  ;;  %v3305_v38 = vld [vmem:[%s9044_s17 + $0x718] sm:$0xff] }
 0x518   : > { %6757 = vmatprep.mubr.bf16.mxu0 %v9195_v50  ;;  %6563 = vmatprep.subr.bf16.mxu1 %v7580_v26  ;;  %v7598_v50 = vcombine.high %v3233_v39, %v3237_v43  ;;  %v3272_v26 = vld [vmem:[%s9044_s17 + $0x610] sm:$0xff]  ;;  %v3309_v9 = vld [vmem:[%s9044_s17 + $0x738] sm:$0xff] }
 0x519   : > { %6727 = vmatprep.subr.bf16.mxu0 %v7582_v24  ;;  %v3277_v24 = vld [vmem:[%s9044_s17 + $0x638] sm:$0xff]  ;;  %v7635_v39 = vcombine.low %v3272_v26, %v3276_v27  ;;  %v7669_v20 = vcombine.low %v3305_v38, %v3309_v9 }
 0x51a   : > { %6564 = vmatpush1.bf16.msra.mxu1 %v7579_v33  ;;  %v7636_v33 = vcombine.high %v3272_v26, %v3276_v27  ;;  %v7637_v43 = vcombine.low %v3273_v58, %v3277_v24  ;;  %v3317_v22 = vld [vmem:[%s9044_s17 + $0x778] sm:$0xff] }
 0x51b   : > { %6728 = vmatpush1.bf16.msra.mxu0 %v7581_v34  ;;  %6565 = vmatprep.subr.bf16.mxu1 %v7588_v12  ;;  %v7638_v34 = vcombine.high %v3273_v58, %v3277_v24  ;;  %v3280_v12 = vld [vmem:[%s9044_s17 + $0x650] sm:$0xff]  ;;  %v3321_v26 = vld [vmem:[%s9044_s17 + $0x798] sm:$0xff]  ;;  %v7677_v24 = vcombine.low %v3313_v18, %v3317_v22 }
 0x51c   : > { %6729 = vmatprep.subr.bf16.mxu0 %v7590_v35  ;;  %v3284_v35 = vld [vmem:[%s9044_s17 + $0x670] sm:$0xff]  ;;  %v3325_v27 = vld [vmem:[%s9044_s17 + $0x7b8] sm:$0xff] }
 0x51d   : > { %v7643_v48 = vcombine.low %v3280_v12, %v3284_v35 }
 0x51e   : > { %6566 = vmatpush1.bf16.msra.mxu1 %v7587_v41  ;;  %v7644_v41 = vcombine.high %v3280_v12, %v3284_v35  ;;  %v3329_v12 = vld [vmem:[%s9044_s17 + $0x7d8] sm:$0xff] }
 0x51f   : > { %6730 = vmatpush1.bf16.msra.mxu0 %v7589_v42  ;;  %6567 = vmatprep.subr.bf16.mxu1 %v7596_v45  ;;  %v7646_v42 = vcombine.high %v3281_v36, %v3285_v37  ;;  %v3288_v45 = vld [vmem:[%s9044_s17 + $0x690] sm:$0xff]  ;;  %v3333_v35 = vld [vmem:[%s9044_s17 + $0x7f8] sm:$0xff]  ;;  %v7685_v37 = vcombine.low %v3321_v26, %v3325_v27 }
 0x520   : > { %6731 = vmatprep.subr.bf16.mxu0 %v7598_v50  ;;  %v3292_v50 = vld [vmem:[%s9044_s17 + $0x6b0] sm:$0xff] }
 0x521   : > { %v7651_v0 = vcombine.low %v3288_v45, %v3292_v50 }
 0x522   : > { %6568 = vmatpush1.bf16.msra.mxu1 %v7595_v51  ;;  %v7652_v51 = vcombine.high %v3288_v45, %v3292_v50  ;;  %v3337_v45 = vld [vmem:[%s9044_s17 + $0x818] sm:$0xff] }
 0x523   : > { %6732 = vmatpush1.bf16.msra.mxu0 %v7597_v55  ;;  %6569 = vmatprep.subr.bf16.mxu1 %v7604_v56  ;;  %v7654_v55 = vcombine.high %v3289_v46, %v3293_v47  ;;  %v3296_v56 = vld [vmem:[%s9044_s17 + $0x6d0] sm:$0xff]  ;;  %v3341_v50 = vld [vmem:[%s9044_s17 + $0x838] sm:$0xff]  ;;  %v7693_v47 = vcombine.low %v3329_v12, %v3333_v35 }
 0x524   : > { %6733 = vmatprep.subr.bf16.mxu0 %v7606_v52  ;;  %v3300_v52 = vld [vmem:[%s9044_s17 + $0x6f0] sm:$0xff] }
 0x525   : > { %v7659_v10 = vcombine.low %v3296_v56, %v3300_v52 }
 0x526   : > { %6570 = vmatpush1.bf16.msra.mxu1 %v7603_v13  ;;  %v7660_v13 = vcombine.high %v3296_v56, %v3300_v52  ;;  %v3345_v52 = vld [vmem:[%s9044_s17 + $0x858] sm:$0xff] }
 0x527   : > { %6734 = vmatpush1.bf16.msra.mxu0 %v7605_v3  ;;  %6571 = vmatprep.subr.bf16.mxu1 %v7612_v4  ;;  %v7662_v3 = vcombine.high %v3297_v60, %v3301_v62  ;;  %v3304_v4 = vld [vmem:[%s9044_s17 + $0x710] sm:$0xff]  ;;  %v3349_v60 = vld [vmem:[%s9044_s17 + $0x878] sm:$0xff]  ;;  %v7701_v62 = vcombine.low %v3337_v45, %v3341_v50 }
 0x528   : > { %6735 = vmatprep.subr.bf16.mxu0 %v7614_v8  ;;  %v3308_v8 = vld [vmem:[%s9044_s17 + $0x730] sm:$0xff] }
 0x529   : > { %v7667_v19 = vcombine.low %v3304_v4, %v3308_v8 }
 0x52a   : > { %6572 = vmatpush1.bf16.msra.mxu1 %v7611_v15  ;;  %v7668_v15 = vcombine.high %v3304_v4, %v3308_v8  ;;  %v3353_v4 = vld [vmem:[%s9044_s17 + $0x898] sm:$0xff] }
 0x52b   : > { %6736 = vmatpush1.bf16.msra.mxu0 %v7613_v14  ;;  %6573 = vmatprep.subr.bf16.mxu1 %v7620_v16  ;;  %v7670_v14 = vcombine.high %v3305_v38, %v3309_v9  ;;  %v3312_v16 = vld [vmem:[%s9044_s17 + $0x750] sm:$0xff]  ;;  %v3357_v8 = vld [vmem:[%s9044_s17 + $0x8b8] sm:$0xff]  ;;  %v7709_v9 = vcombine.low %v3345_v52, %v3349_v60 }
 0x52c   : > { %6737 = vmatprep.subr.bf16.mxu0 %v7622_v17  ;;  %v3316_v17 = vld [vmem:[%s9044_s17 + $0x770] sm:$0xff] }
 0x52d   : > { %v7675_v58 = vcombine.low %v3312_v16, %v3316_v17 }
 0x52e   : > { %6574 = vmatpush1.bf16.msra.mxu1 %v7619_v21  ;;  %v7676_v21 = vcombine.high %v3312_v16, %v3316_v17  ;;  %v3361_v16 = vld [vmem:[%s9044_s17 + $0x8d8] sm:$0xff] }
 0x52f   : > { %6738 = vmatpush1.bf16.msra.mxu0 %v7621_v23  ;;  %6575 = vmatprep.subr.bf16.mxu1 %v7628_v40  ;;  %v7678_v23 = vcombine.high %v3313_v18, %v3317_v22  ;;  %v3320_v40 = vld [vmem:[%s9044_s17 + $0x790] sm:$0xff]  ;;  %v7717_v18 = vcombine.low %v3353_v4, %v3357_v8 }
 0x530   : > { %6739 = vmatprep.subr.bf16.mxu0 %v7630_v25  ;;  %v3324_v25 = vld [vmem:[%s9044_s17 + $0x7b0] sm:$0xff] }
 0x531   : > { %v7683_v36 = vcombine.low %v3320_v40, %v3324_v25 }
 0x532   : > { %6576 = vmatpush1.bf16.msra.mxu1 %v7627_v30  ;;  %v7684_v30 = vcombine.high %v3320_v40, %v3324_v25 }
 0x533   : > { %6740 = vmatpush1.bf16.msra.mxu0 %v7629_v32  ;;  %6577 = vmatprep.subr.bf16.mxu1 %v7636_v33  ;;  %v7686_v32 = vcombine.high %v3321_v26, %v3325_v27  ;;  %v3328_v33 = vld [vmem:[%s9044_s17 + $0x7d0] sm:$0xff] }
 0x534   : > { %6741 = vmatprep.subr.bf16.mxu0 %v7638_v34  ;;  %v3332_v34 = vld [vmem:[%s9044_s17 + $0x7f0] sm:$0xff] }
 0x535   : > { %v7691_v46 = vcombine.low %v3328_v33, %v3332_v34 }
 0x536   : > { %6578 = vmatpush1.bf16.msra.mxu1 %v7635_v39  ;;  %v7692_v39 = vcombine.high %v3328_v33, %v3332_v34 }
 0x537   : > { %6742 = vmatpush1.bf16.msra.mxu0 %v7637_v43  ;;  %6579 = vmatprep.subr.bf16.mxu1 %v7644_v41  ;;  %v7694_v43 = vcombine.high %v3329_v12, %v3333_v35  ;;  %v3336_v41 = vld [vmem:[%s9044_s17 + $0x810] sm:$0xff] }
 0x538   : > { %6743 = vmatprep.subr.bf16.mxu0 %v7646_v42  ;;  %v3340_v42 = vld [vmem:[%s9044_s17 + $0x830] sm:$0xff] }
 0x539   : > { %v7699_v56 = vcombine.low %v3336_v41, %v3340_v42 }
 0x53a   : > { %6580 = vmatpush1.bf16.msra.mxu1 %v7643_v48  ;;  %v7700_v48 = vcombine.high %v3336_v41, %v3340_v42 }
 0x53b   : > { %6744 = vmatpush1.bf16.msra.mxu0 %v7645_v49  ;;  %6581 = vmatprep.subr.bf16.mxu1 %v7652_v51  ;;  %v7702_v49 = vcombine.high %v3337_v45, %v3341_v50  ;;  %v3344_v51 = vld [vmem:[%s9044_s17 + $0x850] sm:$0xff] }
 0x53c   : > { %6745 = vmatprep.subr.bf16.mxu0 %v7654_v55  ;;  %v3348_v55 = vld [vmem:[%s9044_s17 + $0x870] sm:$0xff] }
 0x53d   : > { %v7707_v38 = vcombine.low %v3344_v51, %v3348_v55 }
 0x53e   : > { %6582 = vmatpush1.bf16.msra.mxu1 %v7651_v0  ;;  %v7708_v0 = vcombine.high %v3344_v51, %v3348_v55 }
 0x53f   : > { %6746 = vmatpush1.bf16.msra.mxu0 %v7653_v1  ;;  %6583 = vmatprep.subr.bf16.mxu1 %v7660_v13  ;;  %v3352_v1 = vld [vmem:[%s9044_s17 + $0x890] sm:$0xff] }
 0x540   : > { %6747 = vmatprep.subr.bf16.mxu0 %v7662_v3  ;;  %v3356_v13 = vld [vmem:[%s9044_s17 + $0x8b0] sm:$0xff]  ;;  %v7710_v3 = vcombine.high %v3345_v52, %v3349_v60 }
 0x541   : > { %v7715_v17 = vcombine.low %v3352_v1, %v3356_v13  ;;  %v3400_v60 = vld [vmem:[%s9044_s17 + $0xa10] sm:$0xff] }
 0x542   : > { %6584 = vmatpush1.bf16.msra.mxu1 %v7659_v10  ;;  %v7716_v10 = vcombine.high %v3352_v1, %v3356_v13  ;;  %v3405_v1 = vld [vmem:[%s9044_s17 + $0xa38] sm:$0xff] }
 0x543   : > { %6748 = vmatpush1.bf16.msra.mxu0 %v7661_v11  ;;  %6585 = vmatprep.subr.bf16.mxu1 %v7668_v15  ;;  %v7718_v11 = vcombine.high %v3353_v4, %v3357_v8  ;;  %v3360_v15 = vld [vmem:[%s9044_s17 + $0x8d0] sm:$0xff] }
 0x544   : > { %6749 = vmatprep.subr.bf16.mxu0 %v7670_v14  ;;  %v3364_v14 = vld [vmem:[%s9044_s17 + $0x8f0] sm:$0xff] }
 0x545   : > { %v7724_v22 = vcombine.high %v3360_v15, %v3364_v14  ;;  %v7723_v40 = vcombine.low %v3360_v15, %v3364_v14 }
 0x546   : > { %6586 = vmatpush1.bf16.msra.mxu1 %v7667_v19  ;;  %v3368_v19 = vld [vmem:[%s9044_s17 + $0x910] sm:$0xff] }
 0x547   : > { %6750 = vmatpush1.bf16.msra.mxu0 %v7669_v20  ;;  %6587 = vmatprep.subr.bf16.mxu1 %v7676_v21  ;;  %v3372_v20 = vld [vmem:[%s9044_s17 + $0x930] sm:$0xff]  ;;  %v3369_v21 = vld [vmem:[%s9044_s17 + $0x918] sm:$0xff] }
 0x548   : > { %6751 = vmatprep.subr.bf16.mxu0 %v7678_v23  ;;  %v3373_v23 = vld [vmem:[%s9044_s17 + $0x938] sm:$0xff]  ;;  %v7732_v26 = vcombine.high %v3368_v19, %v3372_v20  ;;  %v7731_v33 = vcombine.low %v3368_v19, %v3372_v20 }
 0x549   : > { %v7734_v27 = vcombine.high %v3369_v21, %v3373_v23  ;;  %v7733_v34 = vcombine.low %v3369_v21, %v3373_v23 }
 0x54a   : > { %6588 = vmatpush1.bf16.msra.mxu1 %v7675_v58  ;;  %v3376_v58 = vld [vmem:[%s9044_s17 + $0x950] sm:$0xff] }
 0x54b   : > { %6752 = vmatpush1.bf16.msra.mxu0 %v7677_v24  ;;  %6589 = vmatprep.subr.bf16.mxu1 %v7684_v30  ;;  %v3380_v24 = vld [vmem:[%s9044_s17 + $0x970] sm:$0xff]  ;;  %v3377_v30 = vld [vmem:[%s9044_s17 + $0x958] sm:$0xff] }
 0x54c   : > { %6753 = vmatprep.subr.bf16.mxu0 %v7686_v32  ;;  %v3381_v32 = vld [vmem:[%s9044_s17 + $0x978] sm:$0xff]  ;;  %v7740_v12 = vcombine.high %v3376_v58, %v3380_v24  ;;  %v7739_v41 = vcombine.low %v3376_v58, %v3380_v24 }
 0x54d   : > { %v7742_v35 = vcombine.high %v3377_v30, %v3381_v32  ;;  %v7741_v42 = vcombine.low %v3377_v30, %v3381_v32 }
 0x54e   : > { %6590 = vmatpush1.bf16.msra.mxu1 %v7683_v36  ;;  %v3384_v36 = vld [vmem:[%s9044_s17 + $0x990] sm:$0xff] }
 0x54f   : > { %6754 = vmatpush1.bf16.msra.mxu0 %v7685_v37  ;;  %6591 = vmatprep.subr.bf16.mxu1 %v7692_v39  ;;  %v3388_v37 = vld [vmem:[%s9044_s17 + $0x9b0] sm:$0xff]  ;;  %v3385_v39 = vld [vmem:[%s9044_s17 + $0x998] sm:$0xff] }
 0x550   : > { %6755 = vmatprep.subr.bf16.mxu0 %v7694_v43  ;;  %v3389_v43 = vld [vmem:[%s9044_s17 + $0x9b8] sm:$0xff]  ;;  %v7748_v45 = vcombine.high %v3384_v36, %v3388_v37  ;;  %v7747_v51 = vcombine.low %v3384_v36, %v3388_v37 }
 0x551   : > { %v7750_v50 = vcombine.high %v3385_v39, %v3389_v43  ;;  %v7749_v55 = vcombine.low %v3385_v39, %v3389_v43 }
 0x552   : > { %6592 = vmatpush1.bf16.msra.mxu1 %v7691_v46  ;;  %v3392_v46 = vld [vmem:[%s9044_s17 + $0x9d0] sm:$0xff] }
 0x553   : > { %6756 = vmatpush1.bf16.msra.mxu0 %v7693_v47  ;;  %6602 = vmatprep.subr.bf16.mxu1 %v7700_v48  ;;  %v3396_v47 = vld [vmem:[%s9044_s17 + $0x9f0] sm:$0xff]  ;;  %v3393_v48 = vld [vmem:[%s9044_s17 + $0x9d8] sm:$0xff] }
 0x554   : > { %6766 = vmatprep.subr.bf16.mxu0 %v7702_v49  ;;  %v3397_v49 = vld [vmem:[%s9044_s17 + $0x9f8] sm:$0xff]  ;;  %v7755_v13 = vcombine.low %v3392_v46, %v3396_v47 }
 0x555   : > { %6594 = vmatmul.mubr.bf16.vlgmr.msra.gmra.mrb[16].mxu1 %v9264_v7  ;;  %v7758_v52 = vcombine.high %v3393_v48, %v3397_v49 }
 0x556   : > { %6758 = vmatmul.mubr.bf16.vlgmr.msra.gmra.mrb[20].mxu0 %v9264_v7  ;;  %6603 = vmatpush1.bf16.msra.mxu1 %v7699_v56  ;;  %v3365_v7 = vld [vmem:[%s9044_s17 + $0x8f8] sm:$0xff]  ;;  %v7756_v56 = vcombine.high %v3392_v46, %v3396_v47 }
 0x557   : > { %6634 = vmatprep.mubr.bf16.mxu1 %v9346_v57  ;;  %6767 = vmatpush1.bf16.msra.mxu0 %v7701_v62  ;;  %v7725_v25 = vcombine.low %v3361_v16, %v3365_v7  ;;  %v3404_v62 = vld [vmem:[%s9044_s17 + $0xa30] sm:$0xff] }
 0x558   : > { %6798 = vmatprep.mubr.bf16.mxu0 %v9346_v57  ;;  %6604 = vmatprep.subr.bf16.mxu1 %v7708_v0  ;;  %v7726_v57 = vcombine.high %v3361_v16, %v3365_v7  ;;  %v3401_v0 = vld [vmem:[%s9044_s17 + $0xa18] sm:$0xff]  ;;  %v7764_v4 = vcombine.high %v3400_v60, %v3404_v62  ;;  %v7763_v15 = vcombine.low %v3400_v60, %v3404_v62 }
 0x559   : > { %6768 = vmatprep.subr.bf16.mxu0 %v7710_v3  ;;  %v7757_v3 = vcombine.low %v3393_v48, %v3397_v49  ;;  %v7766_v8 = vcombine.high %v3401_v0, %v3405_v1  ;;  %v7765_v14 = vcombine.low %v3401_v0, %v3405_v1 }
 0x55a   : > { %6605 = vmatpush1.bf16.msra.mxu1 %v7707_v38  ;;  %v3408_v38 = vld [vmem:[%s9044_s17 + $0xa50] sm:$0xff] }
 0x55b   : > { %6769 = vmatpush1.bf16.msra.mxu0 %v7709_v9  ;;  %6606 = vmatprep.subr.bf16.mxu1 %v7716_v10  ;;  %v3412_v9 = vld [vmem:[%s9044_s17 + $0xa70] sm:$0xff]  ;;  %v3409_v10 = vld [vmem:[%s9044_s17 + $0xa58] sm:$0xff] }
 0x55c   : > { %6770 = vmatprep.subr.bf16.mxu0 %v7718_v11  ;;  %v3413_v11 = vld [vmem:[%s9044_s17 + $0xa78] sm:$0xff]  ;;  %v7772_v16 = vcombine.high %v3408_v38, %v3412_v9  ;;  %v7771_v19 = vcombine.low %v3408_v38, %v3412_v9 }
 0x55d   : > { %v7774_v7 = vcombine.high %v3409_v10, %v3413_v11  ;;  %v7773_v20 = vcombine.low %v3409_v10, %v3413_v11 }
 0x55e   : > { %6607 = vmatpush1.bf16.msra.mxu1 %v7715_v17  ;;  %v3416_v17 = vld [vmem:[%s9044_s17 + $0xa90] sm:$0xff] }
 0x55f   : > { %6771 = vmatpush1.bf16.msra.mxu0 %v7717_v18  ;;  %6608 = vmatprep.subr.bf16.mxu1 %v7724_v22  ;;  %v3420_v18 = vld [vmem:[%s9044_s17 + $0xab0] sm:$0xff]  ;;  %v3417_v22 = vld [vmem:[%s9044_s17 + $0xa98] sm:$0xff] }
 0x560   : > { %6772 = vmatprep.subr.bf16.mxu0 %v7726_v57  ;;  %v3421_v57 = vld [vmem:[%s9044_s17 + $0xab8] sm:$0xff]  ;;  %v7780_v21 = vcombine.high %v3416_v17, %v3420_v18  ;;  %v7779_v58 = vcombine.low %v3416_v17, %v3420_v18 }
 0x561   : > { %v7782_v23 = vcombine.high %v3417_v22, %v3421_v57  ;;  %v7781_v24 = vcombine.low %v3417_v22, %v3421_v57 }
 0x562   : > { %6609 = vmatpush1.bf16.msra.mxu1 %v7723_v40  ;;  %v3424_v40 = vld [vmem:[%s9044_s17 + $0xad0] sm:$0xff] }
 0x563   : > { %6773 = vmatpush1.bf16.msra.mxu0 %v7725_v25  ;;  %6610 = vmatprep.subr.bf16.mxu1 %v7732_v26  ;;  %v3428_v25 = vld [vmem:[%s9044_s17 + $0xaf0] sm:$0xff]  ;;  %v3425_v26 = vld [vmem:[%s9044_s17 + $0xad8] sm:$0xff] }
 0x564   : > { %6774 = vmatprep.subr.bf16.mxu0 %v7734_v27  ;;  %v3429_v27 = vld [vmem:[%s9044_s17 + $0xaf8] sm:$0xff]  ;;  %v7788_v30 = vcombine.high %v3424_v40, %v3428_v25  ;;  %v7787_v36 = vcombine.low %v3424_v40, %v3428_v25 }
 0x565   : > { %v7790_v32 = vcombine.high %v3425_v26, %v3429_v27  ;;  %v7789_v37 = vcombine.low %v3425_v26, %v3429_v27  ;;  %v3477_v40 = vld [vmem:[%s9044_s17 + $0xc78] sm:$0xff]  ;;  %v3480_v27 = vld [vmem:[%s9044_s17 + $0xc90] sm:$0xff] }
 0x566   : > { %6611 = vmatpush1.bf16.msra.mxu1 %v7731_v33  ;;  %v3432_v33 = vld [vmem:[%s9044_s17 + $0xb10] sm:$0xff] }
 0x567   : > { %6775 = vmatpush1.bf16.msra.mxu0 %v7733_v34  ;;  %6612 = vmatprep.subr.bf16.mxu1 %v7740_v12  ;;  %v3436_v34 = vld [vmem:[%s9044_s17 + $0xb30] sm:$0xff]  ;;  %v3433_v12 = vld [vmem:[%s9044_s17 + $0xb18] sm:$0xff] }
 0x568   : > { %6776 = vmatprep.subr.bf16.mxu0 %v7742_v35  ;;  %v3437_v35 = vld [vmem:[%s9044_s17 + $0xb38] sm:$0xff]  ;;  %v7796_v39 = vcombine.high %v3432_v33, %v3436_v34  ;;  %v7795_v46 = vcombine.low %v3432_v33, %v3436_v34 }
 0x569   : > { %v7798_v43 = vcombine.high %v3433_v12, %v3437_v35  ;;  %v7797_v47 = vcombine.low %v3433_v12, %v3437_v35 }
 0x56a   : > { %6613 = vmatpush1.bf16.msra.mxu1 %v7739_v41  ;;  %v3440_v41 = vld [vmem:[%s9044_s17 + $0xb50] sm:$0xff] }
 0x56b   : > { %6777 = vmatpush1.bf16.msra.mxu0 %v7741_v42  ;;  %6614 = vmatprep.subr.bf16.mxu1 %v7748_v45  ;;  %v3444_v42 = vld [vmem:[%s9044_s17 + $0xb70] sm:$0xff]  ;;  %v3441_v45 = vld [vmem:[%s9044_s17 + $0xb58] sm:$0xff] }
 0x56c   : > { %6778 = vmatprep.subr.bf16.mxu0 %v7750_v50  ;;  %v3445_v50 = vld [vmem:[%s9044_s17 + $0xb78] sm:$0xff]  ;;  %v7804_v48 = vcombine.high %v3440_v41, %v3444_v42  ;;  %v7803_v60 = vcombine.low %v3440_v41, %v3444_v42 }
 0x56d   : > { %v7806_v49 = vcombine.high %v3441_v45, %v3445_v50  ;;  %v7805_v62 = vcombine.low %v3441_v45, %v3445_v50  ;;  %v3496_v45 = vld [vmem:[%s9044_s17 + $0xd10] sm:$0xff] }
 0x56e   : > { %6615 = vmatpush1.bf16.msra.mxu1 %v7747_v51  ;;  %v3448_v51 = vld [vmem:[%s9044_s17 + $0xb90] sm:$0xff] }
 0x56f   : > { %6779 = vmatpush1.bf16.msra.mxu0 %v7749_v55  ;;  %6616 = vmatprep.subr.bf16.mxu1 %v7756_v56  ;;  %v3452_v55 = vld [vmem:[%s9044_s17 + $0xbb0] sm:$0xff]  ;;  %v3449_v56 = vld [vmem:[%s9044_s17 + $0xb98] sm:$0xff] }
 0x570   : > { %6780 = vmatprep.subr.bf16.mxu0 %v7758_v52  ;;  %v3453_v52 = vld [vmem:[%s9044_s17 + $0xbb8] sm:$0xff]  ;;  %v7812_v0 = vcombine.high %v3448_v51, %v3452_v55  ;;  %v7811_v38 = vcombine.low %v3448_v51, %v3452_v55  ;;  %v3500_v50 = vld [vmem:[%s9044_s17 + $0xd30] sm:$0xff] }
 0x571   : > { %v7814_v1 = vcombine.high %v3449_v56, %v3453_v52  ;;  %v7813_v9 = vcombine.low %v3449_v56, %v3453_v52  ;;  %v7860_v51 = vcombine.high %v3496_v45, %v3500_v50  ;;  %v3504_v56 = vld [vmem:[%s9044_s17 + $0xd50] sm:$0xff] }
 0x572   : > { %6617 = vmatpush1.bf16.msra.mxu1 %v7755_v13  ;;  %v3456_v13 = vld [vmem:[%s9044_s17 + $0xbd0] sm:$0xff] }
 0x573   : > { %6781 = vmatpush1.bf16.msra.mxu0 %v7757_v3  ;;  %6618 = vmatprep.subr.bf16.mxu1 %v7764_v4  ;;  %v3460_v3 = vld [vmem:[%s9044_s17 + $0xbf0] sm:$0xff]  ;;  %v3457_v4 = vld [vmem:[%s9044_s17 + $0xbd8] sm:$0xff] }
 0x574   : > { %6782 = vmatprep.subr.bf16.mxu0 %v7766_v8  ;;  %v3461_v8 = vld [vmem:[%s9044_s17 + $0xbf8] sm:$0xff]  ;;  %v7820_v10 = vcombine.high %v3456_v13, %v3460_v3  ;;  %v7819_v17 = vcombine.low %v3456_v13, %v3460_v3  ;;  %v3508_v52 = vld [vmem:[%s9044_s17 + $0xd70] sm:$0xff] }
 0x575   : > { %v7822_v11 = vcombine.high %v3457_v4, %v3461_v8  ;;  %v7821_v18 = vcombine.low %v3457_v4, %v3461_v8  ;;  %v7868_v3 = vcombine.high %v3504_v56, %v3508_v52  ;;  %v3512_v8 = vld [vmem:[%s9044_s17 + $0xd90] sm:$0xff] }
 0x576   : > { %6619 = vmatpush1.bf16.msra.mxu1 %v7763_v15  ;;  %v3464_v15 = vld [vmem:[%s9044_s17 + $0xc10] sm:$0xff] }
 0x577   : > { %6783 = vmatpush1.bf16.msra.mxu0 %v7765_v14  ;;  %6620 = vmatprep.subr.bf16.mxu1 %v7772_v16  ;;  %v3468_v14 = vld [vmem:[%s9044_s17 + $0xc30] sm:$0xff]  ;;  %v3465_v16 = vld [vmem:[%s9044_s17 + $0xc18] sm:$0xff] }
 0x578   : > { %6784 = vmatprep.subr.bf16.mxu0 %v7774_v7  ;;  %v3469_v7 = vld [vmem:[%s9044_s17 + $0xc38] sm:$0xff]  ;;  %v7828_v22 = vcombine.high %v3464_v15, %v3468_v14 }
 0x579   : > { %v7830_v57 = vcombine.high %v3465_v16, %v3469_v7  ;;  %v7829_v25 = vcombine.low %v3465_v16, %v3469_v7  ;;  %v7867_v7 = vcombine.low %v3504_v56, %v3508_v52 }
 0x57a   : > { %6621 = vmatpush1.bf16.msra.mxu1 %v7771_v19  ;;  %v3472_v19 = vld [vmem:[%s9044_s17 + $0xc50] sm:$0xff] }
 0x57b   : > { %6785 = vmatpush1.bf16.msra.mxu0 %v7773_v20  ;;  %6622 = vmatprep.subr.bf16.mxu1 %v7780_v21  ;;  %v3476_v20 = vld [vmem:[%s9044_s17 + $0xc70] sm:$0xff]  ;;  %v7827_v21 = vcombine.low %v3464_v15, %v3468_v14  ;;  %v3517_v15 = vld [vmem:[%s9044_s17 + $0xdb8] sm:$0xff] }
 0x57c   : > { %6786 = vmatprep.subr.bf16.mxu0 %v7782_v23  ;;  %v3473_v23 = vld [vmem:[%s9044_s17 + $0xc58] sm:$0xff]  ;;  %v7836_v26 = vcombine.high %v3472_v19, %v3476_v20  ;;  %v7835_v33 = vcombine.low %v3472_v19, %v3476_v20  ;;  %v3524_v19 = vld [vmem:[%s9044_s17 + $0xdf0] sm:$0xff] }
 0x57d   : > { %v7837_v34 = vcombine.low %v3473_v23, %v3477_v40 }
 0x57e   : > { %6623 = vmatpush1.bf16.msra.mxu1 %v7779_v58  ;;  %v3484_v58 = vld [vmem:[%s9044_s17 + $0xcb0] sm:$0xff] }
 0x57f   : > { %6787 = vmatpush1.bf16.msra.mxu0 %v7781_v24  ;;  %6624 = vmatprep.subr.bf16.mxu1 %v7788_v30  ;;  %v7838_v24 = vcombine.high %v3473_v23, %v3477_v40  ;;  %v3481_v30 = vld [vmem:[%s9044_s17 + $0xc98] sm:$0xff]  ;;  %v7844_v12 = vcombine.high %v3480_v27, %v3484_v58 }
 0x580   : > { %6788 = vmatprep.subr.bf16.mxu0 %v7790_v32  ;;  %v3485_v32 = vld [vmem:[%s9044_s17 + $0xcb8] sm:$0xff] }
 0x581   : > { %v7846_v35 = vcombine.high %v3481_v30, %v3485_v32  ;;  %v7845_v41 = vcombine.low %v3481_v30, %v3485_v32  ;;  %v3521_v40 = vld [vmem:[%s9044_s17 + $0xdd8] sm:$0xff] }
 0x582   : > { %6625 = vmatpush1.bf16.msra.mxu1 %v7787_v36  ;;  %v3488_v36 = vld [vmem:[%s9044_s17 + $0xcd0] sm:$0xff] }
 0x583   : > { %6789 = vmatpush1.bf16.msra.mxu0 %v7789_v37  ;;  %6626 = vmatprep.subr.bf16.mxu1 %v7796_v39  ;;  %v3492_v37 = vld [vmem:[%s9044_s17 + $0xcf0] sm:$0xff]  ;;  %v3493_v39 = vld [vmem:[%s9044_s17 + $0xcf8] sm:$0xff] }
 0x584   : > { %6790 = vmatprep.subr.bf16.mxu0 %v7798_v43  ;;  %v7843_v43 = vcombine.low %v3480_v27, %v3484_v58  ;;  %v7852_v42 = vcombine.high %v3488_v36, %v3492_v37 }
 0x586   : > { %6627 = vmatpush1.bf16.msra.mxu1 %v7795_v46  ;;  %v3497_v46 = vld [vmem:[%s9044_s17 + $0xd18] sm:$0xff] }
 0x587   : > { %6791 = vmatpush1.bf16.msra.mxu0 %v7797_v47  ;;  %6628 = vmatprep.subr.bf16.mxu1 %v7804_v48  ;;  %v3501_v47 = vld [vmem:[%s9044_s17 + $0xd38] sm:$0xff]  ;;  %v7851_v48 = vcombine.low %v3488_v36, %v3492_v37  ;;  %v3532_v36 = vld [vmem:[%s9044_s17 + $0xe30] sm:$0xff] }
 0x588   : > { %6792 = vmatprep.subr.bf16.mxu0 %v7806_v49  ;;  %v7862_v55 = vcombine.high %v3497_v46, %v3501_v47  ;;  %v7861_v13 = vcombine.low %v3497_v46, %v3501_v47  ;;  %v3529_v37 = vld [vmem:[%s9044_s17 + $0xe18] sm:$0xff]  ;;  %v3540_v46 = vld [vmem:[%s9044_s17 + $0xe70] sm:$0xff] }
 0x589   : > { %v3537_v47 = vld [vmem:[%s9044_s17 + $0xe58] sm:$0xff] }
 0x58a   : > { %6629 = vmatpush1.bf16.msra.mxu1 %v7803_v60  ;;  %v3505_v60 = vld [vmem:[%s9044_s17 + $0xd58] sm:$0xff] }
 0x58b   : > { %6793 = vmatpush1.bf16.msra.mxu0 %v7805_v62  ;;  %6630 = vmatprep.subr.bf16.mxu1 %v7812_v0  ;;  %v3509_v62 = vld [vmem:[%s9044_s17 + $0xd78] sm:$0xff]  ;;  %v7859_v0 = vcombine.low %v3496_v45, %v3500_v50  ;;  %v3536_v50 = vld [vmem:[%s9044_s17 + $0xe50] sm:$0xff] }
 0x58c   : > { %6794 = vmatprep.subr.bf16.mxu0 %v7814_v1  ;;  %v9653_v1 = vld [vmem:[%s440_s25] sm:$0xff]  ;;  %v7870_v4 = vcombine.high %v3505_v60, %v3509_v62  ;;  %v7900_v56 = vcombine.high %v3536_v50, %v3540_v46 }
 0x58d   : > { %v3599_v14 = vrot.slane %v9653_v1, %v9056_v31  ;;  %v3607_v16 = vrot.slane %v9653_v1, %v9063_v53 }
 0x58e   : > { %6631 = vmatpush1.bf16.msra.mxu1 %v7811_v38  ;;  %v3516_v38 = vld [vmem:[%s9044_s17 + $0xdb0] sm:$0xff] }
 0x58f   : > { %6795 = vmatpush1.bf16.msra.mxu0 %v7813_v9  ;;  %6632 = vmatprep.subr.bf16.mxu1 %v7820_v10  ;;  %v3595_v9 = vrot.slane %v9653_v1, %v9053_v29  ;;  %v3603_v10 = vrot.slane %v9653_v1, %v9086_v59  ;;  %v7869_v29 = vcombine.low %v3505_v60, %v3509_v62  ;;  %v3544_v60 = vld [vmem:[%s9044_s17 + $0xe90] sm:$0xff] }
 0x590   : > { %6796 = vmatprep.subr.bf16.mxu0 %v7822_v11  ;;  %v3513_v11 = vld [vmem:[%s9044_s17 + $0xd98] sm:$0xff]  ;;  %v3548_v62 = vld [vmem:[%s9044_s17 + $0xeb0] sm:$0xff] }
 0x591   : > { %v7878_v59 = vcombine.high %v3513_v11, %v3517_v15 }
 0x592   : > { %6633 = vmatpush1.bf16.msra.mxu1 %v7819_v17  ;;  %v7876_v17 = vcombine.high %v3512_v8, %v3516_v38 }
 0x593   : > { %6797 = vmatpush1.bf16.msra.mxu0 %v7821_v18  ;;  %6643 = vmatprep.subr.bf16.mxu1 %v7828_v22 }
 0x594   : > { %6807 = vmatprep.subr.bf16.mxu0 %v7830_v57  ;;  %v3520_v57 = vld [vmem:[%s9044_s17 + $0xdd0] sm:$0xff] }
 0x595   : > { %6635 = vmatmul.mubr.bf16.vlgmr.msra.gmra.mrb[16].mxu1 %v9348_v61 }
 0x596   : > { %6799 = vmatmul.mubr.bf16.vlgmr.msra.gmra.mrb[20].mxu0 %v9348_v61  ;;  %6644 = vmatpush1.bf16.msra.mxu1 %v7827_v21  ;;  %v3489_v61 = vld [vmem:[%s9044_s17 + $0xcd8] sm:$0xff] }
 0x597   : > { %6675 = vmatprep.mubr.bf16.mxu1 %v9356_v6  ;;  %6808 = vmatpush1.bf16.msra.mxu0 %v7829_v25  ;;  %v7853_v49 = vcombine.low %v3489_v61, %v3493_v39  ;;  %v3525_v25 = vld [vmem:[%s9044_s17 + $0xdf8] sm:$0xff] }
 0x598   : > { %6839 = vmatprep.mubr.bf16.mxu0 %v9356_v6  ;;  %6645 = vmatprep.subr.bf16.mxu1 %v7836_v26  ;;  %v7854_v6 = vcombine.high %v3489_v61, %v3493_v39  ;;  %v3533_v61 = vld [vmem:[%s9044_s17 + $0xe38] sm:$0xff]  ;;  %v8660_v39 = vmov 1983009808  }
 0x599   : > { %6809 = vmatprep.subr.bf16.mxu0 %v7838_v24  ;;  %v7875_v24 = vcombine.low %v3512_v8, %v3516_v38  ;;  %v7894_v45 = vcombine.high %v3529_v37, %v3533_v61  ;;  %v7899_v38 = vcombine.low %v3536_v50, %v3540_v46 }
 0x59a   : > { %6646 = vmatpush1.bf16.msra.mxu1 %v7835_v33  ;;  %v7877_v33 = vcombine.low %v3513_v11, %v3517_v15  ;;  %v7908_v11 = vcombine.high %v3544_v60, %v3548_v62 }
 0x59b   : > { %6810 = vmatpush1.bf16.msra.mxu0 %v7837_v34  ;;  %6647 = vmatprep.subr.bf16.mxu1 %v7844_v12  ;;  %v7884_v34 = vcombine.high %v3520_v57, %v3524_v19  ;;  %v7886_v12 = vcombine.high %v3521_v40, %v3525_v25 }
 0x59c   : > { %6811 = vmatprep.subr.bf16.mxu0 %v7846_v35  ;;  %v3528_v35 = vld [vmem:[%s9044_s17 + $0xe10] sm:$0xff] }
 0x59e   : > { %6648 = vmatpush1.bf16.msra.mxu1 %v7843_v43  ;;  %v6867_v43 = vunpack.c.l.s4 %v8660_v39  ;;  %v3576_v39 = vld [vmem:[%s9044_s17 + $0xf90] sm:$0xff] }
 0x59f   : > { %6812 = vmatpush1.bf16.msra.mxu0 %v7845_v41  ;;  %6649 = vmatprep.subr.bf16.mxu1 %v7852_v42  ;;  %v7883_v41 = vcombine.low %v3520_v57, %v3524_v19  ;;  %v7885_v42 = vcombine.low %v3521_v40, %v3525_v25  ;;  %v7907_v57 = vcombine.low %v3544_v60, %v3548_v62  ;;  %v3564_v40 = vld [vmem:[%s9044_s17 + $0xf30] sm:$0xff]  ;;  %v3561_v25 = vld [vmem:[%s9044_s17 + $0xf18] sm:$0xff] }
 0x5a0   : > { %6813 = vmatprep.subr.bf16.mxu0 %v7854_v6  ;;  %v7892_v6 = vcombine.high %v3528_v35, %v3532_v36 }
 0x5a2   : > { %6650 = vmatpush1.bf16.msra.mxu1 %v7851_v48  ;;  %v3541_v48 = vld [vmem:[%s9044_s17 + $0xe78] sm:$0xff] }
 0x5a3   : > { %6814 = vmatpush1.bf16.msra.mxu0 %v7853_v49  ;;  %6651 = vmatprep.subr.bf16.mxu1 %v7860_v51  ;;  %v6868_v49 = vunpack.c.0.s8 %v6867_v43  ;;  %v7891_v51 = vcombine.low %v3528_v35, %v3532_v36  ;;  %v7902_v52 = vcombine.high %v3537_v47, %v3541_v48  ;;  %v3580_v43 = vld [vmem:[%s9044_s17 + $0xfb0] sm:$0xff] }
 0x5a4   : > { %6815 = vmatprep.subr.bf16.mxu0 %v7862_v55  ;;  %v7893_v55 = vcombine.low %v3529_v37, %v3533_v61  ;;  %v7940_v50 = vcombine.high %v3576_v39, %v3580_v43 }
 0x5a5   : > { %v9684_v8 = vsub.s32 %v6868_v49, %v9050_v28  ;;  %v3585_v49 = vld [vmem:[%s9044_s17 + $0xfd8] sm:$0xff] }
 0x5a6   : > { %6652 = vmatpush1.bf16.msra.mxu1 %v7859_v0 }
 0x5a7   : > { %6816 = vmatpush1.bf16.msra.mxu0 %v7861_v13  ;;  %6653 = vmatprep.subr.bf16.mxu1 %v7868_v3  ;;  %v3545_v13 = vld [vmem:[%s9044_s17 + $0xe98] sm:$0xff] }
 0x5a8   : > { %v6349_v18 = vpop.f32.mrb[12].mxu1  ;;  %v6513_v22 = vpop.f32.mrb[16].mxu0  ;;  %6817 = vmatprep.subr.bf16.mxu0 %v7870_v4  ;;  %v3549_v3 = vld [vmem:[%s9044_s17 + $0xeb8] sm:$0xff] }
 0x5a9   : > { %v7967_v20 = vadd.f32 %v6349_v18, %v3595_v9  ;;  %v7969_v21 = vadd.f32 %v6513_v22, %v3603_v10  ;;  %v6351_v23 = vpop.f32.mrb[13].mxu1  ;;  %v6515_v31 = vpop.f32.mrb[17].mxu0  ;;  %v7901_v10 = vcombine.low %v3537_v47, %v3541_v48  ;;  %v3553_v18 = vld [vmem:[%s9044_s17 + $0xed8] sm:$0xff]  ;;  %v3584_v47 = vld [vmem:[%s9044_s17 + $0xfd0] sm:$0xff] }
 0x5aa   : > { %v7968_v53 = vadd.f32 %v6351_v23, %v3599_v14  ;;  %v7970_v26 = vadd.f32 %v6515_v31, %v3607_v16  ;;  %v6353_v27 = vpop.f32.mrb[14].mxu1  ;;  %v6517_v58 = vpop.f32.mrb[18].mxu0  ;;  %6654 = vmatpush1.bf16.msra.mxu1 %v7867_v7  ;;  %v7910_v16 = vcombine.high %v3545_v13, %v3549_v3  ;;  %v3552_v7 = vld [vmem:[%s9044_s17 + $0xed0] sm:$0xff]  ;;  %v3557_v22 = vld [vmem:[%s9044_s17 + $0xef8] sm:$0xff] }
 0x5ab   : > { %8286 = vtanh.f32 %v7967_v20  ;;  %6818 = vmatpush1.bf16.msra.mxu0 %v7869_v29  ;;  %v6354_v30 = vpop.f32.mrb[15].mxu1  ;;  %v6518_v32 = vpop.f32.mrb[19].mxu0  ;;  %6655 = vmatprep.subr.bf16.mxu1 %v7876_v17  ;;  %v3556_v29 = vld [vmem:[%s9044_s17 + $0xef0] sm:$0xff]  ;;  %v7909_v20 = vcombine.low %v3545_v13, %v3549_v3  ;;  %v7918_v23 = vcombine.high %v3553_v18, %v3557_v22  ;;  %v7917_v58 = vcombine.low %v3553_v18, %v3557_v22 }
 0x5ac   : > { %8288 = vtanh.f32 %v7969_v21  ;;  %6819 = vmatprep.subr.bf16.mxu0 %v7878_v59  ;;  %v7916_v21 = vcombine.high %v3552_v7, %v3556_v29  ;;  %v3560_v31 = vld [vmem:[%s9044_s17 + $0xf10] sm:$0xff]  ;;  %v7915_v27 = vcombine.low %v3552_v7, %v3556_v29  ;;  %v3611_v13 = vrot.slane %v9653_v1, %v1416_v63 }
 0x5ad   : > { %8290 = vtanh.f32 %v7968_v53  ;;  %v3565_v53 = vld [vmem:[%s9044_s17 + $0xf38] sm:$0xff]  ;;  %v3568_v32 = vld [vmem:[%s9044_s17 + $0xf50] sm:$0xff]  ;;  %v7923_v35 = vcombine.low %v3560_v31, %v3564_v40  ;;  %v3619_v3 = vrot.slane %v9653_v1, %v1424_v54 }
 0x5ae   : > { %8292 = vtanh.f32 %v7970_v26  ;;  %6656 = vmatpush1.bf16.msra.mxu1 %v7875_v24  ;;  %v7924_v24 = vcombine.high %v3560_v31, %v3564_v40  ;;  %v7926_v30 = vcombine.high %v3561_v25, %v3565_v53  ;;  %v7925_v36 = vcombine.low %v3561_v25, %v3565_v53  ;;  %v3588_v48 = vld [vmem:[%s9044_s17 + $0xff0] sm:$0xff] }
 0x5af   : > { %6820 = vmatpush1.bf16.msra.mxu0 %v7877_v33  ;;  %6657 = vmatprep.subr.bf16.mxu1 %v7884_v34  ;;  %v3572_v33 = vld [vmem:[%s9044_s17 + $0xf70] sm:$0xff]  ;;  %v3569_v34 = vld [vmem:[%s9044_s17 + $0xf58] sm:$0xff]  ;;  %v7947_v62 = vcombine.low %v3584_v47, %v3588_v48 }
 0x5b0   : > { %6821 = vmatprep.subr.bf16.mxu0 %v7886_v12  ;;  %v3573_v12 = vld [vmem:[%s9044_s17 + $0xf78] sm:$0xff]  ;;  %v7932_v37 = vcombine.high %v3568_v32, %v3572_v33 }
 0x5b1   : > { %v7934_v61 = vcombine.high %v3569_v34, %v3573_v12 }
 0x5b2   : > { %6658 = vmatpush1.bf16.msra.mxu1 %v7883_v41  ;;  %v3577_v41 = vld [vmem:[%s9044_s17 + $0xf98] sm:$0xff] }
 0x5b3   : > { %6822 = vmatpush1.bf16.msra.mxu0 %v7885_v42  ;;  %6659 = vmatprep.subr.bf16.mxu1 %v7892_v6  ;;  %v3581_v42 = vld [vmem:[%s9044_s17 + $0xfb8] sm:$0xff]  ;;  %v7931_v6 = vcombine.low %v3568_v32, %v3572_v33 }
 0x5b4   : > { %6823 = vmatprep.subr.bf16.mxu0 %v7894_v45  ;;  %v7933_v45 = vcombine.low %v3569_v34, %v3573_v12  ;;  %v7942_v46 = vcombine.high %v3577_v41, %v3581_v42 }
 0x5b5   : > { %v8287_v0 = vpop.eup %8286 }
 0x5b6   : > { %v8289_v4 = vpop.eup %8288  ;;  %6660 = vmatpush1.bf16.msra.mxu1 %v7891_v51  ;;  %v3589_v51 = vld [vmem:[%s9044_s17 + $0xff8] sm:$0xff] }
 0x5b7   : > { %v8291_v9 = vpop.eup %8290  ;;  %6824 = vmatpush1.bf16.msra.mxu0 %v7893_v55  ;;  %6661 = vmatprep.subr.bf16.mxu1 %v7900_v56  ;;  %v7939_v55 = vcombine.low %v3576_v39, %v3580_v43  ;;  %v7941_v56 = vcombine.low %v3577_v41, %v3581_v42  ;;  %v7950_v60 = vcombine.high %v3585_v49, %v3589_v51 }
 0x5b8   : > { %v8293_v15 = vpop.eup %8292  ;;  %v6864_v14 = vcombine.low %v8287_v0, %v8291_v9  ;;  %6825 = vmatprep.subr.bf16.mxu0 %v7902_v52  ;;  %v7948_v52 = vcombine.high %v3584_v47, %v3588_v48  ;;  %v7949_v0 = vcombine.low %v3585_v49, %v3589_v51 }
 0x5b9   : > { %v6865_v17 = vcombine.low %v8289_v4, %v8293_v15  ;;  %v3615_v4 = vrot.slane %v9653_v1, %v1420_v2 }
 0x5ba   : > { %v6872_v59 = vrot.slane %v6864_v14, %v9684_v8  ;;  %6662 = vmatpush1.bf16.msra.mxu1 %v7899_v38  ;;  %v3623_v38 = vrot.slane %v9653_v1, %v1428_v5 }
 0x5bb   : > { %v6879_v19 = vrot.slane %v6865_v17, %v9684_v8  ;;  %6826 = vmatpush1.bf16.msra.mxu0 %v7901_v10  ;;  %6663 = vmatprep.subr.bf16.mxu1 %v7908_v11 }
 0x5bc   : > { %6827 = vmatprep.subr.bf16.mxu0 %v7910_v16 }
 0x5bd   : > { %v6880_v26 = vcombine.low %v6872_v59, %v6879_v19 }
 0x5be   : > { %6664 = vmatpush1.bf16.msra.mxu1 %v7907_v57 }
 0x5bf   : > { %6828 = vmatpush1.bf16.msra.mxu0 %v7909_v20  ;;  %6665 = vmatprep.subr.bf16.mxu1 %v7916_v21  ;;  %6900 = vst [vmem:[%s9697_s5] sm:$0xff] %v6880_v26 }
 0x5c0   : > { %6829 = vmatprep.subr.bf16.mxu0 %v7918_v23 }
 0x5c2   : > { %6666 = vmatpush1.bf16.msra.mxu1 %v7915_v27 }
 0x5c3   : > { %6830 = vmatpush1.bf16.msra.mxu0 %v7917_v58  ;;  %6667 = vmatprep.subr.bf16.mxu1 %v7924_v24 }
 0x5c4   : > { %6831 = vmatprep.subr.bf16.mxu0 %v7926_v30 }
 0x5c6   : > { %6668 = vmatpush1.bf16.msra.mxu1 %v7923_v35 }
 0x5c7   : > { %6832 = vmatpush1.bf16.msra.mxu0 %v7925_v36  ;;  %6669 = vmatprep.subr.bf16.mxu1 %v7932_v37 }
 0x5c8   : > { %6833 = vmatprep.subr.bf16.mxu0 %v7934_v61 }
 0x5ca   : > { %6670 = vmatpush1.bf16.msra.mxu1 %v7931_v6 }
 0x5cb   : > { %6834 = vmatpush1.bf16.msra.mxu0 %v7933_v45  ;;  %6671 = vmatprep.subr.bf16.mxu1 %v7940_v50 }
 0x5cc   : > { %6835 = vmatprep.subr.bf16.mxu0 %v7942_v46 }
 0x5ce   : > { %6672 = vmatpush1.bf16.msra.mxu1 %v7939_v55 }
 0x5cf   : > { %6836 = vmatpush1.bf16.msra.mxu0 %v7941_v56  ;;  %6673 = vmatprep.subr.bf16.mxu1 %v7948_v52 }
 0x5d0   : > { %6837 = vmatprep.subr.bf16.mxu0 %v7950_v60 }
 0x5d2   : > { %6674 = vmatpush1.bf16.msra.mxu1 %v7947_v62 }
 0x5d3   : > { %6838 = vmatpush1.bf16.msra.mxu0 %v7949_v0 }
 0x5d5   : > { %6676 = vmatmul.mubr.bf16.vlgmr.msra.gmra.mrb[16].mxu1 %v9426_v44 }
 0x5d6   : > { %6840 = vmatmul.mubr.bf16.vlgmr.msra.gmra.mrb[20].mxu0 %v9426_v44 }
 0x6a8   : > { %v6677_v9 = vpop.f32.mrb[16].mxu1 }
 0x6a9   : > { %v7971_v10 = vadd.f32 %v6677_v9, %v3611_v13  ;;  %v6841_v11 = vpop.f32.mrb[20].mxu0  ;;  %v6679_v44 = vpop.f32.mrb[17].mxu1 }
 0x6aa   : > { %v7973_v15 = vadd.f32 %v6841_v11, %v3619_v3  ;;  %v7972_v14 = vadd.f32 %v6679_v44, %v3615_v4  ;;  %v6843_v16 = vpop.f32.mrb[21].mxu0  ;;  %v6681_v63 = vpop.f32.mrb[18].mxu1 }
 0x6ab   : > { %8294 = vtanh.f32 %v7971_v10  ;;  %v7974_v54 = vadd.f32 %v6843_v16, %v3623_v38  ;;  %v6845_v7 = vpop.f32.mrb[22].mxu0  ;;  %v6682_v29 = vpop.f32.mrb[19].mxu1 }
 0x6ac   : > { %8296 = vtanh.f32 %v7973_v15  ;;  %v6846_v2 = vpop.f32.mrb[23].mxu0 }
 0x6ad   : > { %8298 = vtanh.f32 %v7972_v14 }
 0x6ae   : > { %8300 = vtanh.f32 %v7974_v54 }
 0x6b5   : > { %v8295_v28 = vpop.eup %8294 }
 0x6b6   : > { %v8297_v5 = vpop.eup %8296 }
 0x6b7   : > { %v8299_v1 = vpop.eup %8298 }
 0x6b8   : > { %v8301_v17 = vpop.eup %8300  ;;  %v6881_v18 = vcombine.low %v8295_v28, %v8299_v1 }
 0x6b9   : > { %v6882_v22 = vcombine.low %v8297_v5, %v8301_v17 }
 0x6ba   : > { %v6889_v59 = vrot.slane %v6881_v18, %v9684_v8 }
 0x6bb   : > { %v6896_v57 = vrot.slane %v6882_v22, %v9684_v8 }
 0x6bd   : > { %v6897_v19 = vcombine.low %v6889_v59, %v6896_v57 }
 0x6bf   : > { %6901 = vst [vmem:[%s9697_s5 + $0x8] sm:$0xff] %v6897_v19 }
 0x6c0   : > { %8572 = shalt.err (!%p8569_p12)
}
 0x6c1   : > { %s8573_s7 = scalar_lea.hbm %s9733_s26, 256  ;;  %s8577_s22 = scalar_lea.hbm %s9843_s3, 3072 }
 0x6c2   : > { %p8574_p0 = scmp.ne.s32.totalorder %s9733_s26, %s8573_s7  ;;  %p8578_p8 = scmp.lt.u32.totalorder %s9733_s26, %s9843_s3 }
 0x6c3   : > { %p8579_p4 = scmp.lt.u32.totalorder %s8577_s22, %s8573_s7  ;;  %p8581_p10 = scmp.lt.u32.totalorder %s8573_s7, %s9733_s26 }
 0x6c4   : > { %p8575_p2 = pnand %p8574_p0, %p9844_p5 }
 0x6c5   : > { %p8580_p7 = por %p8579_p4, %p8578_p8 }
 0x6c6   : > { %p8576_p6 = pneg %p8575_p2 }
 0x6c7   : > { %p8582_p1 = por %p8581_p10, %p8580_p7 }
 0x6c9   : > { %p8583_p13 = pnand %p8582_p1, %p8576_p6 }
 0x6cb   : > { %8586 = shalt.err (!%p8583_p13)
}
 0x6cc   : > { %8071 = dma.vmem_to_hbm [thread:$0]  (%p9844_p5), %s9735_s1, 256, %s9733_s26, %s6903_s9  }
 0x6cd PF: > { %s9845_s21 = sld [smem:[#allocation24_spill]]  ;;  %s9846_s25 = sld [smem:[#allocation27_spill]] }
 0x6ce   : > { %p8121_p11 = scmp.ge.s32.totalorder %s8641_s12, 2 }
 0x6d3   : > { %s6929_s20 = sand.u32 1, %s9845_s21   ;;  %p9847_p9 = scmp.ne.s32.totalorder %s9846_s25, 0 }
 0x6d4   : > { %s6930_s5 = scalar_lea.sflag [#allocation4], %s6929_s20 }
 0x6d5   : > { %p8103_p3 = pnand %p8121_p11, %p9847_p9 }
 0x6d7   : > { %8624 = dma.done.wait (!%p8103_p3), %s6930_s5, 256  }
 0x6d8   : > { %8626 = vsyncadd (!%p8103_p3), %s6930_s5, 4294967040  ;;  %s9848_s12 = sld [smem:[#allocation25_spill]]  ;;  %s9849_s19 = sld [smem:[#allocation26_spill]] }
 0x6d9   : > { %s9850_s30 = smov %s8633_s10  ;;  %s9851_s10 = smov %s8637_s11 }
 0x6de   : > { %p26_p12 = scmp.ge.s32.totalorder %s9848_s12, 14   ;;  %s9852_s11 = smov %s9849_s19 }
 0x6e0   :  { %28 = sbr.rel (!%p26_p12) target bundleno = 15 (0xf), region = 141 }
 0x6e7   :  { %6935 = vsyncpa [#allocation3], 1 }
 0x6e8   :  { %6937 = vsyncpa [#allocation3 + $0x1], 1 }
 0x6e9   :  { %6938 = vsyncpa [#allocation6], 1 }
 0x6ea   :  { %6939 = vsyncpa [#allocation9], 1 }
 0x6eb   :  { %6940 = vsyncpa [#allocation12], 1 }
 0x6ec   :  { %6941 = vsyncpa [#allocation15], 1 }
 0x6ed   :  { %6943 = vsyncpa [#allocation15 + $0x1], 1 }
 0x6ee   :  { %6944 = vsyncpa [#allocation4], 1 }
 0x6ef   :  { %6946 = vsyncpa [#allocation4 + $0x1], 1 }

</bundles_post_ra>
